<compile_context>
chip_gen: v6e
topology: v6e:2x2x1
jax: 0.10.0
libtpu: 0.0.40
codegen_flags: <defaults>
</compile_context>

<pallas_src>
import functools

import jax
import jax.numpy as jnp
from jax.experimental import pallas as pl
from jax.experimental.pallas import tpu as pltpu


INPUT_SIZE = 2
OUTPUT_SIZE = 4
HIDDEN_LAYERS = 4
HIDDEN_SIZE = 48

_N_LIN = HIDDEN_LAYERS + 1          # 5 linear layers total
_PACK_LANES = 128                   # weight slab padded to a full lane tile


# --------------------------------------------------------------------------
# Kernel
# --------------------------------------------------------------------------
def _make_kernel(act_dtype):
    """Build the fused MainNet kernel for a given activation dtype."""

    def _mlp_kernel(w_ref, b_ref, x_ref, o_ref):
        """Fused forward for one batch tile (batch on lanes).

        w_ref : (5, 48, 128)  packed transposed weights (f32 or bf16)
        b_ref : (5, 48, 1)    biases, always f32
        x_ref : (2, T)        inputs, batch on lanes
        o_ref : (4, T)        outputs, batch on lanes
        """
        cdt = w_ref.dtype                      # MXU input dtype (f32 / bf16)
        # Explicit precision: exact f32 path uses HIGHEST (no silent bf16
        # truncation); bf16 path uses the native single-pass MXU path.
        prec = (jax.lax.Precision.HIGHEST if cdt == jnp.float32
                else jax.lax.Precision.DEFAULT)

        x = x_ref[...].astype(jnp.float32)     # (2, T)

        # Layer 0: Linear(2, 48) as two VPU broadcast-FMAs (K=2 would waste
        # the MXU).  Bias stays f32.
        w0a = w_ref[0, :, 0:1].astype(jnp.float32)         # (48, 1)
        w0b = w_ref[0, :, 1:2].astype(jnp.float32)         # (48, 1)
        pre = w0a * x[0:1, :] + w0b * x[1:2, :] + b_ref[0]  # (48, T) f32
        h = jnp.tanh(pre.astype(act_dtype))

        # Hidden layers 1..3: Linear(48, 48) on the MXU, f32 accumulation.
        # tanh runs in act_dtype (f32 default; bf16 uses the bf16 EUP on
        # v6e/v7x and feeds the next matmul with no extra cast).
        for l in range(1, HIDDEN_LAYERS):
            w = w_ref[l, :, :HIDDEN_SIZE]                   # (48, 48) cdt
            acc = jnp.dot(w, h.astype(cdt),
                          preferred_element_type=jnp.float32,
                          precision=prec)                   # (48, T) f32
            h = jnp.tanh((acc + b_ref[l]).astype(act_dtype))

        # Output layer: Linear(48, 4), no activation.  Bias add in f32.
        wo = w_ref[HIDDEN_LAYERS, :OUTPUT_SIZE, :HIDDEN_SIZE]   # (4, 48) cdt
        out = jnp.dot(wo, h.astype(cdt),
                      preferred_element_type=jnp.float32,
                      precision=prec)                            # (4, T) f32
        out = out + b_ref[HIDDEN_LAYERS, :OUTPUT_SIZE]           # (4, 1) f32
        o_ref[...] = out.astype(o_ref.dtype)

    return _mlp_kernel


# --------------------------------------------------------------------------
# Parameter packing / tiling helpers
# --------------------------------------------------------------------------
def pack_params(params, param_dtype=jnp.bfloat16):
    """Pack 5 (W, b) pairs (W: (f_in, f_out), b: (f_out,) or (1, f_out)) into
    a weight slab (5, 48, 128) in `param_dtype` (transposed weight in columns
    [0:f_in], zeros elsewhere) and a separate f32 bias slab (5, 48, 1)."""
    assert len(params) == _N_LIN
    w_pack = jnp.zeros((_N_LIN, HIDDEN_SIZE, _PACK_LANES), jnp.float32)
    b_pack = jnp.zeros((_N_LIN, HIDDEN_SIZE, 1), jnp.float32)
    for l, (w, b) in enumerate(params):
        wt = jnp.asarray(w, jnp.float32).T            # (f_out, f_in)
        bv = jnp.asarray(b, jnp.float32).reshape(-1)  # (f_out,)
        f_out, f_in = wt.shape
        w_pack = w_pack.at[l, :f_out, :f_in].set(wt)
        b_pack = b_pack.at[l, :f_out, 0].set(bv)
    return w_pack.astype(param_dtype), b_pack          # biases stay f32


def _round_up(x, m):
    return (x + m - 1) // m * m


def _choose_tiling(n, tile_n=None):
    """Pick (tile, padded_n).  tile is a multiple of 128 lane-columns."""
    npad128 = max(_round_up(n, 128), 128)
    if tile_n is not None:
        tile = max(_round_up(tile_n, 128), 128)
    else:
        # Large tiles amortize the ~0.35 us per-grid-step overhead and turn
        # the tiny per-row DMAs into multi-KB transfers.  VMEM stays far
        # below every generation's scoped limit even at 2048.
        tile = 2048 if npad128 >= 16384 else 1024
        tile = min(tile, npad128)
        # Keep >= 2 grid steps when the batch allows it, so the "parallel"
        # grid axis can engage both v7x TensorCores and the pipeline has work
        # to overlap; never shrink below 256 lanes.
        if npad128 >= 512:
            tile = min(tile, max(256, _round_up((npad128 + 1) // 2, 128)))
    npad = _round_up(npad128, tile)
    return tile, npad


def _resident_spec(block_shape):
    """BlockSpec for a parameter block with a constant block index (fetched
    once, resident across grid steps).  Single-buffer it when the installed
    Pallas supports pipeline_mode; otherwise fall back (the constant index
    already prevents per-step re-DMA)."""
    idx_map = lambda i: (0,) * len(block_shape)
    try:
        return pl.BlockSpec(block_shape, idx_map, pipeline_mode=pl.Buffered(1))
    except TypeError:
        return pl.BlockSpec(block_shape, idx_map)


# --------------------------------------------------------------------------
# Public forward
# --------------------------------------------------------------------------
def mainnet_forward(x, params, *, tile_n=None, param_dtype=jnp.bfloat16,
                    bf16_activations=False):
    """Run the fused MainNet forward pass.

    x                : (N, 2) float32 (same interface as the PyTorch module)
    params           : list of 5 (W, b) pairs, W: (f_in, f_out), b: (f_out,)
    tile_n           : batch columns per grid step (multiple of 128). None ->
                       auto (1024/2048, clamped so the grid keeps >= 2 steps).
    param_dtype      : jnp.bfloat16 (default; bf16 MXU inputs, f32 accumulate,
                       f32 biases) or jnp.float32 (exact: precision=HIGHEST).
    bf16_activations : run tanh in bf16 and feed bf16 activations to the next
                       matmul (fastest on v6e/v7x bf16 EUP; keep False for
                       strict f32 activations / v5e).
    """
    n, f_in = x.shape
    assert f_in == INPUT_SIZE

    w_pack, b_pack = pack_params(params, param_dtype)
    tile, npad = _choose_tiling(n, tile_n)

    # Batch-on-lanes layout: kernel sees x^T and writes out^T.  Padded
    # columns are zeros -> finite garbage, sliced off below.
    xt = jnp.zeros((INPUT_SIZE, npad), jnp.float32)
    xt = xt.at[:, :n].set(x.T.astype(jnp.float32))

    act_dtype = jnp.bfloat16 if bf16_activations else jnp.float32
    kernel = _make_kernel(act_dtype)

    grid = (npad // tile,)
    out_t = pl.pallas_call(
        kernel,
        out_shape=jax.ShapeDtypeStruct((OUTPUT_SIZE, npad), jnp.float32),
        grid_spec=pltpu.PrefetchScalarGridSpec(
            num_scalar_prefetch=0,
            grid=grid,
            in_specs=[
                _resident_spec((_N_LIN, HIDDEN_SIZE, _PACK_LANES)),  # weights
                _resident_spec((_N_LIN, HIDDEN_SIZE, 1)),            # f32 bias
                pl.BlockSpec((INPUT_SIZE, tile), lambda i: (0, i)),  # x^T tile
            ],
            out_specs=pl.BlockSpec((OUTPUT_SIZE, tile), lambda i: (0, i)),
        ),
        compiler_params=pltpu.CompilerParams(
            dimension_semantics=("parallel",)),
    )(w_pack, b_pack, xt)

    return out_t[:, :n].T.astype(x.dtype)


# --------------------------------------------------------------------------
# Reference / init / demo
# --------------------------------------------------------------------------
def init_params(key):
    """Deterministic init mimicking PyTorch nn.Linear defaults
    (uniform(-1/sqrt(fan_in), 1/sqrt(fan_in)))."""
    sizes = [INPUT_SIZE] + [HIDDEN_SIZE] * HIDDEN_LAYERS + [OUTPUT_SIZE]
    params = []
    for f_in, f_out in zip(sizes[:-1], sizes[1:]):
        key, kw, kb = jax.random.split(key, 3)
        bound = 1.0 / jnp.sqrt(jnp.float32(f_in))
        w = jax.random.uniform(kw, (f_in, f_out), jnp.float32, -bound, bound)
        b = jax.random.uniform(kb, (f_out,), jnp.float32, -bound, bound)
        params.append((w, b))
    return params


def reference_forward(x, params):
    h = x
    for i, (w, b) in enumerate(params):
        h = h @ w + b.reshape(1, -1)
        if i < len(params) - 1:
            h = jnp.tanh(h)
    return h


if __name__ == "__main__":
    key = jax.random.PRNGKey(0)
    key, kx = jax.random.split(key)

    N = 1000  # collocation points; not a multiple of 128 -> exercises padding
    x = jax.random.normal(kx, (N, INPUT_SIZE), jnp.float32)
    params = init_params(key)

    ref = reference_forward(x, params)

    # Exact-f32 path (precision=HIGHEST matmuls, f32 tanh).
    out_f32 = jax.block_until_ready(
        mainnet_forward(x, params, param_dtype=jnp.float32))
    assert out_f32.shape == (N, OUTPUT_SIZE)
    assert jnp.allclose(out_f32, ref, atol=1e-4, rtol=1e-4)

    # Default fast path: bf16 MXU inputs, f32 accumulate, f32 biases/tanh.
    # Auto tiling picks tile=512 here -> 2 grid steps (both v7x TCs).
    out_def = jax.block_until_ready(mainnet_forward(x, params))
    assert out_def.shape == (N, OUTPUT_SIZE)
    assert jnp.allclose(out_def, ref, atol=1e-1, rtol=5e-2)

    # Optional bf16 activation path (bf16 EUP tanh on v6e/v7x).
    out_bf16act = jax.block_until_ready(
        mainnet_forward(x, params, bf16_activations=True))
    assert out_bf16act.shape == (N, OUTPUT_SIZE)
    assert jnp.allclose(out_bf16act, ref, atol=2e-1, rtol=1e-1)

    # Explicit tile_n override (single big tile).
    out_big = jax.block_until_ready(mainnet_forward(x, params, tile_n=1024))
    assert jnp.allclose(out_big, ref, atol=1e-1, rtol=5e-2)

    print("KERNEL_OK")
</pallas_src>

<mosaic_0001>
module attributes {stable_mosaic.version = 11 : i64} {
  func.func @_mlp_kernel(%arg0: i32, %arg1: memref<5x48x128xf32, #tpu.memory_space<vmem>>, %arg2: memref<5x48x1xf32, #tpu.memory_space<vmem>>, %arg3: memref<2x512xf32, #tpu.memory_space<vmem>>, %arg4: memref<4x512xf32, #tpu.memory_space<vmem>>) attributes {dimension_semantics = [#tpu.dimension_semantics<parallel>], iteration_bounds = array<i64: 2>, scalar_prefetch = 0 : i64, scratch_operands = 0 : i64, tpu.core_type = #tpu.core_type<tc>, window_params = [{pipeline_mode = #tpu.pipeline_mode<synchronous>, transform_indices = @transform_0, window_bounds = array<i64: 5, 48, 128>}, {pipeline_mode = #tpu.pipeline_mode<synchronous>, transform_indices = @transform_1, window_bounds = array<i64: 5, 48, 1>}, {transform_indices = @transform_2, window_bounds = array<i64: 2, 512>}, {transform_indices = @transform_3, window_bounds = array<i64: 4, 512>}]} {
    %c0 = arith.constant 0 : index
    %c0_0 = arith.constant 0 : index
    %0 = vector.load %arg3[%c0, %c0_0] : memref<2x512xf32, #tpu.memory_space<vmem>>, vector<2x512xf32>
    %c0_1 = arith.constant 0 : index
    %c0_2 = arith.constant 0 : index
    %c0_3 = arith.constant 0 : index
    %1 = vector.load %arg1[%c0_1, %c0_2, %c0_3] : memref<5x48x128xf32, #tpu.memory_space<vmem>>, vector<1x48x1xf32>
    %2 = vector.shape_cast %1 : vector<1x48x1xf32> to vector<48x1xf32>
    %c0_4 = arith.constant 0 : index
    %c0_5 = arith.constant 0 : index
    %c1 = arith.constant 1 : index
    %3 = vector.load %arg1[%c0_4, %c0_5, %c1] : memref<5x48x128xf32, #tpu.memory_space<vmem>>, vector<1x48x1xf32>
    %4 = vector.shape_cast %3 : vector<1x48x1xf32> to vector<48x1xf32>
    %5 = vector.extract_strided_slice %0 {offsets = [0, 0], sizes = [1, 512], strides = [1, 1]} : vector<2x512xf32> to vector<1x512xf32>
    %6 = vector.broadcast %2 : vector<48x1xf32> to vector<48x512xf32>
    %7 = vector.broadcast %5 : vector<1x512xf32> to vector<48x512xf32>
    %8 = arith.mulf %6, %7 : vector<48x512xf32>
    %9 = vector.extract_strided_slice %0 {offsets = [1, 0], sizes = [1, 512], strides = [1, 1]} : vector<2x512xf32> to vector<1x512xf32>
    %10 = vector.broadcast %4 : vector<48x1xf32> to vector<48x512xf32>
    %11 = vector.broadcast %9 : vector<1x512xf32> to vector<48x512xf32>
    %12 = arith.mulf %10, %11 : vector<48x512xf32>
    %13 = arith.addf %8, %12 : vector<48x512xf32>
    %c0_6 = arith.constant 0 : index
    %c0_7 = arith.constant 0 : index
    %c0_8 = arith.constant 0 : index
    %14 = vector.load %arg2[%c0_6, %c0_7, %c0_8] : memref<5x48x1xf32, #tpu.memory_space<vmem>>, vector<1x48x1xf32>
    %15 = vector.shape_cast %14 : vector<1x48x1xf32> to vector<48x1xf32>
    %16 = vector.broadcast %15 : vector<48x1xf32> to vector<48x512xf32>
    %17 = arith.addf %13, %16 : vector<48x512xf32>
    %18 = math.tanh %17 : vector<48x512xf32>
    %c1_9 = arith.constant 1 : index
    %c0_10 = arith.constant 0 : index
    %c0_11 = arith.constant 0 : index
    %19 = vector.load %arg1[%c1_9, %c0_10, %c0_11] : memref<5x48x128xf32, #tpu.memory_space<vmem>>, vector<1x48x48xf32>
    %20 = vector.shape_cast %19 : vector<1x48x48xf32> to vector<48x48xf32>
    %cst = arith.constant dense<0.000000e+00> : vector<48x512xf32>
    %21 = tpu.matmul %20, %18, %cst {dimension_numbers = #tpu.dot_dimension_numbers<[1], [0], [0], [1], [0, 0, 1, 1], [], []>, precision = #tpu.contract_precision<fp32>} : vector<48x48xf32>, vector<48x512xf32>, vector<48x512xf32> -> vector<48x512xf32>
    %c1_12 = arith.constant 1 : index
    %c0_13 = arith.constant 0 : index
    %c0_14 = arith.constant 0 : index
    %22 = vector.load %arg2[%c1_12, %c0_13, %c0_14] : memref<5x48x1xf32, #tpu.memory_space<vmem>>, vector<1x48x1xf32>
    %23 = vector.shape_cast %22 : vector<1x48x1xf32> to vector<48x1xf32>
    %24 = vector.broadcast %23 : vector<48x1xf32> to vector<48x512xf32>
    %25 = arith.addf %21, %24 : vector<48x512xf32>
    %26 = math.tanh %25 : vector<48x512xf32>
    %c2 = arith.constant 2 : index
    %c0_15 = arith.constant 0 : index
    %c0_16 = arith.constant 0 : index
    %27 = vector.load %arg1[%c2, %c0_15, %c0_16] : memref<5x48x128xf32, #tpu.memory_space<vmem>>, vector<1x48x48xf32>
    %28 = vector.shape_cast %27 : vector<1x48x48xf32> to vector<48x48xf32>
    %cst_17 = arith.constant dense<0.000000e+00> : vector<48x512xf32>
    %29 = tpu.matmul %28, %26, %cst_17 {dimension_numbers = #tpu.dot_dimension_numbers<[1], [0], [0], [1], [0, 0, 1, 1], [], []>, precision = #tpu.contract_precision<fp32>} : vector<48x48xf32>, vector<48x512xf32>, vector<48x512xf32> -> vector<48x512xf32>
    %c2_18 = arith.constant 2 : index
    %c0_19 = arith.constant 0 : index
    %c0_20 = arith.constant 0 : index
    %30 = vector.load %arg2[%c2_18, %c0_19, %c0_20] : memref<5x48x1xf32, #tpu.memory_space<vmem>>, vector<1x48x1xf32>
    %31 = vector.shape_cast %30 : vector<1x48x1xf32> to vector<48x1xf32>
    %32 = vector.broadcast %31 : vector<48x1xf32> to vector<48x512xf32>
    %33 = arith.addf %29, %32 : vector<48x512xf32>
    %34 = math.tanh %33 : vector<48x512xf32>
    %c3 = arith.constant 3 : index
    %c0_21 = arith.constant 0 : index
    %c0_22 = arith.constant 0 : index
    %35 = vector.load %arg1[%c3, %c0_21, %c0_22] : memref<5x48x128xf32, #tpu.memory_space<vmem>>, vector<1x48x48xf32>
    %36 = vector.shape_cast %35 : vector<1x48x48xf32> to vector<48x48xf32>
    %cst_23 = arith.constant dense<0.000000e+00> : vector<48x512xf32>
    %37 = tpu.matmul %36, %34, %cst_23 {dimension_numbers = #tpu.dot_dimension_numbers<[1], [0], [0], [1], [0, 0, 1, 1], [], []>, precision = #tpu.contract_precision<fp32>} : vector<48x48xf32>, vector<48x512xf32>, vector<48x512xf32> -> vector<48x512xf32>
    %c3_24 = arith.constant 3 : index
    %c0_25 = arith.constant 0 : index
    %c0_26 = arith.constant 0 : index
    %38 = vector.load %arg2[%c3_24, %c0_25, %c0_26] : memref<5x48x1xf32, #tpu.memory_space<vmem>>, vector<1x48x1xf32>
    %39 = vector.shape_cast %38 : vector<1x48x1xf32> to vector<48x1xf32>
    %40 = vector.broadcast %39 : vector<48x1xf32> to vector<48x512xf32>
    %41 = arith.addf %37, %40 : vector<48x512xf32>
    %42 = math.tanh %41 : vector<48x512xf32>
    %c4 = arith.constant 4 : index
    %c0_27 = arith.constant 0 : index
    %c0_28 = arith.constant 0 : index
    %43 = vector.load %arg1[%c4, %c0_27, %c0_28] : memref<5x48x128xf32, #tpu.memory_space<vmem>>, vector<1x4x48xf32>
    %44 = vector.shape_cast %43 : vector<1x4x48xf32> to vector<4x48xf32>
    %cst_29 = arith.constant dense<0.000000e+00> : vector<4x512xf32>
    %45 = tpu.matmul %44, %42, %cst_29 {dimension_numbers = #tpu.dot_dimension_numbers<[1], [0], [0], [1], [0, 0, 1, 1], [], []>, precision = #tpu.contract_precision<fp32>} : vector<4x48xf32>, vector<48x512xf32>, vector<4x512xf32> -> vector<4x512xf32>
    %c4_30 = arith.constant 4 : index
    %c0_31 = arith.constant 0 : index
    %c0_32 = arith.constant 0 : index
    %46 = vector.load %arg2[%c4_30, %c0_31, %c0_32] : memref<5x48x1xf32, #tpu.memory_space<vmem>>, vector<1x4x1xf32>
    %47 = vector.shape_cast %46 : vector<1x4x1xf32> to vector<4x1xf32>
    %48 = vector.broadcast %47 : vector<4x1xf32> to vector<4x512xf32>
    %49 = arith.addf %45, %48 : vector<4x512xf32>
    %c0_33 = arith.constant 0 : index
    %c0_34 = arith.constant 0 : index
    %50 = vector.load %arg4[%c0_33, %c0_34] : memref<4x512xf32, #tpu.memory_space<vmem>>, vector<4x512xf32>
    tpu.vector_store %arg4[%c0_33, %c0_34], %49 {strides = array<i32>} : memref<4x512xf32, #tpu.memory_space<vmem>>, vector<4x512xf32>,
    return
  }
  func.func @transform_0(%arg0: i32) -> (i32, i32, i32) {
    %c0_i32 = arith.constant 0 : i32
    %c0_i32_0 = arith.constant 0 : i32
    %c0_i32_1 = arith.constant 0 : i32
    %c0_i32_2 = arith.constant 0 : i32
    return %c0_i32, %c0_i32_0, %c0_i32_1 : i32, i32, i32
  }
  func.func @transform_1(%arg0: i32) -> (i32, i32, i32) {
    %c0_i32 = arith.constant 0 : i32
    %c0_i32_0 = arith.constant 0 : i32
    %c0_i32_1 = arith.constant 0 : i32
    %c0_i32_2 = arith.constant 0 : i32
    return %c0_i32, %c0_i32_0, %c0_i32_1 : i32, i32, i32
  }
  func.func @transform_2(%arg0: i32) -> (i32, i32) {
    %c0_i32 = arith.constant 0 : i32
    %c0_i32_0 = arith.constant 0 : i32
    return %c0_i32, %arg0 : i32, i32
  }
  func.func @transform_3(%arg0: i32) -> (i32, i32) {
    %c0_i32 = arith.constant 0 : i32
    %c0_i32_0 = arith.constant 0 : i32
    return %c0_i32, %arg0 : i32, i32
  }
}

</mosaic_0001>

<bundles_post_ra>
// kernel: tpu_custom_call.1
= control target key start
LH: loop header
LB: loop body
LE: loop exit
PB: predicated region body
PF: predicated region fallthrough
CT: control target
= control target key end

     0   :  { %8 = vsyncpa [#allocation3], 0  ;;  %s10976_s0 = inlined_call_operand.vmem [shape: f32[5,48,128], index: 0, kind: input, shape index: {}]   ;;  %s10977_s1 = inlined_call_operand.vmem [shape: f32[5,48,1], index: 1, kind: input, shape index: {}]   ;;  %s10978_s2 = inlined_call_operand.hbm [shape: f32[2,1024], index: 2, kind: input, shape index: {}]   ;;  %s10979_s3 = inlined_call_operand.hbm [shape: f32[4,1024], index: 3, kind: output, shape index: {}]  }
   0x1   :  { %10 = vsyncpa [#allocation3 + $0x1], 0 }
   0x2   :  { %11 = vsyncpa [#allocation4], 0 }
   0x3   :  { %13 = vsyncpa [#allocation4 + $0x1], 0  ;;  %s7499_s12 = smov 0   ;;  %s7501_s13 = smov 0  }
   0x4   :  { %s7503_s14 = smov 0   ;;  %s7505_s15 = smov 0  }
   0x5 LB: > { %s7520_s16 = sadd.s32 4294967295, %s7472_s15   ;;  %s7075_s17 = sadd.s32 4294967294, %s7472_s15   ;;  %s7472_s15 = sphi %s7505_s15, %s11553_s15   ;;  %s7468_s14 = sphi %s7503_s14, %s11552_s14   ;;  %s7464_s13 = sphi %s7501_s13, %s11551_s13   ;;  %s7460_s12 = sphi %s7499_s12, %s11550_s12  }
   0x6   : > { %s7524_s18 = sadd.s32 1, %s7472_s15   ;;  %s68_s19 = sadd.s32 1, %s7468_s14 }
   0x7   : > { %s65_s20 = ssub.s32 %s7472_s15, %s7524_s18  ;;  %p75_p0 = scmp.ne.s32.totalorder %s7468_s14, %s7464_s13 }
   0x8   : > { %p66_p1 = scmp.eq.s32.totalorder %s65_s20, 0  ;;  %p76_p2 = scmp.eq.s32.totalorder %s7472_s15, 0 }
   0x9   : > { %p81_p3 = scmp.ne.s32.totalorder %s7464_s13, %s7460_s12  ;;  %p82_p4 = scmp.eq.s32.totalorder %s7520_s16, 0 }
   0xa   : > { %s7536_s21 = scalar_select %p66_p1, %s7468_s14, %s68_s19  }
   0xb   : > { %p7538_p5 = por %p76_p2, %p75_p0  ;;  %p7542_p6 = por %p82_p4, %p81_p3 }
   0xc   : > { %p105_p7 = scmp.eq.s32.totalorder %s7520_s16, 1  ;;  %p111_p8 = scmp.eq.s32.totalorder %s7075_s17, 1 }
   0xd   : > { %s11119_s23 = scalar_select %p7542_p6, 1, 0 }
   0xe   : > { %p7141_p10 = scmp.lt.s32.totalorder %s7472_s15, 2  ;;  %p7549_p11 = por %p105_p7, %p75_p0 }
   0xf   : > { %p7553_p12 = por %p111_p8, %p81_p3  ;;  %s137_s26 = sand.u32 1, %s7468_s14  }
  0x10   : > { %s11120_s24 = scalar_select %p7549_p11, 1, 0 }
  0x11   : > { %s11121_s25 = scalar_select %p7553_p12, 1, 0 }
  0x12   : > { %s7127_s27 = sshll.u32 %s7472_s15, 7  ;;  %s7078_s28 = sshll.u32 %s137_s26, 3 }
  0x13   : > { %s7562_s4 = scalar_lea.hbm %s10978_s2, %s7127_s27  ;;  %s141_s5 = scalar_lea.vmem [#allocation2], %s7078_s28 }
  0x14   : > { %s149_s6 = sshll.u32 %s141_s5, 4  ;;  %p7566_p13 = pnand %p7141_p10, %p7538_p5  ;;  %s7570_s6 = int_to_ptr.vmem [resolvable:$true] %s149_s6 }
  0x15   : > { %s138_s8 = scalar_lea.sflag [#allocation3], %s137_s26  ;;  %s7380_s9 = scalar_lea.hbm %s7562_s4, 128 }
  0x16   : > { %p7381_p2 = scmp.ne.s32.totalorder %s7562_s4, %s7380_s9  ;;  %p7382_p3 = pneg %p7566_p13 }
  0x17   : > { %s7385_s17 = scalar_lea.hbm %s10978_s2, 256  ;;  %p7386_p5 = scmp.lt.s32.totalorder %s7562_s4, %s10978_s2 }
  0x18   : > { %p7383_p4 = pnand %p7382_p3, %p7381_p2  ;;  %p7387_p8 = scmp.lt.s32.totalorder %s7385_s17, %s7380_s9 }
  0x1a   : > { %p7384_p7 = pneg %p7383_p4  ;;  %p7388_p10 = por %p7387_p8, %p7386_p5 }
  0x1c   : > { %p7389_p9 = pnand %p7388_p10, %p7384_p7 }
  0x1e   : > { %7392 = shalt.err (!%p7389_p9)
}
  0x1f   : > { %s7393_s22 = scalar_lea.vmem %s7570_s6, 128  ;;  %s7474_s26 = smov [#allocation2]  }
  0x20   : > { %p7394_p0 = scmp.ne.s32.totalorder %s7570_s6, %s7393_s22  ;;  %s7398_s27 = sshll.u32 %s7474_s26, 4  ;;  %s7399_s27 = int_to_ptr.vmem [resolvable:$false] %s7398_s27 }
  0x21   : > { %s7400_s28 = scalar_lea.vmem %s7399_s27, 256  ;;  %p7401_p4 = scmp.lt.s32.totalorder %s7570_s6, %s7399_s27 }
  0x22   : > { %p7396_p1 = pnand %p7394_p0, %p7382_p3  ;;  %p7402_p12 = scmp.lt.s32.totalorder %s7400_s28, %s7393_s22 }
  0x24   : > { %p7397_p2 = pneg %p7396_p1  ;;  %p7403_p11 = por %p7402_p12, %p7401_p4 }
  0x26   : > { %p7404_p6 = pnand %p7403_p11, %p7397_p2 }
  0x28   : > { %7407 = shalt.err (!%p7404_p6)
}
  0x29   : > { %7136 = dma.hbm_to_vmem [thread:$0]  (!%p7566_p13), %s7562_s4, 128, %s7570_s6, %s138_s8  }
  0x2a   : > { %p11123_p9 = scmp.lt.s32.totalorder %s7472_s15, 3  ;;  %p11124_p7 = scmp.ge.s32.totalorder %s7472_s15, 1 }
  0x2c   : > { %p155_p0 = pnand %p11124_p7, %p11123_p9 }
  0x2e   : > { %158 = sbr.rel (%p155_p0) target bundleno = 1510 (0x5e6), region = 32 }
  0x33   : > { %s7597_s29 = sand.u32 1, %s7464_s13   ;;  %p11125_p6 = scmp.ne.s32.totalorder %s11119_s23, 0 }
  0x34   : > { %s7082_s30 = sshll.u32 %s7597_s29, 3  ;;  %s161_s5 = scalar_lea.sflag [#allocation3], %s7597_s29 }
  0x35   : > { %s164_s9 = scalar_lea.vmem [#allocation2], %s7082_s30 }
  0x36   : > { %7451 = dma.done.wait (%p11125_p6), %s161_s5, 128  }
  0x37   : > { %7453 = vsyncadd (%p11125_p6), %s161_s5, 4294967168  ;;  %v7475_v0 = vmov 0   ;;  %v227_v1 = vlaneseq  ;;  %v195_v2 = vld [vmem:[%s10976_s0 + $0x28] sm:$0xff]  ;;  %v194_v3 = vld [vmem:[%s10976_s0 + $0x20] sm:$0xff]  ;;  %v7476_v6 = vmov 1   ;;  %v11003_v46 = vmov 0.0  }
  0x38   : > { %7179 = vset.pattern.permute.xlu1 %v7475_v0  ;;  %7178 = vset.pattern.permute.xlu0 %v7475_v0  ;;  %v192_v4 = vld [vmem:[%s10976_s0 + $0x10] sm:$0xff]  ;;  %v191_v7 = vld [vmem:[%s10976_s0 + $0x8] sm:$0xff]  ;;  %v193_v10 = vld [vmem:[%s10976_s0 + $0x18] sm:$0xff]  ;;  %vm523_vm0 = vcmask 392192   ;;  %s7083_s5 = sshll.u32 %s7597_s29, 4  ;;  %s7128_s4 = sshll.u32 %s7520_s16, 8 }
  0x39   : > { %223 = vperm.xlu0 %7178, %v195_v2   ;;  %218 = vperm.xlu1 %7179, %v194_v3   ;;  %v7614_v5 = vshrl.u32 %v227_v1, 7  ;;  %v398_v13 = vld [vmem:[%s10977_s1 + $0x18] sm:$0xff]  ;;  %v7629_v14 = vld [vmem:[%s164_s9] sm:$0xff]  ;;  %v397_v31 = vld [vmem:[%s10977_s1 + $0x10] sm:$0xff]  ;;  %s10936_s9 = scalar_lea.vmem [#allocation5], %s7083_s5  ;;  %s7003_s10 = scalar_lea.hbm %s10979_s3, %s7128_s4 }
  0x3a   : > { %v400_v18 = vld [vmem:[%s10977_s1 + $0x28] sm:$0xff]  ;;  %v399_v26 = vld [vmem:[%s10977_s1 + $0x20] sm:$0xff]  ;;  %v7091_v30 = vld [vmem:[%s10977_s1 + $0x38] sm:$0xff]  ;;  %618 = vmatprep.mubr.f32.mxu0 %v11003_v46  ;;  %809 = vmatprep.mubr.f32.mxu1 %v11003_v46  ;;  %s7005_s6 = sshll.u32 %s10936_s9, 4  ;;  %s6991_s11 = scalar_lea.sflag [#allocation4], %s7597_s29  ;;  %s7006_s6 = int_to_ptr.vmem [resolvable:$true] %s7005_s6 }
  0x3b   : > { %v237_v8 = vsub.s32 4, %v7614_v5  ;;  %v241_v9 = vsub.s32 6, %v7614_v5  ;;  %v321_v11 = vsub.s32 5, %v7614_v5  ;;  %v325_v12 = vsub.s32 7, %v7614_v5  ;;  %v190_v27 = vld [vmem:[%s10976_s0] sm:$0xff]  ;;  %v7093_v29 = vld [vmem:[%s10977_s1 + $0x48] sm:$0xff] }
  0x3c   : > { %v7632_v15 = vsub.s32 0, %v7614_v5  ;;  %v7640_v19 = vsub.s32 1, %v7614_v5  ;;  %v395_v28 = vld [vmem:[%s10977_s1] sm:$0xff]  ;;  %v7107_v32 = vld [vmem:[%s10977_s1 + $0x88] sm:$0xff]  ;;  %v7105_v34 = vld [vmem:[%s10977_s1 + $0x78] sm:$0xff]  ;;  %v233_v61 = vsub.s32 2, %v7614_v5 }
  0x3d   : > { %7180 = vset.pattern.permute.xlu1 %v7476_v6  ;;  %208 = vperm.xlu0 %7178, %v192_v4   ;;  %v238_v16 = vrot.slane %v7629_v14, %v237_v8  ;;  %v242_v17 = vrot.slane %v7629_v14, %v241_v9  ;;  %v322_v20 = vrot.slane %v7629_v14, %v321_v11  ;;  %v396_v33 = vld [vmem:[%s10977_s1 + $0x8] sm:$0xff]  ;;  %v7095_v35 = vld [vmem:[%s10977_s1 + $0x58] sm:$0xff]  ;;  %v7094_v37 = vld [vmem:[%s10977_s1 + $0x50] sm:$0xff]  ;;  %s7408_s23 = scalar_lea.vmem %s7006_s6, 256  ;;  %p11547_p12 = scmp.ne.s32.totalorder %s11120_s24, 0 }
  0x3e   : > { %304 = vperm.xlu1 %7180, %v194_v3   ;;  %v326_v21 = vrot.slane %v7629_v14, %v325_v12  ;;  %v7103_v36 = vld [vmem:[%s10977_s1 + $0x68] sm:$0xff]  ;;  %v7119_v38 = vld [vmem:[%s10977_s1 + $0xb8] sm:$0xff]  ;;  %v7092_v39 = vld [vmem:[%s10977_s1 + $0x40] sm:$0xff]  ;;  %v234_v8 = vrot.slane %v7629_v14, %v233_v61  ;;  %p7409_p11 = scmp.ne.s32.totalorder %s7006_s6, %s7408_s23  ;;  %s7478_s17 = smov [#allocation5]  }
  0x3f   : > { %v7645_v22 = vrot.slane %v238_v16, %v7632_v15  ;;  %v7648_v23 = vrot.slane %v242_v17, %v7632_v15  ;;  %v7651_v24 = vrot.slane %v322_v20, %v7640_v19  ;;  %v7117_v40 = vld [vmem:[%s10977_s1 + $0xa8] sm:$0xff]  ;;  %v7090_v41 = vld [vmem:[%s10977_s1 + $0x30] sm:$0xff]  ;;  %v7115_v42 = vld [vmem:[%s10977_s1 + $0x98] sm:$0xff]  ;;  %s7412_s19 = sshll.u32 %s7478_s17, 4  ;;  %s7413_s19 = int_to_ptr.vmem [resolvable:$false] %s7412_s19 }
  0x40   : > { %v7654_v25 = vrot.slane %v326_v21, %v7640_v19  ;;  %v7106_v43 = vld [vmem:[%s10977_s1 + $0x80] sm:$0xff]  ;;  %v7104_v45 = vld [vmem:[%s10977_s1 + $0x70] sm:$0xff]  ;;  %p7410_p13 = pnand %p7409_p11, %p11547_p12  ;;  %s7414_s16 = scalar_lea.vmem %s7413_s19, 512 }
  0x41   : > { %203 = vperm.xlu0 %7178, %v191_v7   ;;  %v7121_v44 = vld [vmem:[%s10977_s1 + $0xc0] sm:$0xf]  ;;  %v7118_v48 = vld [vmem:[%s10977_s1 + $0xb0] sm:$0xff]  ;;  %p7415_p3 = scmp.lt.s32.totalorder %s7006_s6, %s7413_s19  ;;  %p7416_p5 = scmp.lt.s32.totalorder %s7414_s16, %s7408_s23 }
  0x42   : > { %7181 = vset.pattern.permute.xlu1 %v7475_v0  ;;  %v7102_v47 = vld [vmem:[%s10977_s1 + $0x60] sm:$0xff]  ;;  %v7114_v50 = vld [vmem:[%s10977_s1 + $0x90] sm:$0xff]  ;;  %p7411_p1 = pneg %p7410_p13 }
  0x43   : > { %213 = vperm.xlu1 %7181, %v193_v10   ;;  %v7116_v49 = vld [vmem:[%s10977_s1 + $0xa0] sm:$0xff]  ;;  %p7417_p8 = por %p7416_p5, %p7415_p3 }
  0x45   : > { %418 = vperm.xlu0 %7178, %v398_v13   ;;  %p7418_p10 = pnand %p7417_p8, %p7411_p1 }
  0x47   : > { %428 = vperm.xlu1 %7181, %v400_v18   ;;  %v7768_v18 = vrot.slane %v234_v8, %v7632_v15 }
  0x49   : > { %7185 = vset.pattern.permute.xlu0 %v7476_v6 }
  0x4a   : > { %308 = vperm.xlu0 %7185, %v195_v2  }
  0x4b   : > { %7182 = vset.pattern.permute.xlu1 %v7476_v6 }
  0x4c   : > { %296 = vperm.xlu1 %7182, %v192_v4  }
  0x4e   : > { %300 = vperm.xlu0 %7185, %v193_v10  }
  0x50   : > { %7183 = vset.pattern.permute.xlu1 %v7475_v0 }
  0x51   : > { %423 = vperm.xlu1 %7183, %v399_v26  }
  0x52   : > { %288 = vperm.xlu0 %7185, %v190_v27  }
  0x55   : > { %7184 = vset.pattern.permute.xlu1 %v7476_v6 }
  0x56   : > { %292 = vperm.xlu1 %7184, %v191_v7   ;;  %7187 = vset.pattern.permute.xlu0 %v7475_v0  ;;  %v230_v7 = vrot.slane %v7629_v14, %v7632_v15 }
  0x57   : > { %403 = vperm.xlu0 %7187, %v395_v28  }
  0x58   : > { %v7765_v17 = vrot.slane %v230_v7, %v7632_v15 }
  0x5a   : > { %7186 = vset.pattern.permute.xlu1 %v7475_v0  ;;  %v317_v0 = vsub.s32 3, %v7614_v5  ;;  %v314_v5 = vrot.slane %v7629_v14, %v7640_v19 }
  0x5b   : > { %510 = vperm.xlu0 %7187, %v7093_v29   ;;  %198 = vperm.xlu1 %7186, %v190_v27  }
  0x5c   : > { %v318_v10 = vrot.slane %v7629_v14, %v317_v0  ;;  %v7771_v20 = vrot.slane %v314_v5, %v7640_v19 }
  0x5e   : > { %v7774_v21 = vrot.slane %v318_v10, %v7640_v19 }
  0x5f   : > { %500 = vperm.xlu0 %7187, %v7091_v30   ;;  %413 = vperm.xlu1 %7186, %v397_v31  }
  0x63   : > { %2287 = vperm.xlu0 %7187, %v7107_v32   ;;  %408 = vperm.xlu1 %7186, %v396_v33  }
  0x67   : > { %2277 = vperm.xlu0 %7187, %v7105_v34   ;;  %520 = vperm.xlu1 %7186, %v7095_v35  }
  0x6b   : > { %2267 = vperm.xlu0 %7187, %v7103_v36   ;;  %515 = vperm.xlu1 %7186, %v7094_v37  }
  0x6f   : > { %4053 = vperm.xlu0 %7187, %v7119_v38   ;;  %505 = vperm.xlu1 %7186, %v7092_v39  }
  0x73   : > { %4043 = vperm.xlu0 %7187, %v7117_v40   ;;  %495 = vperm.xlu1 %7186, %v7090_v41  }
  0x77   : > { %4033 = vperm.xlu0 %7187, %v7115_v42   ;;  %2282 = vperm.xlu1 %7186, %v7106_v43  }
  0x7b   : > { %5784 = vperm.xlu0 %7187, %v7121_v44   ;;  %2272 = vperm.xlu1 %7186, %v7104_v45  }
  0x7f   : > { %2262 = vperm.xlu1 %7186, %v7102_v47  }
  0x83   : > { %4048 = vperm.xlu1 %7186, %v7118_v48  }
  0x87   : > { %4038 = vperm.xlu1 %7186, %v7116_v49  }
  0x8b   : > { %4028 = vperm.xlu1 %7186, %v7114_v50  }
  0xb4   : > { %v219_v51 = vpop.permute.xlu1 %218  ;;  %v224_v52 = vpop.permute.xlu0 %223 }
  0xb5   : > { %v281_v53 = vmul.f32 %v7645_v22, %v219_v51  ;;  %v282_v54 = vmul.f32 %v7648_v23, %v219_v51  ;;  %v285_v55 = vmul.f32 %v7645_v22, %v224_v52  ;;  %v286_v56 = vmul.f32 %v7648_v23, %v224_v52 }
  0xb6   : > { %v283_v14 = vmul.f32 %v7765_v17, %v224_v52  ;;  %v284_v26 = vmul.f32 %v7768_v18, %v224_v52  ;;  %v279_v31 = vmul.f32 %v7765_v17, %v219_v51 }
  0xb8   : > { %v7734_v57 = vpop.permute.xlu0 %208 }
  0xb9   : > { %v305_v58 = vpop.permute.xlu1 %304  ;;  %v273_v59 = vmul.f32 %v7645_v22, %v7734_v57  ;;  %v7740_v60 = vmul.f32 %v7648_v23, %v7734_v57 }
  0xba   : > { %v365_v62 = vmul.f32 %v7651_v24, %v305_v58  ;;  %v366_v63 = vmul.f32 %v7654_v25, %v305_v58  ;;  %v363_v32 = vmul.f32 %v7771_v20, %v305_v58  ;;  %v364_v19 = vmul.f32 %v7774_v21, %v305_v58 }
  0xbc   : > { %v7746_v1 = vpop.permute.xlu0 %203  ;;  %v389_v2 = vadd.f32 %v365_v62, %v281_v53  ;;  %v390_v3 = vadd.f32 %v366_v63, %v282_v54  ;;  %v280_v53 = vmul.f32 %v7768_v18, %v219_v51 }
  0xbd   : > { %v7750_v4 = vmul.f32 %v7645_v22, %v7746_v1  ;;  %v7754_v6 = vmul.f32 %v7648_v23, %v7746_v1 }
  0xbe   : > { %v214_v9 = vpop.permute.xlu1 %213  ;;  %v388_v5 = vadd.f32 %v364_v19, %v280_v53 }
  0xbf   : > { %v277_v11 = vmul.f32 %v7645_v22, %v214_v9  ;;  %v278_v12 = vmul.f32 %v7648_v23, %v214_v9  ;;  %v275_v38 = vmul.f32 %v7765_v17, %v214_v9  ;;  %v276_v39 = vmul.f32 %v7768_v18, %v214_v9 }
  0xc0   : > { %v419_v13 = vpop.permute.xlu0 %418 }
  0xc2   : > { %v429_v16 = vpop.permute.xlu1 %428 }
  0xc5   : > { %v309_v27 = vpop.permute.xlu0 %308 }
  0xc6   : > { %v367_v28 = vmul.f32 %v7771_v20, %v309_v27  ;;  %v368_v29 = vmul.f32 %v7774_v21, %v309_v27  ;;  %v369_v30 = vmul.f32 %v7651_v24, %v309_v27  ;;  %v370_v15 = vmul.f32 %v7654_v25, %v309_v27 }
  0xc7   : > { %v297_v33 = vpop.permute.xlu1 %296 }
  0xc8   : > { %v391_v34 = vadd.f32 %v367_v28, %v283_v14  ;;  %v392_v35 = vadd.f32 %v368_v29, %v284_v26  ;;  %v393_v36 = vadd.f32 %v369_v30, %v285_v55  ;;  %v394_v37 = vadd.f32 %v370_v15, %v286_v56 }
  0xc9   : > { %v357_v40 = vmul.f32 %v7651_v24, %v297_v33  ;;  %v358_v41 = vmul.f32 %v7654_v25, %v297_v33  ;;  %v301_v42 = vpop.permute.xlu0 %300  ;;  %v387_v55 = vadd.f32 %v363_v32, %v279_v31  ;;  %v355_v29 = vmul.f32 %v7771_v20, %v297_v33 }
  0xca   : > { %v451_v43 = vadd.f32 %v429_v16, %v391_v34  ;;  %v452_v44 = vadd.f32 %v429_v16, %v392_v35  ;;  %v7789_v45 = vadd.f32 %v429_v16, %v393_v36  ;;  %v7791_v47 = vadd.f32 %v429_v16, %v394_v37 }
  0xcb   : > { %v359_v48 = vmul.f32 %v7771_v20, %v301_v42  ;;  %v360_v49 = vmul.f32 %v7774_v21, %v301_v42  ;;  %v361_v50 = vmul.f32 %v7651_v24, %v301_v42  ;;  %v362_v52 = vmul.f32 %v7654_v25, %v301_v42 }
  0xcc   : > { %7188 = vtanh.f32 %v451_v43  ;;  %v424_v54 = vpop.permute.xlu1 %423  ;;  %v381_v56 = vadd.f32 %v357_v40, %v273_v59  ;;  %v267_v35 = vmul.f32 %v7765_v17, %v7746_v1 }
  0xcd   : > { %7190 = vtanh.f32 %v452_v44  ;;  %v383_v58 = vadd.f32 %v359_v48, %v275_v38  ;;  %v384_v61 = vadd.f32 %v360_v49, %v276_v39  ;;  %v385_v62 = vadd.f32 %v361_v50, %v277_v11  ;;  %v289_v14 = vpop.permute.xlu0 %288 }
  0xce   : > { %v386_v63 = vadd.f32 %v362_v52, %v278_v12  ;;  %v447_v0 = vadd.f32 %v424_v54, %v387_v55  ;;  %v7802_v16 = vadd.f32 %v424_v54, %v389_v2  ;;  %v7804_v51 = vadd.f32 %v424_v54, %v390_v3 }
  0xcf   : > { %v443_v7 = vadd.f32 %v419_v13, %v383_v58  ;;  %v444_v8 = vadd.f32 %v419_v13, %v384_v61  ;;  %v7798_v9 = vadd.f32 %v419_v13, %v385_v62  ;;  %v448_v59 = vadd.f32 %v424_v54, %v388_v5 }
  0xd0   : > { %v7800_v10 = vadd.f32 %v419_v13, %v386_v63  ;;  %7192 = vtanh.f32 %v447_v0  ;;  %v349_v26 = vmul.f32 %v7651_v24, %v289_v14  ;;  %v350_v12 = vmul.f32 %v7654_v25, %v289_v14 }
  0xd1   : > { %7194 = vtanh.f32 %v443_v7  ;;  %v293_v11 = vpop.permute.xlu1 %292  ;;  %v382_v13 = vadd.f32 %v358_v41, %v7740_v60  ;;  %v347_v30 = vmul.f32 %v7771_v20, %v289_v14  ;;  %v348_v31 = vmul.f32 %v7774_v21, %v289_v14 }
  0xd2   : > { %7196 = vtanh.f32 %v444_v8  ;;  %v353_v27 = vmul.f32 %v7651_v24, %v293_v11  ;;  %v354_v28 = vmul.f32 %v7654_v25, %v293_v11  ;;  %v271_v60 = vmul.f32 %v7765_v17, %v7734_v57  ;;  %v404_v40 = vpop.permute.xlu0 %403 }
  0xd3   : > { %7198 = vtanh.f32 %v448_v59  ;;  %v268_v54 = vmul.f32 %v7768_v18, %v7746_v1 }
  0xd4   : > { %v377_v2 = vadd.f32 %v353_v27, %v7750_v4  ;;  %v378_v3 = vadd.f32 %v354_v28, %v7754_v6  ;;  %v272_v4 = vmul.f32 %v7768_v18, %v7734_v57  ;;  %v356_v6 = vmul.f32 %v7774_v21, %v297_v33 }
  0xd5   : > { %v379_v43 = vadd.f32 %v355_v29, %v271_v60  ;;  %v352_v57 = vmul.f32 %v7774_v21, %v293_v11 }
  0xd6   : > { %v199_v15 = vpop.permute.xlu1 %198 }
  0xd7   : > { %v263_v32 = vmul.f32 %v7765_v17, %v199_v15  ;;  %v264_v24 = vmul.f32 %v7768_v18, %v199_v15  ;;  %v265_v25 = vmul.f32 %v7645_v22, %v199_v15  ;;  %v266_v19 = vmul.f32 %v7648_v23, %v199_v15 }
  0xd8   : > { %v351_v22 = vmul.f32 %v7771_v20, %v293_v11  ;;  %v380_v17 = vadd.f32 %v356_v6, %v272_v4  ;;  %v7084_v20 = vld [vmem:[%s10976_s0 + $0x30] sm:$0xff]  ;;  %v376_v8 = vadd.f32 %v352_v57, %v268_v54 }
  0xd9   : > { %v7189_v34 = vpop.eup %7188  ;;  %v371_v36 = vadd.f32 %v347_v30, %v263_v32  ;;  %v372_v37 = vadd.f32 %v348_v31, %v264_v24  ;;  %v373_v38 = vadd.f32 %v349_v26, %v265_v25  ;;  %v374_v41 = vadd.f32 %v350_v12, %v266_v19  ;;  %v7085_v24 = vld [vmem:[%s10976_s0 + $0x38] sm:$0xff] }
  0xda   : > { %v7191_v39 = vpop.eup %7190  ;;  %v414_v42 = vpop.permute.xlu1 %413  ;;  %v7828_v44 = vand.u32 4294901760, %v7189_v34  ;;  %v375_v63 = vadd.f32 %v351_v22, %v267_v35  ;;  %v525_v1 = vsel %vm523_vm0, %v7084_v20, 0 }
  0xdb   : > { %v431_v33 = vadd.f32 %v404_v40, %v371_v36  ;;  %v432_v23 = vadd.f32 %v404_v40, %v372_v37  ;;  %v7831_v48 = vadd.f32 %v404_v40, %v373_v38  ;;  %v7833_v49 = vadd.f32 %v404_v40, %v374_v41 }
  0xdc   : > { %v7835_v50 = vadd.f32 %v414_v42, %v381_v56  ;;  %v7837_v52 = vadd.f32 %v414_v42, %v382_v13  ;;  %v439_v21 = vadd.f32 %v414_v42, %v379_v43  ;;  %v7844_v55 = vand.u32 4294901760, %v7191_v39  ;;  %v7086_v43 = vld [vmem:[%s10976_s0 + $0x40] sm:$0xff] }
  0xdd   : > { %v7193_v53 = vpop.eup %7192  ;;  %v7847_v58 = vsub.f32 %v7189_v34, %v7828_v44  ;;  %7200 = vtanh.f32 %v431_v33  ;;  %v440_v56 = vadd.f32 %v414_v42, %v380_v17  ;;  %v7893_v4 = vand.u32 4294901760, %v525_v1 }
  0xde   : > { %v7195_v61 = vpop.eup %7194  ;;  %v409_v62 = vpop.permute.xlu1 %408  ;;  %v7849_v0 = vand.u32 4294901760, %v7193_v53  ;;  %7202 = vtanh.f32 %v432_v23  ;;  %563 = vmatprep.subr.mxu0 %v7844_v55  ;;  %v7863_v11 = vsub.f32 %v7191_v39, %v7844_v55  ;;  %v528_v38 = vsel %vm523_vm0, %v7085_v24, 0 }
  0xdf   : > { %v7197_v7 = vpop.eup %7196  ;;  %v7852_v5 = vadd.f32 %v409_v62, %v377_v2  ;;  %565 = vmatpush1.msra.mxu0 %v7828_v44  ;;  %v435_v18 = vadd.f32 %v409_v62, %v375_v63  ;;  %v7856_v14 = vadd.f32 %v409_v62, %v378_v3  ;;  %v7860_v26 = vand.u32 4294901760, %v7195_v61 }
  0xe0   : > { %v7858_v59 = vand.u32 4294901760, %v7197_v7  ;;  %7204 = vtanh.f32 %v439_v21  ;;  %v10988_v12 = vand.u32 4294901760, %v7847_v58  ;;  %v7867_v27 = vsub.f32 %v7193_v53, %v7849_v0  ;;  %v7199_v28 = vpop.eup %7198 }
  0xe1   : > { %7206 = vtanh.f32 %v440_v56  ;;  %v436_v13 = vadd.f32 %v409_v62, %v376_v8  ;;  %v7873_v3 = vsub.f32 %v7195_v61, %v7860_v26  ;;  %v7875_v29 = vand.u32 4294901760, %v7199_v28 }
  0xe2   : > { %v7870_v2 = vsub.f32 %v7197_v7, %v7858_v59  ;;  %v10990_v30 = vand.u32 4294901760, %v7863_v11  ;;  %v714_v15 = vsub.f32 %v7847_v58, %v10988_v12  ;;  %v10986_v31 = vand.u32 4294901760, %v7867_v27  ;;  %v7087_v7 = vld [vmem:[%s10976_s0 + $0x48] sm:$0xff] }
  0xe3   : > { %7208 = vtanh.f32 %v435_v18  ;;  %567 = vmatprep.subr.mxu0 %v7875_v29  ;;  %v7891_v60 = vsub.f32 %v7199_v28, %v7875_v29  ;;  %v10983_v34 = vand.u32 4294901760, %v7873_v3  ;;  %v7914_v41 = vsub.f32 %v525_v1, %v7893_v4 }
  0xe4   : > { %v10985_v32 = vand.u32 4294901760, %v7870_v2  ;;  %v708_v25 = vsub.f32 %v7863_v11, %v10990_v30  ;;  %7210 = vtanh.f32 %v436_v13  ;;  %569 = vmatpush1.msra.mxu0 %v7849_v0  ;;  %v715_v6 = vand.u32 4294901760, %v714_v15 }
  0xe5   : > { %v726_v19 = vsub.f32 %v7867_v27, %v10986_v31  ;;  %571 = vmatprep.subr.mxu0 %v7858_v59  ;;  %v10987_v36 = vand.u32 4294901760, %v7891_v60  ;;  %v738_v40 = vsub.f32 %v7873_v3, %v10983_v34  ;;  %v7916_v42 = vand.u32 4294901760, %v528_v38 }
  0xe6   : > { %v709_v35 = vand.u32 4294901760, %v708_v25  ;;  %v732_v37 = vsub.f32 %v7870_v2, %v10985_v32  ;;  %573 = vmatpush1.msra.mxu0 %v7860_v26  ;;  %v531_v20 = vsel %vm523_vm0, %v7086_v43, 0  ;;  %v7923_v21 = vand.u32 4294901760, %v7914_v41 }
  0xe7   : > { %v720_v39 = vsub.f32 %v7891_v60, %v10987_v36  ;;  %v727_v22 = vand.u32 4294901760, %v726_v19  ;;  %v739_v54 = vand.u32 4294901760, %v738_v40  ;;  %v7926_v61 = vsub.f32 %v528_v38, %v7916_v42 }
  0xe8   : > { %710 = vmatprep.subr.mxu1 %v709_v35  ;;  %v733_v23 = vand.u32 4294901760, %v732_v37  ;;  %v7939_v18 = vand.u32 4294901760, %v531_v20  ;;  %v622_v15 = vsub.f32 %v7914_v41, %v7923_v21  ;;  %7212 = vtanh.f32 %v7791_v47 }
  0xe9   : > { %716 = vmatpush1.msra.mxu1 %v715_v6  ;;  %v721_v33 = vand.u32 4294901760, %v720_v39  ;;  %v7951_v25 = vand.u32 4294901760, %v7926_v61  ;;  %v534_v6 = vsel %vm523_vm0, %v7087_v7, 0  ;;  %v11127_v47 = vand.u32 4294901760, %v7847_v58 }
  0xea   : > { %v7201_v57 = vpop.eup %7200  ;;  %v7968_v43 = vsub.f32 %v531_v20, %v7939_v18  ;;  %7214 = vtanh.f32 %v7789_v45  ;;  %v11131_v45 = vand.u32 4294901760, %v7873_v3 }
  0xeb   : > { %v7203_v17 = vpop.eup %7202  ;;  %722 = vmatprep.subr.mxu1 %v721_v33  ;;  %v7937_v1 = vand.u32 4294901760, %v7201_v57  ;;  %v7088_v33 = vld [vmem:[%s10976_s0 + $0x50] sm:$0xff]  ;;  %7216 = vtanh.f32 %v7804_v51 }
  0xec   : > { %728 = vmatpush1.msra.mxu1 %v727_v22  ;;  %v7930_v63 = vand.u32 4294901760, %v7203_v17  ;;  %v8000_v31 = vand.u32 4294901760, %v7968_v43  ;;  %7218 = vtanh.f32 %v7802_v16 }
  0xed   : > { %v7205_v53 = vpop.eup %7204  ;;  %734 = vmatprep.subr.mxu1 %v733_v23  ;;  %v7965_v40 = vsub.f32 %v7201_v57, %v7937_v1  ;;  %v7982_v57 = vand.u32 4294901760, %v622_v15  ;;  %v537_v15 = vsel %vm523_vm0, %v7088_v33, 0  ;;  %7220 = vtanh.f32 %v7800_v10 }
  0xee   : > { %v7207_v56 = vpop.eup %7206  ;;  %v7928_v62 = vand.u32 4294901760, %v7205_v53  ;;  %740 = vmatpush1.msra.mxu1 %v739_v54  ;;  %v7959_v38 = vsub.f32 %v7203_v17, %v7930_v63  ;;  %v633_v54 = vsub.f32 %v7926_v61, %v7951_v25  ;;  %v8016_v36 = vand.u32 4294901760, %v537_v15 }
  0xef   : > { %v7935_v8 = vand.u32 4294901760, %v7207_v56  ;;  %v10992_v32 = vand.u32 4294901760, %v7965_v40  ;;  %7222 = vtanh.f32 %v7798_v9 }
  0xf0   : > { %v7942_v28 = vsub.f32 %v7205_v53, %v7928_v62  ;;  %v7209_v13 = vpop.eup %7208  ;;  %v7979_v53 = vand.u32 4294901760, %v534_v6  ;;  %v8019_v12 = vand.u32 4294901760, %v633_v54  ;;  %v644_v54 = vsub.f32 %v7968_v43, %v8000_v31 }
  0xf1   : > { %575 = vmatprep.subr.mxu0 %v7935_v8  ;;  %v7948_v24 = vsub.f32 %v7207_v56, %v7935_v8  ;;  %v7211_v19 = vpop.eup %7210  ;;  %v7955_v35 = vand.u32 4294901760, %v7209_v13  ;;  %7224 = vtanh.f32 %v7837_v52  ;;  %v11136_v9 = vand.u32 4294901760, %v7959_v38 }
  0xf2   : > { %577 = vmatpush1.msra.mxu0 %v7928_v62  ;;  %v10982_v37 = vand.u32 4294901760, %v7942_v28  ;;  %v7961_v39 = vand.u32 4294901760, %v7211_v19  ;;  %v11133_v16 = vand.u32 4294901760, %v7942_v28  ;;  %7226 = vtanh.f32 %v7835_v50 }
  0xf3   : > { %v10984_v22 = vand.u32 4294901760, %v7948_v24  ;;  %v7977_v17 = vsub.f32 %v7209_v13, %v7955_v35  ;;  %7228 = vtanh.f32 %v7856_v14  ;;  %v11137_v52 = vand.u32 4294901760, %v7965_v40 }
  0xf4   : > { %v750_v23 = vsub.f32 %v7942_v28, %v10982_v37  ;;  %579 = vmatprep.subr.mxu0 %v7961_v39  ;;  %v7990_v56 = vsub.f32 %v7211_v19, %v7961_v39  ;;  %v10993_v37 = vand.u32 4294901760, %v7959_v38  ;;  %v7089_v19 = vld [vmem:[%s10976_s0 + $0x58] sm:$0xff]  ;;  %7230 = vtanh.f32 %v7852_v5 }
  0xf5   : > { %v744_v20 = vsub.f32 %v7948_v24, %v10984_v22  ;;  %581 = vmatpush1.msra.mxu0 %v7955_v35  ;;  %v10989_v13 = vand.u32 4294901760, %v7977_v17  ;;  %7232 = vtanh.f32 %v7833_v49 }
  0xf6   : > { %v751_v7 = vand.u32 4294901760, %v750_v23  ;;  %583 = vmatprep.subr.mxu0 %v7930_v63  ;;  %v10991_v22 = vand.u32 4294901760, %v7990_v56  ;;  %v8010_v23 = vsub.f32 %v534_v6, %v7979_v53  ;;  %v540_v6 = vsel %vm523_vm0, %v7089_v19, 0 }
  0xf7   : > { %v745_v34 = vand.u32 4294901760, %v744_v20  ;;  %585 = vmatpush1.msra.mxu0 %v7937_v1  ;;  %v762_v33 = vsub.f32 %v7977_v17, %v10989_v13  ;;  %v768_v13 = vsub.f32 %v7959_v38, %v10993_v37  ;;  %v8038_v19 = vsub.f32 %v537_v15, %v8016_v36 }
  0xf8   : > { %624 = vmatmul.mubr.f32.vlgmr.msra.gmra.mxu0 %v7982_v57  ;;  %v756_v20 = vsub.f32 %v7990_v56, %v10991_v22  ;;  %874 = vmatprep.subr.mxu0 %v7863_v11  ;;  %v774_v22 = vsub.f32 %v7965_v40, %v10992_v32  ;;  %v8045_v37 = vand.u32 4294901760, %v644_v54  ;;  %v11134_v10 = vand.u32 4294901760, %v7990_v56 }
  0xf9   : > { %746 = vmatprep.subr.mxu1 %v745_v34  ;;  %877 = vmatpush1.msra.mxu0 %v7847_v58  ;;  %v763_v30 = vand.u32 4294901760, %v762_v33  ;;  %v769_v33 = vand.u32 4294901760, %v768_v13  ;;  %v11130_v58 = vand.u32 4294901760, %v7870_v2  ;;  %7234 = vtanh.f32 %v7831_v48 }
  0xfa   : > { %752 = vmatpush1.msra.mxu1 %v751_v7  ;;  %629 = vmatprep.mubr.f32.mxu0 %v11003_v46  ;;  %v757_v34 = vand.u32 4294901760, %v756_v20  ;;  %v8034_v7 = vand.u32 4294901760, %v8010_v23  ;;  %v8040_v20 = vand.u32 4294901760, %v540_v6  ;;  %v775_v32 = vand.u32 4294901760, %v774_v22 }
  0xfb   : > { %880 = vmatprep.subr.mxu0 %v7891_v60 }
  0xfc   : > { %883 = vmatpush1.msra.mxu0 %v7867_v27  ;;  %758 = vmatprep.subr.mxu1 %v757_v34  ;;  %v655_v15 = vsub.f32 %v8010_v23, %v8034_v7  ;;  %v8052_v34 = vand.u32 4294901760, %v8038_v19  ;;  %v8055_v13 = vsub.f32 %v540_v6, %v8040_v20 }
  0xfd   : > { %635 = vmatmul.mubr.f32.gmra.mxu0 %v8019_v12  ;;  %886 = vmatprep.subr.mxu0 %v7870_v2  ;;  %v11135_v2 = vand.u32 4294901760, %v7977_v17 }
  0xfe   : > { %764 = vmatpush1.msra.mxu1 %v763_v30  ;;  %889 = vmatpush1.msra.mxu0 %v7873_v3  ;;  %v8063_v30 = vand.u32 4294901760, %v655_v15  ;;  %v8070_v22 = vand.u32 4294901760, %v8055_v13 }
  0xff   : > { %770 = vmatprep.subr.mxu1 %v769_v33  ;;  %892 = vmatprep.subr.mxu0 %v7948_v24  ;;  %v11126_v33 = vand.u32 4294901760, %v7863_v11  ;;  %v7213_v11 = vpop.eup %7212 }
 0x100   : > { %640 = vmatprep.mubr.f32.mxu0 %v11003_v46  ;;  %776 = vmatpush1.msra.mxu1 %v775_v32  ;;  %v666_v32 = vsub.f32 %v8038_v19, %v8052_v34  ;;  %v677_v54 = vsub.f32 %v8055_v13, %v8070_v22  ;;  %v8127_v51 = vand.u32 4294901760, %v7213_v11  ;;  %v7215_v50 = vpop.eup %7214 }
 0x101   : > { %895 = vmatpush1.msra.mxu0 %v7942_v28  ;;  %811 = vmatmul.mubr.f32.vlgmr.msra.gmra.mxu1 %v7893_v4  ;;  %v8174_v14 = vand.u32 4294901760, %v7215_v50 }
 0x102   : > { %646 = vmatmul.mubr.f32.gmra.mxu0 %v8045_v37  ;;  %898 = vmatprep.subr.mxu0 %v7990_v56  ;;  %v8080_v6 = vand.u32 4294901760, %v666_v32  ;;  %v8094_v15 = vand.u32 4294901760, %v677_v54  ;;  %v11128_v32 = vand.u32 4294901760, %v7891_v60  ;;  %v8144_v3 = vsub.f32 %v7213_v11, %v8127_v51 }
 0x103   : > { %1010 = vmatprep.subr.mxu1 %v7844_v55  ;;  %901 = vmatpush1.msra.mxu0 %v7977_v17  ;;  %v8191_v28 = vsub.f32 %v7215_v50, %v8174_v14 }
 0x104   : > { %1012 = vmatpush1.msra.mxu1 %v7828_v44  ;;  %904 = vmatprep.subr.mxu0 %v7959_v38 }
 0x105   : > { %1014 = vmatprep.subr.mxu1 %v7875_v29  ;;  %651 = vmatprep.mubr.f32.mxu0 %v11003_v46 }
 0x106   : > { %816 = vmatprep.mubr.f32.mxu1 %v11003_v46  ;;  %907 = vmatpush1.msra.mxu0 %v7965_v40 }
 0x107   : > { %1016 = vmatpush1.msra.mxu1 %v7849_v0  ;;  %657 = vmatmul.mubr.f32.gmra.mxu0 %v8063_v30 }
 0x108   : > { %818 = vmatmul.mubr.f32.gmra.mxu1 %v7916_v42  ;;  %1018 = vmatprep.subr.mxu1 %v7858_v59 }
 0x109   : > { %1143 = vmatprep.subr.mxu0 %v11126_v33  ;;  %1020 = vmatpush1.msra.mxu1 %v7860_v26  ;;  %v10997_v33 = vand.u32 4294901760, %v8191_v28 }
 0x10a   : > { %1022 = vmatprep.subr.mxu1 %v7935_v8  ;;  %662 = vmatprep.mubr.f32.mxu0 %v11003_v46 }
 0x10b   : > { %823 = vmatprep.mubr.f32.mxu1 %v11003_v46  ;;  %1024 = vmatpush1.msra.mxu1 %v7928_v62 }
 0x10c   : > { %668 = vmatmul.mubr.f32.gmra.mxu0 %v8080_v6  ;;  %825 = vmatmul.mubr.f32.gmra.mxu1 %v7939_v18 }
 0x10d   : > { %1026 = vmatprep.subr.mxu1 %v7961_v39  ;;  %673 = vmatprep.mubr.f32.mxu0 %v11003_v46 }
 0x10e   : > { %1028 = vmatpush1.msra.mxu1 %v7955_v35  ;;  %830 = vmatprep.mubr.f32.mxu1 %v11003_v46 }
 0x10f   : > { %1030 = vmatprep.subr.mxu1 %v7930_v63 }
 0x110   : > { %1032 = vmatpush1.msra.mxu1 %v7937_v1  ;;  %679 = vmatmul.mubr.f32.gmra.mxu0 %v8094_v15 }
 0x111   : > { %832 = vmatmul.mubr.f32.gmra.mxu1 %v7979_v53  ;;  %1284 = vmatprep.subr.mxu1 %v7844_v55  ;;  %v11129_v55 = vand.u32 4294901760, %v7867_v27  ;;  %v11132_v27 = vand.u32 4294901760, %v7948_v24 }
 0x112   : > { %837 = vmatprep.mubr.f32.mxu1 %v11003_v46  ;;  %940 = vmatprep.mubr.f32.mxu0 %v11003_v46 }
 0x114   : > { %943 = vmatmul.mubr.f32.vlgmr.msra.gmra.mxu0 %v7914_v41 }
 0x115   : > { %839 = vmatmul.mubr.f32.gmra.mxu1 %v8016_v36  ;;  %1147 = vmatpush1.msra.mxu0 %v11127_v47 }
 0x116   : > { %1151 = vmatprep.subr.mxu0 %v11128_v32  ;;  %844 = vmatprep.mubr.f32.mxu1 %v11003_v46 }
 0x117   : > { %1155 = vmatpush1.msra.mxu0 %v11129_v55  ;;  %948 = vmatprep.mubr.f32.mxu0 %v11003_v46 }
 0x118   : > { %1159 = vmatprep.subr.mxu0 %v11130_v58  ;;  %951 = vmatmul.mubr.f32.gmra.mxu0 %v7926_v61 }
 0x119   : > { %846 = vmatmul.mubr.f32.gmra.mxu1 %v8040_v20  ;;  %1163 = vmatpush1.msra.mxu0 %v11131_v45 }
 0x11a   : > { %1167 = vmatprep.subr.mxu0 %v11132_v27  ;;  %956 = vmatprep.mubr.f32.mxu0 %v11003_v46 }
 0x11b   : > { %1171 = vmatpush1.msra.mxu0 %v11133_v16  ;;  %1065 = vmatprep.mubr.f32.mxu1 %v11003_v46 }
 0x11c   : > { %1175 = vmatprep.subr.mxu0 %v11134_v10  ;;  %959 = vmatmul.mubr.f32.gmra.mxu0 %v7968_v43 }
 0x11d   : > { %1069 = vmatmul.mubr.f32.vlgmr.msra.gmra.mxu1 %v7923_v21  ;;  %1179 = vmatpush1.msra.mxu0 %v11135_v2  ;;  %v1554_v2 = vsub.f32 %v8191_v28, %v10997_v33 }
 0x11e   : > { %1286 = vmatpush1.msra.mxu1 %v7828_v44  ;;  %1183 = vmatprep.subr.mxu0 %v11136_v9  ;;  %v1547_v44 = vand.u32 4294901760, %v8144_v3 }
 0x11f   : > { %1288 = vmatprep.subr.mxu1 %v7875_v29  ;;  %1187 = vmatpush1.msra.mxu0 %v11137_v52 }
 0x120   : > { %1290 = vmatpush1.msra.mxu1 %v7849_v0  ;;  %964 = vmatprep.mubr.f32.mxu0 %v11003_v46  ;;  %v7217_v0 = vpop.eup %7216  ;;  %v1548_v48 = vsub.f32 %v8144_v3, %v1547_v44 }
 0x121   : > { %1074 = vmatprep.mubr.f32.mxu1 %v11003_v46  ;;  %1292 = vmatprep.subr.mxu1 %v7858_v59  ;;  %v7219_v49 = vpop.eup %7218  ;;  %v8178_v59 = vand.u32 4294901760, %v7217_v0 }
 0x122   : > { %1403 = vmatprep.subr.mxu0 %v8127_v51  ;;  %967 = vmatmul.mubr.f32.gmra.mxu0 %v8010_v23  ;;  %v7221_v5 = vpop.eup %7220  ;;  %v1549_v60 = vand.u32 4294901760, %v1548_v48 }
 0x123   : > { %1078 = vmatmul.mubr.f32.gmra.mxu1 %v7951_v25  ;;  %972 = vmatprep.mubr.f32.mxu0 %v11003_v46  ;;  %v7223_v29 = vpop.eup %7222 }
 0x124   : > { %1294 = vmatpush1.msra.mxu1 %v7860_v26  ;;  %1083 = vmatprep.mubr.f32.mxu1 %v11003_v46  ;;  %v8182_v26 = vand.u32 4294901760, %v7219_v49  ;;  %v8199_v38 = vand.u32 4294901760, %v7223_v29 }
 0x125   : > { %1296 = vmatprep.subr.mxu1 %v7935_v8  ;;  %v7225_v8 = vpop.eup %7224 }
 0x126   : > { %1298 = vmatpush1.msra.mxu1 %v7928_v62  ;;  %975 = vmatmul.mubr.f32.gmra.mxu0 %v8038_v19  ;;  %v8186_v62 = vand.u32 4294901760, %v7221_v5  ;;  %v7227_v24 = vpop.eup %7226  ;;  %v8204_v40 = vand.u32 4294901760, %v7225_v8  ;;  %v8224_v45 = vsub.f32 %v7223_v29, %v8199_v38 }
 0x127   : > { %1300 = vmatprep.subr.mxu1 %v7961_v39  ;;  %1087 = vmatmul.mubr.f32.gmra.mxu1 %v8000_v31  ;;  %v8210_v54 = vand.u32 4294901760, %v7227_v24 }
 0x128   : > { %1302 = vmatpush1.msra.mxu1 %v7955_v35  ;;  %980 = vmatprep.mubr.f32.mxu0 %v11003_v46  ;;  %v8195_v35 = vsub.f32 %v7217_v0, %v8178_v59  ;;  %v8207_v17 = vsub.f32 %v7221_v5, %v8186_v62  ;;  %v8232_v10 = vsub.f32 %v7225_v8, %v8204_v40  ;;  %v1577_v48 = vand.u32 4294901760, %v8224_v45 }
 0x129   : > { %1304 = vmatprep.subr.mxu1 %v7930_v63  ;;  %1092 = vmatprep.mubr.f32.mxu1 %v11003_v46  ;;  %v7229_v63 = vpop.eup %7228  ;;  %v8242_v52 = vsub.f32 %v7227_v24, %v8210_v54  ;;  %v1555_v24 = vand.u32 4294901760, %v1554_v2 }
 0x12a   : > { %1306 = vmatpush1.msra.mxu1 %v7937_v1  ;;  %983 = vmatmul.mubr.f32.gmra.mxu0 %v8055_v13  ;;  %v8202_v1 = vsub.f32 %v7219_v49, %v8182_v26  ;;  %v7231_v39 = vpop.eup %7230  ;;  %v8215_v11 = vand.u32 4294901760, %v7229_v63  ;;  %v10996_v32 = vand.u32 4294901760, %v8195_v35  ;;  %v10994_v16 = vand.u32 4294901760, %v8207_v17 }
 0x12b   : > { %1550 = vmatprep.subr.mxu1 %v1549_v60  ;;  %1096 = vmatmul.mubr.f32.gmra.mxu1 %v8034_v7  ;;  %v7233_v56 = vpop.eup %7232  ;;  %v8220_v55 = vand.u32 4294901760, %v7231_v39  ;;  %v11000_v60 = vand.u32 4294901760, %v8232_v10  ;;  %v1578_v2 = vsub.f32 %v8224_v45, %v1577_v48 }
 0x12c   : > { %1101 = vmatprep.mubr.f32.mxu1 %v11003_v46  ;;  %1220 = vmatprep.mubr.f32.mxu0 %v11003_v46  ;;  %v7235_v47 = vpop.eup %7234  ;;  %v10995_v58 = vand.u32 4294901760, %v8202_v1  ;;  %v8228_v27 = vand.u32 4294901760, %v7233_v56  ;;  %v1560_v50 = vsub.f32 %v8195_v35, %v10996_v32  ;;  %v8250_v0 = vsub.f32 %v7229_v63, %v8215_v11 }
 0x12d   : > { %v8239_v9 = vand.u32 4294901760, %v7235_v47  ;;  %v8259_v5 = vsub.f32 %v7231_v39, %v8220_v55  ;;  %v1572_v29 = vsub.f32 %v8207_v17, %v10994_v16  ;;  %v10998_v63 = vand.u32 4294901760, %v8242_v52 }
 0x12e   : > { %1222 = vmatmul.mubr.f32.vlgmr.msra.gmra.mxu0 %v7893_v4  ;;  %v1566_v49 = vsub.f32 %v8202_v1, %v10995_v58  ;;  %v8268_v8 = vsub.f32 %v7233_v56, %v8228_v27  ;;  %v1561_v16 = vand.u32 4294901760, %v1560_v50  ;;  %v10999_v58 = vand.u32 4294901760, %v8250_v0 }
 0x12f   : > { %1105 = vmatmul.mubr.f32.gmra.mxu1 %v8052_v34  ;;  %1405 = vmatpush1.msra.mxu0 %v8174_v14  ;;  %v8274_v39 = vsub.f32 %v7235_v47, %v8239_v9  ;;  %v11001_v32 = vand.u32 4294901760, %v8259_v5  ;;  %v1573_v47 = vand.u32 4294901760, %v1572_v29  ;;  %v1584_v50 = vsub.f32 %v8232_v10, %v11000_v60 }
 0x130   : > { %1407 = vmatprep.subr.mxu0 %v8178_v59  ;;  %1110 = vmatprep.mubr.f32.mxu1 %v11003_v46  ;;  %v1567_v56 = vand.u32 4294901760, %v1566_v49  ;;  %v11002_v33 = vand.u32 4294901760, %v8268_v8  ;;  %v1590_v49 = vsub.f32 %v8242_v52, %v10998_v63  ;;  %v1579_v29 = vand.u32 4294901760, %v1578_v2 }
 0x131   : > { %1409 = vmatpush1.msra.mxu0 %v8182_v26  ;;  %1227 = vmatprep.mubr.f32.mxu0 %v11003_v46  ;;  %v1585_v63 = vand.u32 4294901760, %v1584_v50 }
 0x132   : > { %1411 = vmatprep.subr.mxu0 %v8186_v62  ;;  %1229 = vmatmul.mubr.f32.gmra.mxu0 %v7916_v42 }
 0x133   : > { %1114 = vmatmul.mubr.f32.gmra.mxu1 %v8070_v22  ;;  %1413 = vmatpush1.msra.mxu0 %v8199_v38 }
 0x134   : > { %1415 = vmatprep.subr.mxu0 %v8204_v40  ;;  %1234 = vmatprep.mubr.f32.mxu0 %v11003_v46 }
 0x135   : > { %1417 = vmatpush1.msra.mxu0 %v8210_v54  ;;  %1339 = vmatprep.mubr.f32.mxu1 %v11003_v46 }
 0x136   : > { %1419 = vmatprep.subr.mxu0 %v8215_v11  ;;  %1236 = vmatmul.mubr.f32.gmra.mxu0 %v7939_v18 }
 0x137   : > { %1341 = vmatmul.mubr.f32.vlgmr.msra.gmra.mxu1 %v7893_v4  ;;  %1421 = vmatpush1.msra.mxu0 %v8220_v55 }
 0x138   : > { %1556 = vmatpush1.msra.mxu1 %v1555_v24  ;;  %1423 = vmatprep.subr.mxu0 %v8228_v27  ;;  %v1613_v24 = vand.u32 4294901760, %v8274_v39 }
 0x139   : > { %1562 = vmatprep.subr.mxu1 %v1561_v16  ;;  %1425 = vmatpush1.msra.mxu0 %v8239_v9  ;;  %v1596_v16 = vsub.f32 %v8250_v0, %v10999_v58  ;;  %v1591_v58 = vand.u32 4294901760, %v1590_v49 }
 0x13a   : > { %1568 = vmatpush1.msra.mxu1 %v1567_v56  ;;  %1241 = vmatprep.mubr.f32.mxu0 %v11003_v46  ;;  %v1602_v56 = vsub.f32 %v8259_v5, %v11001_v32  ;;  %v1614_v2 = vsub.f32 %v8274_v39, %v1613_v24 }
 0x13b   : > { %1346 = vmatprep.mubr.f32.mxu1 %v11003_v46  ;;  %1574 = vmatprep.subr.mxu1 %v1573_v47  ;;  %v1608_v47 = vsub.f32 %v8268_v8, %v11002_v33  ;;  %v1597_v60 = vand.u32 4294901760, %v1596_v16 }
 0x13c   : > { %1714 = vmatprep.subr.mxu0 %v8144_v3  ;;  %1243 = vmatmul.mubr.f32.gmra.mxu0 %v7979_v53  ;;  %v1603_v50 = vand.u32 4294901760, %v1602_v56  ;;  %v1615_v33 = vand.u32 4294901760, %v1614_v2 }
 0x13d   : > { %1348 = vmatmul.mubr.f32.gmra.mxu1 %v7916_v42  ;;  %1248 = vmatprep.mubr.f32.mxu0 %v11003_v46  ;;  %v1609_v32 = vand.u32 4294901760, %v1608_v47 }
 0x13e   : > { %1580 = vmatpush1.msra.mxu1 %v1579_v29  ;;  %1353 = vmatprep.mubr.f32.mxu1 %v11003_v46 }
 0x13f   : > { %1586 = vmatprep.subr.mxu1 %v1585_v63 }
 0x140   : > { %1592 = vmatpush1.msra.mxu1 %v1591_v58  ;;  %1250 = vmatmul.mubr.f32.gmra.mxu0 %v8016_v36 }
 0x141   : > { %1598 = vmatprep.subr.mxu1 %v1597_v60  ;;  %1355 = vmatmul.mubr.f32.gmra.mxu1 %v7939_v18 }
 0x142   : > { %1604 = vmatpush1.msra.mxu1 %v1603_v50  ;;  %1255 = vmatprep.mubr.f32.mxu0 %v11003_v46 }
 0x143   : > { %1610 = vmatprep.subr.mxu1 %v1609_v32  ;;  %1360 = vmatprep.mubr.f32.mxu1 %v11003_v46 }
 0x144   : > { %1616 = vmatpush1.msra.mxu1 %v1615_v33  ;;  %1257 = vmatmul.mubr.f32.gmra.mxu0 %v8040_v20 }
 0x145   : > { %1850 = vmatprep.subr.mxu1 %v8127_v51  ;;  %1362 = vmatmul.mubr.f32.gmra.mxu1 %v7979_v53 }
 0x146   : > { %1367 = vmatprep.mubr.f32.mxu1 %v11003_v46  ;;  %1458 = vmatprep.mubr.f32.mxu0 %v11003_v46 }
 0x148   : > { %1464 = vmatmul.mubr.f32.vlgmr.msra.gmra.mxu0 %v7982_v57  ;;  %v11140_v57 = vand.u32 4294901760, %v8202_v1 }
 0x149   : > { %1369 = vmatmul.mubr.f32.gmra.mxu1 %v8016_v36  ;;  %1717 = vmatpush1.msra.mxu0 %v8191_v28 }
 0x14a   : > { %1720 = vmatprep.subr.mxu0 %v8195_v35  ;;  %1374 = vmatprep.mubr.f32.mxu1 %v11003_v46 }
 0x14b   : > { %1723 = vmatpush1.msra.mxu0 %v8202_v1  ;;  %1469 = vmatprep.mubr.f32.mxu0 %v11003_v46 }
 0x14c   : > { %1726 = vmatprep.subr.mxu0 %v8207_v17  ;;  %1475 = vmatmul.mubr.f32.gmra.mxu0 %v8019_v12  ;;  %v11138_v12 = vand.u32 4294901760, %v8191_v28 }
 0x14d   : > { %1376 = vmatmul.mubr.f32.gmra.mxu1 %v8040_v20  ;;  %1729 = vmatpush1.msra.mxu0 %v8224_v45 }
 0x14e   : > { %1732 = vmatprep.subr.mxu0 %v8232_v10  ;;  %1480 = vmatprep.mubr.f32.mxu0 %v11003_v46 }
 0x14f   : > { %1735 = vmatpush1.msra.mxu0 %v8242_v52  ;;  %1649 = vmatprep.mubr.f32.mxu1 %v11003_v46 }
 0x150   : > { %1738 = vmatprep.subr.mxu0 %v8250_v0  ;;  %1486 = vmatmul.mubr.f32.gmra.mxu0 %v8045_v37  ;;  %v11139_v37 = vand.u32 4294901760, %v8195_v35 }
 0x151   : > { %1651 = vmatmul.mubr.f32.vlgmr.msra.gmra.mxu1 %v7893_v4  ;;  %1741 = vmatpush1.msra.mxu0 %v8259_v5 }
 0x152   : > { %1852 = vmatpush1.msra.mxu1 %v8174_v14  ;;  %1744 = vmatprep.subr.mxu0 %v8268_v8 }
 0x153   : > { %1854 = vmatprep.subr.mxu1 %v8178_v59  ;;  %1747 = vmatpush1.msra.mxu0 %v8274_v39 }
 0x154   : > { %1856 = vmatpush1.msra.mxu1 %v8182_v26  ;;  %1491 = vmatprep.mubr.f32.mxu0 %v11003_v46 }
 0x155   : > { %1656 = vmatprep.mubr.f32.mxu1 %v11003_v46  ;;  %1858 = vmatprep.subr.mxu1 %v8186_v62 }
 0x156   : > { %1983 = vmatprep.subr.mxu0 %v1547_v44  ;;  %1497 = vmatmul.mubr.f32.gmra.mxu0 %v8063_v30  ;;  %v11141_v30 = vand.u32 4294901760, %v8207_v17 }
 0x157   : > { %1658 = vmatmul.mubr.f32.gmra.mxu1 %v7916_v42  ;;  %1502 = vmatprep.mubr.f32.mxu0 %v11003_v46 }
 0x158   : > { %1860 = vmatpush1.msra.mxu1 %v8199_v38  ;;  %1663 = vmatprep.mubr.f32.mxu1 %v11003_v46 }
 0x159   : > { %1862 = vmatprep.subr.mxu1 %v8204_v40 }
 0x15a   : > { %1864 = vmatpush1.msra.mxu1 %v8210_v54  ;;  %1508 = vmatmul.mubr.f32.gmra.mxu0 %v8080_v6  ;;  %v11143_v6 = vand.u32 4294901760, %v8242_v52 }
 0x15b   : > { %1866 = vmatprep.subr.mxu1 %v8215_v11  ;;  %1665 = vmatmul.mubr.f32.gmra.mxu1 %v7939_v18 }
 0x15c   : > { %1868 = vmatpush1.msra.mxu1 %v8220_v55  ;;  %1513 = vmatprep.mubr.f32.mxu0 %v11003_v46 }
 0x15d   : > { %1870 = vmatprep.subr.mxu1 %v8228_v27  ;;  %1670 = vmatprep.mubr.f32.mxu1 %v11003_v46 }
 0x15e   : > { %1872 = vmatpush1.msra.mxu1 %v8239_v9  ;;  %1519 = vmatmul.mubr.f32.gmra.mxu0 %v8094_v15  ;;  %v11144_v15 = vand.u32 4294901760, %v8250_v0 }
 0x15f   : > { %2124 = vmatprep.subr.mxu1 %v8127_v51  ;;  %1672 = vmatmul.mubr.f32.gmra.mxu1 %v7979_v53  ;;  %v11146_v51 = vand.u32 4294901760, %v8268_v8 }
 0x160   : > { %1677 = vmatprep.mubr.f32.mxu1 %v11003_v46  ;;  %1780 = vmatprep.mubr.f32.mxu0 %v11003_v46 }
 0x162   : > { %1783 = vmatmul.mubr.f32.vlgmr.msra.gmra.mxu0 %v7914_v41  ;;  %v11142_v41 = vand.u32 4294901760, %v8232_v10 }
 0x163   : > { %1679 = vmatmul.mubr.f32.gmra.mxu1 %v8016_v36  ;;  %1987 = vmatpush1.msra.mxu0 %v11138_v12 }
 0x164   : > { %1991 = vmatprep.subr.mxu0 %v11139_v37  ;;  %1684 = vmatprep.mubr.f32.mxu1 %v11003_v46 }
 0x165   : > { %1995 = vmatpush1.msra.mxu0 %v11140_v57  ;;  %1788 = vmatprep.mubr.f32.mxu0 %v11003_v46 }
 0x166   : > { %1999 = vmatprep.subr.mxu0 %v11141_v30  ;;  %1791 = vmatmul.mubr.f32.gmra.mxu0 %v7926_v61  ;;  %v11145_v61 = vand.u32 4294901760, %v8259_v5 }
 0x167   : > { %1686 = vmatmul.mubr.f32.gmra.mxu1 %v8040_v20  ;;  %2003 = vmatpush1.msra.mxu0 %v1577_v48 }
 0x168   : > { %2007 = vmatprep.subr.mxu0 %v11142_v41  ;;  %1796 = vmatprep.mubr.f32.mxu0 %v11003_v46 }
 0x169   : > { %2011 = vmatpush1.msra.mxu0 %v11143_v6  ;;  %1905 = vmatprep.mubr.f32.mxu1 %v11003_v46 }
 0x16a   : > { %2015 = vmatprep.subr.mxu0 %v11144_v15  ;;  %1799 = vmatmul.mubr.f32.gmra.mxu0 %v7968_v43 }
 0x16b   : > { %1909 = vmatmul.mubr.f32.vlgmr.msra.gmra.mxu1 %v7923_v21  ;;  %2019 = vmatpush1.msra.mxu0 %v11145_v61 }
 0x16c   : > { %2126 = vmatpush1.msra.mxu1 %v8174_v14  ;;  %2023 = vmatprep.subr.mxu0 %v11146_v51 }
 0x16d   : > { %2128 = vmatprep.subr.mxu1 %v8178_v59  ;;  %2027 = vmatpush1.msra.mxu0 %v1613_v24 }
 0x16e   : > { %2130 = vmatpush1.msra.mxu1 %v8182_v26  ;;  %1804 = vmatprep.mubr.f32.mxu0 %v11003_v46 }
 0x16f   : > { %1914 = vmatprep.mubr.f32.mxu1 %v11003_v46  ;;  %2132 = vmatprep.subr.mxu1 %v8186_v62 }
 0x170   : > { %1807 = vmatmul.mubr.f32.gmra.mxu0 %v8010_v23  ;;  %1918 = vmatmul.mubr.f32.gmra.mxu1 %v7951_v25  ;;  %v8463_v23 = vpop.permute.xlu0 %510 }
 0x171   : > { %2134 = vmatpush1.msra.mxu1 %v8199_v38  ;;  %1812 = vmatprep.mubr.f32.mxu0 %v11003_v46 }
 0x172   : > { %2136 = vmatprep.subr.mxu1 %v8204_v40  ;;  %1923 = vmatprep.mubr.f32.mxu1 %v11003_v46 }
 0x173   : > { %2138 = vmatpush1.msra.mxu1 %v8210_v54 }
 0x174   : > { %2140 = vmatprep.subr.mxu1 %v8215_v11  ;;  %1815 = vmatmul.mubr.f32.gmra.mxu0 %v8038_v19 }
 0x175   : > { %1927 = vmatmul.mubr.f32.gmra.mxu1 %v8000_v31  ;;  %1820 = vmatprep.mubr.f32.mxu0 %v11003_v46  ;;  %v8455_v31 = vpop.permute.xlu1 %520 }
 0x176   : > { %2142 = vmatpush1.msra.mxu1 %v8220_v55  ;;  %1932 = vmatprep.mubr.f32.mxu1 %v11003_v46  ;;  %11147 = vst [vmem:[#allocation8_spill] sm:$0xff] %v8455_v31 }
 0x177   : > { %2144 = vmatprep.subr.mxu1 %v8228_v27 }
 0x178   : > { %2146 = vmatpush1.msra.mxu1 %v8239_v9  ;;  %1823 = vmatmul.mubr.f32.gmra.mxu0 %v8055_v13 }
 0x179   : > { %1936 = vmatmul.mubr.f32.gmra.mxu1 %v8034_v7  ;;  %2060 = vmatprep.mubr.f32.mxu0 %v11003_v46 }
 0x17a   : > { %1941 = vmatprep.mubr.f32.mxu1 %v11003_v46 }
 0x17c   : > { %2062 = vmatmul.mubr.f32.vlgmr.msra.gmra.mxu0 %v7893_v4 }
 0x17d   : > { %1945 = vmatmul.mubr.f32.gmra.mxu1 %v8052_v34  ;;  %2067 = vmatprep.mubr.f32.mxu0 %v11003_v46 }
 0x17e   : > { %1950 = vmatprep.mubr.f32.mxu1 %v11003_v46 }
 0x180   : > { %2069 = vmatmul.mubr.f32.gmra.mxu0 %v7916_v42 }
 0x181   : > { %1954 = vmatmul.mubr.f32.gmra.mxu1 %v8070_v22  ;;  %2074 = vmatprep.mubr.f32.mxu0 %v11003_v46  ;;  %v8468_v22 = vpop.permute.xlu0 %500 }
 0x182   : > { %2179 = vmatprep.mubr.f32.mxu1 %v11003_v46  ;;  %11149 = vst [vmem:[#allocation10_spill] sm:$0xff] %v8468_v22 }
 0x184   : > { %2076 = vmatmul.mubr.f32.gmra.mxu0 %v7939_v18 }
 0x185   : > { %2181 = vmatmul.mubr.f32.vlgmr.msra.gmra.mxu1 %v7893_v4  ;;  %2081 = vmatprep.mubr.f32.mxu0 %v11003_v46  ;;  %v8457_v4 = vpop.permute.xlu1 %515 }
 0x186   : > { %2186 = vmatprep.mubr.f32.mxu1 %v11003_v46 }
 0x188   : > { %2083 = vmatmul.mubr.f32.gmra.mxu0 %v7979_v53 }
 0x189   : > { %2188 = vmatmul.mubr.f32.gmra.mxu1 %v7916_v42  ;;  %2088 = vmatprep.mubr.f32.mxu0 %v11003_v46  ;;  %v8459_v21 = vpop.permute.xlu1 %505 }
 0x18a   : > { %2193 = vmatprep.mubr.f32.mxu1 %v11003_v46 }
 0x18c   : > { %2090 = vmatmul.mubr.f32.gmra.mxu0 %v8016_v36 }
 0x18d   : > { %2195 = vmatmul.mubr.f32.gmra.mxu1 %v7939_v18  ;;  %2095 = vmatprep.mubr.f32.mxu0 %v11003_v46  ;;  %v8461_v43 = vpop.permute.xlu1 %495 }
 0x18e   : > { %2200 = vmatprep.mubr.f32.mxu1 %v11003_v46  ;;  %11148 = vst [vmem:[#allocation9_spill] sm:$0xff] %v8461_v43 }
 0x190   : > { %2097 = vmatmul.mubr.f32.gmra.mxu0 %v8040_v20 }
 0x191   : > { %2202 = vmatmul.mubr.f32.gmra.mxu1 %v7979_v53  ;;  %2384 = vmatprep.mubr.f32.mxu0 %v11003_v46 }
 0x192   : > { %2207 = vmatprep.mubr.f32.mxu1 %v11003_v46 }
 0x195   : > { %2209 = vmatmul.mubr.f32.gmra.mxu1 %v8016_v36 }
 0x196   : > { %2214 = vmatprep.mubr.f32.mxu1 %v11003_v46 }
 0x199   : > { %2216 = vmatmul.mubr.f32.gmra.mxu1 %v8040_v20 }
 0x19a   : > { %2575 = vmatprep.mubr.f32.mxu1 %v11003_v46 }
 0x1b8   : > { %v625_v42 = vpop.f32.mrf.mxu0 }
 0x1b9   : > { %v626_v36 = vadd.f32 %v625_v42, %v8461_v43 }
 0x1ba   : > { %v627_v18 = vpop.f32.mrf.mxu0 }
 0x1bd   : > { %v636_v25 = vpop.f32.mrf.mxu0 }
 0x1be   : > { %v637_v3 = vadd.f32 %v636_v25, %v8468_v22 }
 0x1bf   : > { %v638_v53 = vpop.f32.mrf.mxu0 }
 0x1c0   : > { %v639_v46 = vadd.f32 %v638_v53, %v8468_v22 }
 0x1c1   : > { %v812_v7 = vpop.f32.mrf.mxu1 }
 0x1c2   : > { %v647_v19 = vpop.f32.mrf.mxu0  ;;  %v8466_v20 = vadd.f32 %v812_v7, %v626_v36  ;;  %v628_v7 = vadd.f32 %v627_v18, %v8461_v43 }
 0x1c3   : > { %v814_v13 = vpop.f32.mrf.mxu1 }
 0x1c4   : > { %v649_v34 = vpop.f32.mrf.mxu0 }
 0x1c7   : > { %v658_v44 = vpop.f32.mrf.mxu0 }
 0x1c8   : > { %v819_v14 = vpop.f32.mrf.mxu1 }
 0x1c9   : > { %v820_v59 = vadd.f32 %v819_v14, %v637_v3  ;;  %v660_v26 = vpop.f32.mrf.mxu0  ;;  %v650_v3 = vadd.f32 %v649_v34, %v8459_v21 }
 0x1ca   : > { %v821_v62 = vpop.f32.mrf.mxu1 }
 0x1cc   : > { %v669_v28 = vpop.f32.mrf.mxu0  ;;  %v826_v35 = vpop.f32.mrf.mxu1 }
 0x1ce   : > { %v671_v38 = vpop.f32.mrf.mxu0  ;;  %v828_v1 = vpop.f32.mrf.mxu1 }
 0x1cf   : > { %v672_v43 = vadd.f32 %v671_v38, %v8457_v4 }
 0x1d0   : > { %v680_v40 = vpop.f32.mrf.mxu0 }
 0x1d1   : > { %v833_v17 = vpop.f32.mrf.mxu1 }
 0x1d2   : > { %v682_v54 = vpop.f32.mrf.mxu0 }
 0x1d3   : > { %v835_v33 = vpop.f32.mrf.mxu1 }
 0x1d4   : > { %v944_v11 = vpop.f32.mrf.mxu0 }
 0x1d5   : > { %v840_v32 = vpop.f32.mrf.mxu1 }
 0x1d6   : > { %v8471_v55 = vpop.f32.mrf.mxu0 }
 0x1d7   : > { %v8473_v58 = vpop.f32.mrf.mxu1 }
 0x1d8   : > { %v952_v45 = vpop.f32.mrf.mxu0 }
 0x1d9   : > { %v8475_v27 = vpop.f32.mrf.mxu1 }
 0x1da   : > { %v8477_v10 = vpop.f32.mrf.mxu0 }
 0x1db   : > { %v8479_v9 = vpop.f32.mrf.mxu1 }
 0x1dc   : > { %v8481_v52 = vpop.f32.mrf.mxu0 }
 0x1dd   : > { %v8483_v0 = vpop.f32.mrf.mxu1 }
 0x1de   : > { %11150 = vst [vmem:[#allocation11_spill] sm:$0xff] %v8483_v0  ;;  %v962_v48 = vpop.f32.mrf.mxu0  ;;  %v815_v0 = vadd.f32 %v814_v13, %v628_v7 }
 0x1df   : > { %v8485_v5 = vpop.f32.mrf.mxu1 }
 0x1e0   : > { %11151 = vst [vmem:[#allocation12_spill] sm:$0xff] %v8485_v5  ;;  %v947_v38 = vadd.f32 %v8471_v55, %v815_v0 }
 0x1e2   : > { %v968_v60 = vpop.f32.mrf.mxu0 }
 0x1e3   : > { %v1079_v8 = vpop.f32.mrf.mxu1 }
 0x1e4   : > { %v970_v63 = vpop.f32.mrf.mxu0 }
 0x1e5   : > { %v8487_v39 = vpop.f32.mrf.mxu1 }
 0x1e6   : > { %v976_v49 = vpop.f32.mrf.mxu0 }
 0x1e7   : > { %v8489_v24 = vpop.f32.mrf.mxu1 }
 0x1e8   : > { %v8491_v16 = vpop.f32.mrf.mxu0 }
 0x1e9   : > { %v1090_v29 = vpop.f32.mrf.mxu1 }
 0x1ea   : > { %v8493_v56 = vpop.f32.mrf.mxu0 }
 0x1eb   : > { %v1097_v47 = vpop.f32.mrf.mxu1 }
 0x1ec   : > { %v8495_v2 = vpop.f32.mrf.mxu0 }
 0x1ed   : > { %11152 = vst [vmem:[#allocation13_spill] sm:$0xff] %v8495_v2  ;;  %v1099_v50 = vpop.f32.mrf.mxu1 }
 0x1ee   : > { %v8497_v12 = vpop.f32.mrf.mxu0 }
 0x1ef   : > { %11153 = vst [vmem:[#allocation14_spill] sm:$0xff] %v8497_v12  ;;  %v1106_v37 = vpop.f32.mrf.mxu1 }
 0x1f0   : > { %v8499_v57 = vpop.f32.mrf.mxu0 }
 0x1f1   : > { %11154 = vst [vmem:[#allocation15_spill] sm:$0xff] %v8499_v57  ;;  %v8501_v30 = vpop.f32.mrf.mxu1  ;;  %v648_v57 = vadd.f32 %v647_v19, %v8459_v21  ;;  %v681_v19 = vadd.f32 %v680_v40, %v8455_v31 }
 0x1f2   : > { %v1230_v41 = vpop.f32.mrf.mxu0 }
 0x1f3   : > { %v8503_v6 = vpop.f32.mrf.mxu1  ;;  %v827_v34 = vadd.f32 %v826_v35, %v648_v57  ;;  %v843_v35 = vadd.f32 %v8473_v58, %v672_v43  ;;  %v848_v40 = vadd.f32 %v8475_v27, %v681_v19 }
 0x1f4   : > { %11155 = vst [vmem:[#allocation16_spill] sm:$0xff] %v8503_v6  ;;  %v8505_v15 = vpop.f32.mrf.mxu0  ;;  %v822_v6 = vadd.f32 %v821_v62, %v639_v46  ;;  %v945_v46 = vadd.f32 %v944_v11, %v8466_v20 }
 0x1f5   : > { %11156 = vst [vmem:[#allocation17_spill] sm:$0xff] %v8505_v15  ;;  %v8507_v61 = vpop.f32.mrf.mxu1  ;;  %v829_v15 = vadd.f32 %v828_v1, %v650_v3  ;;  %v961_v20 = vadd.f32 %v8481_v52, %v827_v34  ;;  %v979_v43 = vadd.f32 %v8491_v16, %v843_v35  ;;  %v11161_v16 = vld [vmem:[#allocation13_spill] sm:$0xff] }
 0x1f6   : > { %11157 = vst [vmem:[#allocation18_spill] sm:$0xff] %v8507_v61  ;;  %v8509_v51 = vpop.f32.mrf.mxu0  ;;  %v661_v61 = vadd.f32 %v660_v26, %v8463_v23  ;;  %v683_v26 = vadd.f32 %v682_v54, %v8455_v31 }
 0x1f7   : > { %11158 = vst [vmem:[#allocation19_spill] sm:$0xff] %v8509_v51  ;;  %v8511_v42 = vpop.f32.mrf.mxu1  ;;  %v953_v51 = vadd.f32 %v952_v45, %v820_v59  ;;  %v963_v22 = vadd.f32 %v962_v48, %v829_v15  ;;  %v1109_v52 = vadd.f32 %v8501_v30, %v979_v43 }
 0x1f8   : > { %11159 = vst [vmem:[#allocation20_spill] sm:$0xff] %v8511_v42  ;;  %v1239_v25 = vpop.f32.mrf.mxu0  ;;  %v659_v42 = vadd.f32 %v658_v44, %v8463_v23  ;;  %v836_v53 = vadd.f32 %v835_v33, %v661_v61 }
 0x1f9   : > { %v8513_v36 = vpop.f32.mrf.mxu1  ;;  %v1080_v1 = vadd.f32 %v1079_v8, %v953_v51  ;;  %v1091_v59 = vadd.f32 %v1090_v29, %v963_v22  ;;  %v850_v29 = vadd.f32 %v8479_v9, %v683_v26 }
 0x1fa   : > { %11160 = vst [vmem:[#allocation21_spill] sm:$0xff] %v8513_v36  ;;  %v670_v36 = vadd.f32 %v669_v28, %v8457_v4  ;;  %v834_v13 = vadd.f32 %v833_v17, %v659_v42  ;;  %v971_v62 = vadd.f32 %v970_v63, %v836_v53 }
 0x1fb   : > { %v1231_v45 = vadd.f32 %v1230_v41, %v1080_v1  ;;  %v1240_v54 = vadd.f32 %v1239_v25, %v1091_v59  ;;  %v11163_v51 = vld [vmem:[#allocation16_spill] sm:$0xff]  ;;  %v11167_v1 = vld [vmem:[#allocation11_spill] sm:$0xff] }
 0x1fc   : > { %v1244_v14 = vpop.f32.mrf.mxu0  ;;  %v841_v44 = vadd.f32 %v840_v32, %v670_v36  ;;  %v969_v33 = vadd.f32 %v968_v60, %v834_v13  ;;  %v1100_v57 = vadd.f32 %v1099_v50, %v971_v62  ;;  %v955_v32 = vadd.f32 %v8477_v10, %v822_v6  ;;  %v11165_v30 = vld [vmem:[#allocation17_spill] sm:$0xff]  ;;  %v11168_v62 = vld [vmem:[#allocation15_spill] sm:$0xff] }
 0x1fd   : > { %v1349_v12 = vpop.f32.mrf.mxu1  ;;  %v985_v10 = vadd.f32 %v8493_v56, %v848_v40  ;;  %v11164_v56 = vld [vmem:[#allocation12_spill] sm:$0xff]  ;;  %v11166_v34 = vld [vmem:[#allocation18_spill] sm:$0xff] }
 0x1fe   : > { %v1246_v5 = vpop.f32.mrf.mxu0  ;;  %v977_v17 = vadd.f32 %v976_v49, %v841_v44  ;;  %v1098_v11 = vadd.f32 %v1097_v47, %v969_v33  ;;  %v1350_v22 = vadd.f32 %v1349_v12, %v1231_v45  ;;  %v1082_v27 = vadd.f32 %v8487_v39, %v955_v32 }
 0x1ff   : > { %v8522_v18 = vpop.f32.mrf.mxu1  ;;  %v1247_v55 = vadd.f32 %v1246_v5, %v1100_v57  ;;  %v1089_v49 = vadd.f32 %v8489_v24, %v961_v20  ;;  %v11162_v5 = vld [vmem:[#allocation19_spill] sm:$0xff]  ;;  %v1116_v39 = vadd.f32 %v11163_v51, %v985_v10  ;;  %v1073_v36 = vadd.f32 %v11164_v56, %v947_v38 }
 0x200   : > { %v1251_v2 = vpop.f32.mrf.mxu0  ;;  %v1107_v58 = vadd.f32 %v1106_v37, %v977_v17  ;;  %v1245_v50 = vadd.f32 %v1244_v14, %v1098_v11  ;;  %v987_v37 = vadd.f32 %v11161_v16, %v850_v29  ;;  %7236 = vtanh.f32 %v1350_v22  ;;  %v11172_v11 = vld [vmem:[#allocation20_spill] sm:$0xff]  ;;  %v11175_v29 = vld [vmem:[#allocation10_spill] sm:$0xff] }
 0x201   : > { %v1356_v7 = vpop.f32.mrf.mxu1  ;;  %v1238_v15 = vadd.f32 %v11162_v5, %v1089_v49  ;;  %v1071_v44 = vadd.f32 %v11167_v1, %v945_v46  ;;  %v1226_v59 = vadd.f32 %v11168_v62, %v1073_v36  ;;  %v11170_v17 = vld [vmem:[#allocation21_spill] sm:$0xff]  ;;  %v7098_v1 = vld [vmem:[%s10976_s0 + $0x70] sm:$0xff] }
 0x202   : > { %v1253_v28 = vpop.f32.mrf.mxu0  ;;  %v1252_v47 = vadd.f32 %v1251_v2, %v1107_v58  ;;  %v1233_v2 = vadd.f32 %v11165_v30, %v1082_v27  ;;  %v1118_v53 = vadd.f32 %v11166_v34, %v987_v37  ;;  %v7097_v37 = vld [vmem:[%s10976_s0 + $0x68] sm:$0xff] }
 0x203   : > { %v1358_v48 = vpop.f32.mrf.mxu1  ;;  %v1254_v42 = vadd.f32 %v1253_v28, %v1109_v52  ;;  %v1357_v3 = vadd.f32 %v1356_v7, %v1238_v15  ;;  %v7096_v7 = vld [vmem:[%s10976_s0 + $0x60] sm:$0xff]  ;;  %v1345_v57 = vadd.f32 %v11170_v17, %v1226_v59  ;;  %v2294_v30 = vsel %vm523_vm0, %v7097_v37, 0 }
 0x204   : > { %v1258_v8 = vpop.f32.mrf.mxu0  ;;  %v1359_v0 = vadd.f32 %v1358_v48, %v1240_v54  ;;  %v1352_v28 = vadd.f32 %v8522_v18, %v1233_v2  ;;  %v11169_v48 = vld [vmem:[#allocation14_spill] sm:$0xff]  ;;  %v11171_v54 = vld [vmem:[#allocation9_spill] sm:$0xff]  ;;  %v2291_v20 = vsel %vm523_vm0, %v7096_v7, 0 }
 0x205   : > { %v1363_v63 = vpop.f32.mrf.mxu1  ;;  %v1259_v19 = vadd.f32 %v1258_v8, %v1116_v39  ;;  %v1224_v40 = vadd.f32 %v11169_v48, %v1071_v44 }
 0x206   : > { %v1260_v60 = vpop.f32.mrf.mxu0  ;;  %v1364_v61 = vadd.f32 %v1363_v63, %v1245_v50  ;;  %7238 = vtanh.f32 %v1359_v0  ;;  %v8568_v0 = vand.u32 4294901760, %v2291_v20 }
 0x207   : > { %v1365_v41 = vpop.f32.mrf.mxu1  ;;  %v1261_v38 = vadd.f32 %v1260_v60, %v1118_v53  ;;  %v1343_v22 = vadd.f32 %v11172_v11, %v1224_v40 }
 0x208   : > { %v1366_v12 = vadd.f32 %v1365_v41, %v1247_v55  ;;  %v1465_v6 = vpop.f32.mrf.mxu0  ;;  %11174 = vst [vmem:[#allocation19_spill] sm:$0xff] %v8568_v0  ;;  %v8576_v10 = vsub.f32 %v2291_v20, %v8568_v0  ;;  %v2297_v20 = vsel %vm523_vm0, %v7098_v1, 0 }
 0x209   : > { %v1370_v9 = vpop.f32.mrf.mxu1  ;;  %v1466_v8 = vadd.f32 %v1465_v6, %v11171_v54 }
 0x20a   : > { %v1371_v24 = vadd.f32 %v1370_v9, %v1252_v47  ;;  %v8542_v25 = vpop.f32.mrf.mxu0  ;;  %7240 = vtanh.f32 %v1366_v12  ;;  %11176 = vst [vmem:[#allocation16_spill] sm:$0xff] %v8576_v10  ;;  %v8594_v39 = vand.u32 4294901760, %v8576_v10 }
 0x20b   : > { %v1372_v14 = vpop.f32.mrf.mxu1 }
 0x20c   : > { %7242 = vtanh.f32 %v1371_v24  ;;  %v1373_v13 = vadd.f32 %v1372_v14, %v1254_v42  ;;  %v1476_v26 = vpop.f32.mrf.mxu0  ;;  %11179 = vst [vmem:[#allocation18_spill] sm:$0xff] %v8594_v39 }
 0x20d   : > { %7244 = vtanh.f32 %v1364_v61  ;;  %v1377_v35 = vpop.f32.mrf.mxu1  ;;  %v8570_v60 = vpop.eup %7236  ;;  %v1477_v27 = vadd.f32 %v1476_v26, %v11175_v29 }
 0x20e   : > { %7246 = vtanh.f32 %v1373_v13  ;;  %v1378_v33 = vadd.f32 %v1377_v35, %v1259_v19  ;;  %v8553_v45 = vpop.f32.mrf.mxu0  ;;  %v8626_v35 = vand.u32 4294901760, %v2294_v30 }
 0x20f   : > { %7248 = vtanh.f32 %v1357_v3  ;;  %v1379_v46 = vpop.f32.mrf.mxu1 }
 0x210   : > { %7250 = vtanh.f32 %v1378_v33  ;;  %v1380_v18 = vadd.f32 %v1379_v46, %v1261_v38  ;;  %v8558_v32 = vpop.f32.mrf.mxu0  ;;  %11184 = vst [vmem:[#allocation9_spill] sm:$0xff] %v8626_v35 }
 0x211   : > { %7252 = vtanh.f32 %v1352_v28  ;;  %v1652_v63 = vpop.f32.mrf.mxu1  ;;  %v2388_v28 = vsub.f32 %v8576_v10, %v8594_v39 }
 0x212   : > { %7254 = vtanh.f32 %v1380_v18  ;;  %v8562_v43 = vadd.f32 %v1652_v63, %v1466_v8  ;;  %v8564_v58 = vpop.f32.mrf.mxu0  ;;  %v8645_v8 = vand.u32 4294901760, %v8570_v60 }
 0x213   : > { %7256 = vtanh.f32 %v1345_v57  ;;  %v8566_v55 = vpop.f32.mrf.mxu1  ;;  %v7239_v50 = vpop.eup %7238 }
 0x214   : > { %11173 = vst [vmem:[#allocation13_spill] sm:$0xff] %v8562_v43  ;;  %7258 = vtanh.f32 %v1343_v22  ;;  %v8611_v13 = vand.u32 4294901760, %v7239_v50  ;;  %11187 = vst [vmem:[#allocation22_spill] sm:$0xff] %v8645_v8 }
 0x216   : > { %v8573_v49 = vpop.f32.mrf.mxu0 }
 0x217   : > { %v1659_v41 = vpop.f32.mrf.mxu1  ;;  %v7241_v52 = vpop.eup %7240 }
 0x218   : > { %v8578_v47 = vadd.f32 %v1659_v41, %v1477_v27  ;;  %v8580_v12 = vpop.f32.mrf.mxu0  ;;  %v8600_v36 = vand.u32 4294901760, %v7241_v52  ;;  %v8681_v27 = vand.u32 4294901760, %v2297_v20 }
 0x219   : > { %v7243_v6 = vpop.eup %7242  ;;  %v8582_v16 = vpop.f32.mrf.mxu1 }
 0x21a   : > { %11177 = vst [vmem:[#allocation12_spill] sm:$0xff] %v8578_v47  ;;  %v7245_v5 = vpop.eup %7244  ;;  %v8587_v15 = vpop.f32.mrf.mxu0  ;;  %v8591_v51 = vand.u32 4294901760, %v7243_v6  ;;  %v8638_v17 = vsub.f32 %v7241_v52, %v8600_v36  ;;  %v8660_v52 = vsub.f32 %v7239_v50, %v8611_v13  ;;  %11194 = vst [vmem:[#allocation29_spill] sm:$0xff] %v8681_v27 }
 0x21b   : > { %v7247_v61 = vpop.eup %7246  ;;  %v8589_v9 = vpop.f32.mrf.mxu1  ;;  %v8605_v14 = vand.u32 4294901760, %v7245_v5 }
 0x21c   : > { %11178 = vst [vmem:[#allocation17_spill] sm:$0xff] %v8589_v9  ;;  %v7249_v42 = vpop.eup %7248  ;;  %v8596_v24 = vpop.f32.mrf.mxu0  ;;  %v8598_v56 = vand.u32 4294901760, %v7247_v61  ;;  %v8622_v59 = vsub.f32 %v7243_v6, %v8591_v51 }
 0x21d   : > { %11180 = vst [vmem:[#allocation11_spill] sm:$0xff] %v8596_v24  ;;  %v7251_v2 = vpop.eup %7250  ;;  %v8603_v3 = vpop.f32.mrf.mxu1  ;;  %v8632_v48 = vand.u32 4294901760, %v7249_v42  ;;  %v8648_v18 = vsub.f32 %v7245_v5, %v8605_v14 }
 0x21e   : > { %11181 = vst [vmem:[#allocation15_spill] sm:$0xff] %v8603_v3  ;;  %v7253_v34 = vpop.eup %7252  ;;  %v8607_v53 = vpop.f32.mrf.mxu0  ;;  %v8609_v19 = vand.u32 4294901760, %v7251_v2  ;;  %v8614_v26 = vsub.f32 %v7247_v61, %v8598_v56  ;;  %v8668_v61 = vand.u32 4294901760, %v2388_v28  ;;  %v7099_v28 = vld [vmem:[%s10976_s0 + $0x78] sm:$0xff] }
 0x21f   : > { %11182 = vst [vmem:[#allocation14_spill] sm:$0xff] %v8607_v53  ;;  %v7255_v44 = vpop.eup %7254  ;;  %v8619_v62 = vpop.f32.mrf.mxu1  ;;  %v8642_v46 = vand.u32 4294901760, %v7253_v34  ;;  %v8679_v41 = vsub.f32 %v7249_v42, %v8632_v48 }
 0x220   : > { %11183 = vst [vmem:[#allocation21_spill] sm:$0xff] %v8619_v62  ;;  %v7257_v7 = vpop.eup %7256  ;;  %v8628_v38 = vpop.f32.mrf.mxu0  ;;  %v8630_v33 = vand.u32 4294901760, %v7255_v44  ;;  %v8635_v40 = vsub.f32 %v7251_v2, %v8609_v19  ;;  %11191 = vst [vmem:[#allocation26_spill] sm:$0xff] %v8668_v61  ;;  %v8671_v2 = vsub.f32 %v2294_v30, %v8626_v35 }
 0x221   : > { %11185 = vst [vmem:[#allocation20_spill] sm:$0xff] %v8628_v38  ;;  %v8640_v57 = vpop.f32.mrf.mxu1  ;;  %v7259_v11 = vpop.eup %7258  ;;  %v8665_v37 = vand.u32 4294901760, %v7257_v7  ;;  %v8696_v42 = vsub.f32 %v7253_v34, %v8642_v46 }
 0x222   : > { %11186 = vst [vmem:[#allocation10_spill] sm:$0xff] %v8640_v57  ;;  %v8651_v22 = vpop.f32.mrf.mxu0  ;;  %2329 = vmatprep.subr.mxu0 %v8630_v33  ;;  %v8655_v63 = vsub.f32 %v7255_v44, %v8630_v33  ;;  %11192 = vst [vmem:[#allocation27_spill] sm:$0xff] %v8671_v2  ;;  %v11196_v30 = vand.u32 4294901760, %v8635_v40  ;;  %v8692_v50 = vand.u32 4294901760, %v7259_v11  ;;  %v8710_v44 = vsub.f32 %v8570_v60, %v8645_v8 }
 0x223   : > { %11188 = vst [vmem:[#allocation23_spill] sm:$0xff] %v8651_v22  ;;  %v8662_v6 = vpop.f32.mrf.mxu1  ;;  %2331 = vmatpush1.msra.mxu0 %v8609_v19  ;;  %11190 = vst [vmem:[#allocation25_spill] sm:$0xff] %v8665_v37  ;;  %v8722_v57 = vsub.f32 %v7257_v7, %v8665_v37  ;;  %v7100_v7 = vld [vmem:[%s10976_s0 + $0x80] sm:$0xff] }
 0x224   : > { %11189 = vst [vmem:[#allocation24_spill] sm:$0xff] %v8662_v6  ;;  %v8673_v1 = vpop.f32.mrf.mxu0  ;;  %2333 = vmatprep.subr.mxu0 %v8598_v56  ;;  %v2480_v39 = vsub.f32 %v8635_v40, %v11196_v30  ;;  %11197 = vst [vmem:[#allocation31_spill] sm:$0xff] %v8692_v50  ;;  %v11200_v6 = vand.u32 4294901760, %v8614_v26  ;;  %v8746_v62 = vsub.f32 %v7259_v11, %v8692_v50 }
 0x225   : > { %11193 = vst [vmem:[#allocation28_spill] sm:$0xff] %v8673_v1  ;;  %v8686_v5 = vpop.f32.mrf.mxu1  ;;  %2335 = vmatpush1.msra.mxu0 %v8591_v51  ;;  %v11199_v1 = vand.u32 4294901760, %v8655_v63 }
 0x226   : > { %11195 = vst [vmem:[#allocation30_spill] sm:$0xff] %v8686_v5  ;;  %v8698_v47 = vpop.f32.mrf.mxu0  ;;  %2337 = vmatprep.subr.mxu0 %v8600_v36  ;;  %v2486_v22 = vsub.f32 %v8614_v26, %v11200_v6  ;;  %v2300_v6 = vsel %vm523_vm0, %v7099_v28, 0  ;;  %v2481_v28 = vand.u32 4294901760, %v2480_v39  ;;  %v11213_v39 = vand.u32 4294901760, %v8679_v41 }
 0x227   : > { %11198 = vst [vmem:[#allocation32_spill] sm:$0xff] %v8698_v47  ;;  %v2474_v5 = vsub.f32 %v8655_v63, %v11199_v1  ;;  %v8712_v34 = vpop.f32.mrf.mxu1  ;;  %2339 = vmatpush1.msra.mxu0 %v8605_v14  ;;  %v11202_v47 = vand.u32 4294901760, %v8622_v59  ;;  %v8719_v1 = vand.u32 4294901760, %v8671_v2  ;;  %v8755_v24 = vand.u32 4294901760, %v2300_v6 }
 0x228   : > { %11201 = vst [vmem:[#allocation33_spill] sm:$0xff] %v8712_v34  ;;  %v8725_v30 = vpop.f32.mrf.mxu0  ;;  %2341 = vmatprep.subr.mxu0 %v8611_v13  ;;  %v11205_v34 = vand.u32 4294901760, %v8638_v17  ;;  %v2487_v31 = vand.u32 4294901760, %v2486_v22  ;;  %v2303_v22 = vsel %vm523_vm0, %v7100_v7, 0 }
 0x229   : > { %v2492_v43 = vsub.f32 %v8622_v59, %v11202_v47  ;;  %11203 = vst [vmem:[#allocation34_spill] sm:$0xff] %v8719_v1  ;;  %11204 = vst [vmem:[#allocation35_spill] sm:$0xff] %v8725_v30  ;;  %v2475_v60 = vand.u32 4294901760, %v2474_v5  ;;  %v8733_v47 = vsub.f32 %v2297_v20, %v8681_v27  ;;  %v8738_v53 = vpop.f32.mrf.mxu1  ;;  %2343 = vmatpush1.msra.mxu0 %v8632_v48  ;;  %v11207_v5 = vand.u32 4294901760, %v8648_v18 }
 0x22a   : > { %v2498_v38 = vsub.f32 %v8638_v17, %v11205_v34  ;;  %11206 = vst [vmem:[#allocation36_spill] sm:$0xff] %v8738_v53  ;;  %v8748_v20 = vpop.f32.mrf.mxu0  ;;  %2345 = vmatprep.subr.mxu0 %v8642_v46  ;;  %v11209_v53 = vand.u32 4294901760, %v8660_v52  ;;  %11210 = vst [vmem:[#allocation38_spill] sm:$0xff] %v8755_v24  ;;  %v2399_v34 = vsub.f32 %v8671_v2, %v8719_v1  ;;  %v8790_v9 = vand.u32 4294901760, %v2303_v22 }
 0x22b   : > { %v2504_v30 = vsub.f32 %v8648_v18, %v11207_v5  ;;  %11208 = vst [vmem:[#allocation37_spill] sm:$0xff] %v8748_v20  ;;  %2476 = vmatprep.subr.mxu1 %v2475_v60  ;;  %v8757_v5 = vpop.f32.mrf.mxu1  ;;  %2347 = vmatpush1.msra.mxu0 %v8645_v8  ;;  %v2493_v11 = vand.u32 4294901760, %v2492_v43  ;;  %v7101_v43 = vld [vmem:[%s10976_s0 + $0x88] sm:$0xff] }
 0x22c   : > { %v2510_v3 = vsub.f32 %v8660_v52, %v11209_v53  ;;  %11211 = vst [vmem:[#allocation39_spill] sm:$0xff] %v8757_v5  ;;  %2482 = vmatpush1.msra.mxu1 %v2481_v28  ;;  %v8764_v20 = vpop.f32.mrf.mxu0  ;;  %2349 = vmatprep.subr.mxu0 %v8665_v37  ;;  %v2499_v53 = vand.u32 4294901760, %v2498_v38  ;;  %v2516_v5 = vsub.f32 %v8679_v41, %v11213_v39  ;;  %v8771_v28 = vand.u32 4294901760, %v8733_v47 }
 0x22d   : > { %11212 = vst [vmem:[#allocation40_spill] sm:$0xff] %v8764_v20  ;;  %2488 = vmatprep.subr.mxu1 %v2487_v31  ;;  %v8776_v60 = vpop.f32.mrf.mxu1  ;;  %2351 = vmatpush1.msra.mxu0 %v8692_v50  ;;  %v2505_v7 = vand.u32 4294901760, %v2504_v30  ;;  %v11216_v31 = vand.u32 4294901760, %v8696_v42  ;;  %v11217_v20 = vand.u32 4294901760, %v8710_v44  ;;  %11219 = vst [vmem:[#allocation44_spill] sm:$0xff] %v8790_v9  ;;  %v8793_v30 = vand.u32 4294901760, %v2399_v34 }
 0x22e   : > { %11214 = vst [vmem:[#allocation41_spill] sm:$0xff] %v8771_v28  ;;  %11215 = vst [vmem:[#allocation42_spill] sm:$0xff] %v8776_v60  ;;  %2494 = vmatpush1.msra.mxu1 %v2493_v11  ;;  %2390 = vmatmul.mubr.f32.vlgmr.msra.gmra.mxu0 %v8668_v61  ;;  %v2511_v39 = vand.u32 4294901760, %v2510_v3  ;;  %v8788_v60 = vsub.f32 %v2300_v6, %v8755_v24  ;;  %v11221_v11 = vand.u32 4294901760, %v8722_v57  ;;  %v2306_v3 = vsel %vm523_vm0, %v7101_v43, 0 }
 0x22f   : > { %v2522_v38 = vsub.f32 %v8696_v42, %v11216_v31  ;;  %2500 = vmatprep.subr.mxu1 %v2499_v53  ;;  %v2528_v2 = vsub.f32 %v8710_v44, %v11217_v20  ;;  %2640 = vmatprep.subr.mxu0 %v8655_v63  ;;  %11220 = vst [vmem:[#allocation45_spill] sm:$0xff] %v8793_v30  ;;  %v2517_v6 = vand.u32 4294901760, %v2516_v5  ;;  %v11224_v34 = vmov 0.0  }
 0x230   : > { %11218 = vst [vmem:[#allocation43_spill] sm:$0xff] %v8788_v60  ;;  %2506 = vmatpush1.msra.mxu1 %v2505_v7  ;;  %v2534_v31 = vsub.f32 %v8722_v57, %v11221_v11  ;;  %v8799_v53 = vpop.f32.mrf.mxu0  ;;  %v8801_v1 = vpop.f32.mrf.mxu1  ;;  %2643 = vmatpush1.msra.mxu0 %v8635_v40  ;;  %v2410_v20 = vsub.f32 %v8733_v47, %v8771_v28  ;;  %v11225_v11 = vand.u32 4294901760, %v8746_v62 }
 0x231   : > { %11222 = vst [vmem:[#allocation46_spill] sm:$0xff] %v8799_v53  ;;  %11223 = vst [vmem:[#allocation47_spill] sm:$0xff] %v8801_v1  ;;  %2512 = vmatprep.subr.mxu1 %v2511_v39  ;;  %2646 = vmatprep.subr.mxu0 %v8614_v26  ;;  %v2523_v7 = vand.u32 4294901760, %v2522_v38  ;;  %v2529_v5 = vand.u32 4294901760, %v2528_v2  ;;  %v8817_v39 = vand.u32 4294901760, %v8788_v60  ;;  %v8820_v28 = vsub.f32 %v2303_v22, %v8790_v9 }
 0x232   : > { %2395 = vmatprep.mubr.f32.mxu0 %v11224_v34  ;;  %v2540_v43 = vsub.f32 %v8746_v62, %v11225_v11  ;;  %v8811_v61 = vpop.f32.mrf.mxu0  ;;  %v8813_v53 = vpop.f32.mrf.mxu1  ;;  %2518 = vmatpush1.msra.mxu1 %v2517_v6  ;;  %v8822_v1 = vand.u32 4294901760, %v2306_v3  ;;  %v2535_v38 = vand.u32 4294901760, %v2534_v31  ;;  %v8828_v6 = vand.u32 4294901760, %v2410_v20 }
 0x233   : > { %11226 = vst [vmem:[#allocation48_spill] sm:$0xff] %v8813_v53  ;;  %2649 = vmatpush1.msra.mxu0 %v8622_v59  ;;  %11227 = vst [vmem:[#allocation49_spill] sm:$0xff] %v8817_v39  ;;  %2524 = vmatprep.subr.mxu1 %v2523_v7  ;;  %v2421_v31 = vsub.f32 %v8788_v60, %v8817_v39  ;;  %v8840_v7 = vand.u32 4294901760, %v8820_v28 }
 0x234   : > { %11228 = vst [vmem:[#allocation50_spill] sm:$0xff] %v8820_v28  ;;  %2401 = vmatmul.mubr.f32.gmra.mxu0 %v8793_v30  ;;  %v8825_v11 = vpop.f32.mrf.mxu0  ;;  %2652 = vmatprep.subr.mxu0 %v8638_v17  ;;  %11229 = vst [vmem:[#allocation51_spill] sm:$0xff] %v8828_v6  ;;  %v2541_v22 = vand.u32 4294901760, %v2540_v43  ;;  %v8843_v20 = vsub.f32 %v2306_v3, %v8822_v1 }
 0x235   : > { %2530 = vmatpush1.msra.mxu1 %v2529_v5  ;;  %v8830_v2 = vpop.f32.mrf.mxu1  ;;  %2655 = vmatpush1.msra.mxu0 %v8648_v18  ;;  %11231 = vst [vmem:[#allocation53_spill] sm:$0xff] %v8840_v7  ;;  %v8860_v3 = vand.u32 4294901760, %v2421_v31 }
 0x236   : > { %11230 = vst [vmem:[#allocation52_spill] sm:$0xff] %v8830_v2  ;;  %2536 = vmatprep.subr.mxu1 %v2535_v38  ;;  %v8833_v53 = vpop.f32.mrf.mxu0  ;;  %2658 = vmatprep.subr.mxu0 %v8660_v52  ;;  %11232 = vst [vmem:[#allocation54_spill] sm:$0xff] %v8843_v20  ;;  %v11238_v2 = vand.u32 4294901760, %v8655_v63 }
 0x237   : > { %2406 = vmatprep.mubr.f32.mxu0 %v11224_v34  ;;  %v8845_v5 = vpop.f32.mrf.mxu1  ;;  %2542 = vmatpush1.msra.mxu1 %v2541_v22  ;;  %11234 = vst [vmem:[#allocation56_spill] sm:$0xff] %v8860_v3  ;;  %v2432_v22 = vsub.f32 %v8820_v28, %v8840_v7 }
 0x238   : > { %11233 = vst [vmem:[#allocation55_spill] sm:$0xff] %v8845_v5  ;;  %2661 = vmatpush1.msra.mxu0 %v8679_v41  ;;  %v8848_v43 = vpop.f32.mrf.mxu0  ;;  %2577 = vmatmul.mubr.f32.vlgmr.msra.gmra.mxu1 %v8568_v0 }
 0x239   : > { %2412 = vmatmul.mubr.f32.gmra.mxu0 %v8828_v6  ;;  %v8852_v38 = vpop.f32.mrf.mxu1  ;;  %2664 = vmatprep.subr.mxu0 %v8696_v42  ;;  %v8865_v6 = vand.u32 4294901760, %v8843_v20  ;;  %v8883_v28 = vand.u32 4294901760, %v2432_v22 }
 0x23a   : > { %2776 = vmatprep.subr.mxu1 %v8630_v33  ;;  %v8856_v30 = vpop.f32.mrf.mxu0  ;;  %2667 = vmatpush1.msra.mxu0 %v8710_v44 }
 0x23b   : > { %2778 = vmatpush1.msra.mxu1 %v8609_v19  ;;  %11235 = vst [vmem:[#allocation57_spill] sm:$0xff] %v8865_v6  ;;  %v8867_v0 = vpop.f32.mrf.mxu1  ;;  %2670 = vmatprep.subr.mxu0 %v8722_v57  ;;  %11237 = vst [vmem:[#allocation59_spill] sm:$0xff] %v8883_v28 }
 0x23c   : > { %2780 = vmatprep.subr.mxu1 %v8598_v56  ;;  %v8871_v39 = vpop.f32.mrf.mxu0  ;;  %2417 = vmatprep.mubr.f32.mxu0 %v11224_v34 }
 0x23d   : > { %11236 = vst [vmem:[#allocation58_spill] sm:$0xff] %v8871_v39  ;;  %2582 = vmatprep.mubr.f32.mxu1 %v11224_v34  ;;  %v8875_v31 = vpop.f32.mrf.mxu1  ;;  %2673 = vmatpush1.msra.mxu0 %v8746_v62  ;;  %v2443_v39 = vsub.f32 %v8843_v20, %v8865_v6 }
 0x23e   : > { %2782 = vmatpush1.msra.mxu1 %v8591_v51  ;;  %2423 = vmatmul.mubr.f32.gmra.mxu0 %v8860_v3  ;;  %v8881_v7 = vpop.f32.mrf.mxu0 }
 0x23f   : > { %2584 = vmatmul.mubr.f32.gmra.mxu1 %v8626_v35  ;;  %2784 = vmatprep.subr.mxu1 %v8600_v36  ;;  %v8890_v60 = vpop.f32.mrf.mxu1 }
 0x240   : > { %2909 = vmatprep.subr.mxu0 %v11238_v2  ;;  %2786 = vmatpush1.msra.mxu1 %v8605_v14  ;;  %v8893_v5 = vpop.f32.mrf.mxu0  ;;  %v8904_v2 = vand.u32 4294901760, %v2443_v39 }
 0x241   : > { %2428 = vmatprep.mubr.f32.mxu0 %v11224_v34  ;;  %2788 = vmatprep.subr.mxu1 %v8611_v13  ;;  %v8897_v22 = vpop.f32.mrf.mxu1 }
 0x242   : > { %2589 = vmatprep.mubr.f32.mxu1 %v11224_v34  ;;  %2790 = vmatpush1.msra.mxu1 %v8632_v48  ;;  %v8902_v63 = vpop.f32.mrf.mxu0  ;;  %11239 = vst [vmem:[#allocation60_spill] sm:$0xff] %v8904_v2 }
 0x243   : > { %2434 = vmatmul.mubr.f32.gmra.mxu0 %v8883_v28  ;;  %2591 = vmatmul.mubr.f32.gmra.mxu1 %v8681_v27  ;;  %v8908_v3 = vpop.f32.mrf.mxu1  ;;  %v1468_v27 = vadd.f32 %v8542_v25, %v11171_v54  ;;  %v1499_v54 = vadd.f32 %v8573_v49, %v8463_v23 }
 0x244   : > { %2792 = vmatprep.subr.mxu1 %v8642_v46  ;;  %v8911_v6 = vpop.f32.mrf.mxu0  ;;  %2439 = vmatprep.mubr.f32.mxu0 %v11224_v34 }
 0x245   : > { %2794 = vmatpush1.msra.mxu1 %v8645_v8  ;;  %v8915_v35 = vpop.f32.mrf.mxu1  ;;  %2596 = vmatprep.mubr.f32.mxu1 %v11224_v34  ;;  %v11261_v8 = vld [vmem:[#allocation46_spill] sm:$0xff] }
 0x246   : > { %2796 = vmatprep.subr.mxu1 %v8665_v37  ;;  %11240 = vst [vmem:[#allocation61_spill] sm:$0xff] %v8915_v35  ;;  %v8920_v39 = vpop.f32.mrf.mxu0  ;;  %v1479_v35 = vadd.f32 %v8553_v45, %v11175_v29  ;;  %v1501_v45 = vadd.f32 %v8580_v12, %v8463_v23  ;;  %v11248_v12 = vld [vmem:[#allocation15_spill] sm:$0xff] }
 0x247   : > { %2798 = vmatpush1.msra.mxu1 %v8692_v50  ;;  %2445 = vmatmul.mubr.f32.gmra.mxu0 %v8904_v2  ;;  %v8924_v28 = vpop.f32.mrf.mxu1  ;;  %v1655_v50 = vadd.f32 %v8566_v55, %v1468_v27  ;;  %v11245_v55 = vld [vmem:[#allocation17_spill] sm:$0xff] }
 0x248   : > { %2598 = vmatmul.mubr.f32.gmra.mxu1 %v8755_v24  ;;  %3050 = vmatprep.subr.mxu1 %v8630_v33  ;;  %11241 = vst [vmem:[#allocation62_spill] sm:$0xff] %v8924_v28  ;;  %v2084_v20 = vpop.f32.mrf.mxu0  ;;  %v1488_v24 = vadd.f32 %v8558_v32, %v8459_v21  ;;  %v1490_v33 = vadd.f32 %v8564_v58, %v8459_v21  ;;  %v11243_v32 = vand.u32 4294901760, %v8635_v40  ;;  %v11250_v40 = vld [vmem:[#allocation14_spill] sm:$0xff] }
 0x249   : > { %2603 = vmatprep.mubr.f32.mxu1 %v11224_v34  ;;  %2706 = vmatprep.mubr.f32.mxu0 %v11224_v34  ;;  %v8932_v2 = vpop.f32.mrf.mxu1  ;;  %v1662_v29 = vadd.f32 %v8582_v16, %v1479_v35  ;;  %v1510_v58 = vadd.f32 %v8587_v15, %v8457_v4  ;;  %v11249_v35 = vld [vmem:[#allocation8_spill] sm:$0xff]  ;;  %v11252_v15 = vand.u32 4294901760, %v8622_v59 }
 0x24a   : > { %11242 = vst [vmem:[#allocation63_spill] sm:$0xff] %v8932_v2  ;;  %v8940_v25 = vpop.f32.mrf.mxu0  ;;  %v1667_v27 = vadd.f32 %v11245_v55, %v1488_v24  ;;  %v11247_v2 = vand.u32 4294901760, %v8614_v26  ;;  %v1669_v16 = vadd.f32 %v11248_v12, %v1490_v33  ;;  %v11254_v26 = vld [vmem:[#allocation10_spill] sm:$0xff]  ;;  %v11255_v55 = vld [vmem:[#allocation13_spill] sm:$0xff]  ;;  %v11257_v12 = vand.u32 4294901760, %v8638_v17  ;;  %v11259_v59 = vld [vmem:[#allocation24_spill] sm:$0xff] }
 0x24b   : > { %2709 = vmatmul.mubr.f32.vlgmr.msra.gmra.mxu0 %v8576_v10  ;;  %v8950_v21 = vpop.f32.mrf.mxu1  ;;  %v11246_v10 = vld [vmem:[#allocation11_spill] sm:$0xff] }
 0x24c   : > { %2605 = vmatmul.mubr.f32.gmra.mxu1 %v8790_v9  ;;  %2913 = vmatpush1.msra.mxu0 %v11243_v32  ;;  %11244 = vst [vmem:[#allocation64_spill] sm:$0xff] %v8950_v21  ;;  %v1512_v49 = vadd.f32 %v11246_v10, %v8457_v4  ;;  %v2091_v23 = vpop.f32.mrf.mxu0  ;;  %v1521_v32 = vadd.f32 %v11250_v40, %v11249_v35  ;;  %v11251_v9 = vld [vmem:[#allocation21_spill] sm:$0xff]  ;;  %v11253_v4 = vld [vmem:[#allocation20_spill] sm:$0xff]  ;;  %v11256_v21 = vld [vmem:[#allocation23_spill] sm:$0xff] }
 0x24d   : > { %2917 = vmatprep.subr.mxu0 %v11247_v2  ;;  %2610 = vmatprep.mubr.f32.mxu1 %v11224_v34  ;;  %v1674_v37 = vadd.f32 %v11251_v9, %v1499_v54  ;;  %v8966_v24 = vpop.f32.mrf.mxu1  ;;  %v1523_v10 = vadd.f32 %v11253_v4, %v11249_v35  ;;  %v1676_v2 = vadd.f32 %v11254_v26, %v1501_v45  ;;  %v11258_v9 = vld [vmem:[#allocation27_spill] sm:$0xff]  ;;  %v11260_v40 = vld [vmem:[#allocation28_spill] sm:$0xff]  ;;  %v11262_v45 = vand.u32 4294901760, %v8648_v18  ;;  %v11263_v4 = vld [vmem:[#allocation30_spill] sm:$0xff] }
 0x24e   : > { %2921 = vmatpush1.msra.mxu0 %v11252_v15  ;;  %2714 = vmatprep.mubr.f32.mxu0 %v11224_v34  ;;  %v8974_v33 = vadd.f32 %v11256_v21, %v11255_v55  ;;  %v1681_v54 = vadd.f32 %v11259_v59, %v1510_v58  ;;  %v8981_v15 = vadd.f32 %v11260_v40, %v1655_v50  ;;  %v2093_v35 = vpop.f32.mrf.mxu0  ;;  %v11264_v26 = vld [vmem:[#allocation33_spill] sm:$0xff]  ;;  %v11267_v50 = vand.u32 4294901760, %v8660_v52 }
 0x24f   : > { %2925 = vmatprep.subr.mxu0 %v11257_v12  ;;  %2717 = vmatmul.mubr.f32.gmra.mxu0 %v11258_v9  ;;  %v1809_v28 = vadd.f32 %v11261_v8, %v1674_v37  ;;  %v8987_v21 = vpop.f32.mrf.mxu1  ;;  %v1683_v17 = vadd.f32 %v11263_v4, %v1512_v49  ;;  %v1688_v55 = vadd.f32 %v11264_v26, %v1521_v32  ;;  %v11265_v12 = vld [vmem:[#allocation12_spill] sm:$0xff]  ;;  %v11268_v8 = vld [vmem:[#allocation35_spill] sm:$0xff]  ;;  %v11269_v40 = vand.u32 4294901760, %v8679_v41 }
 0x250   : > { %2612 = vmatmul.mubr.f32.gmra.mxu1 %v8822_v1  ;;  %2929 = vmatpush1.msra.mxu0 %v11262_v45  ;;  %v11266_v9 = vld [vmem:[#allocation32_spill] sm:$0xff]  ;;  %v1795_v37 = vadd.f32 %v11268_v8, %v1662_v29  ;;  %v1817_v18 = vadd.f32 %v8825_v11, %v1681_v54  ;;  %v11271_v45 = vld [vmem:[#allocation37_spill] sm:$0xff]  ;;  %v11272_v26 = vand.u32 4294901760, %v8696_v42  ;;  %v1811_v11 = vadd.f32 %v8811_v61, %v1676_v2  ;;  %v11273_v29 = vld [vmem:[#allocation18_spill] sm:$0xff] }
 0x251   : > { %v8993_v58 = vadd.f32 %v11266_v9, %v11265_v12  ;;  %2933 = vmatprep.subr.mxu0 %v11267_v50  ;;  %2722 = vmatprep.mubr.f32.mxu0 %v11224_v34  ;;  %v1938_v59 = vadd.f32 %v8852_v38, %v1809_v28  ;;  %v2203_v49 = vpop.f32.mrf.mxu1  ;;  %v11270_v32 = vld [vmem:[#allocation36_spill] sm:$0xff]  ;;  %v1801_v4 = vadd.f32 %v11271_v45, %v1667_v27  ;;  %v2098_v38 = vpop.f32.mrf.mxu0  ;;  %v11274_v54 = vand.u32 4294901760, %v8710_v44 }
 0x252   : > { %2937 = vmatpush1.msra.mxu0 %v11269_v40  ;;  %2831 = vmatprep.mubr.f32.mxu1 %v11224_v34  ;;  %v1690_v9 = vadd.f32 %v11270_v32, %v1523_v10  ;;  %v1819_v52 = vadd.f32 %v8833_v53, %v1683_v17  ;;  %v1947_v28 = vadd.f32 %v8875_v31, %v1817_v18  ;;  %v11275_v27 = vld [vmem:[#allocation40_spill] sm:$0xff]  ;;  %v11276_v61 = vand.u32 4294901760, %v8722_v57 }
 0x253   : > { %2941 = vmatprep.subr.mxu0 %v11272_v26  ;;  %2725 = vmatmul.mubr.f32.gmra.mxu0 %v8733_v47  ;;  %v2085_v41 = vadd.f32 %v2084_v20, %v1938_v59  ;;  %v2205_v10 = vpop.f32.mrf.mxu1  ;;  %v1803_v12 = vadd.f32 %v11275_v27, %v1669_v16  ;;  %v1825_v53 = vadd.f32 %v8848_v43, %v1688_v55  ;;  %v11277_v44 = vand.u32 4294901760, %v8746_v62  ;;  %v11281_v50 = vld [vmem:[#allocation52_spill] sm:$0xff] }
 0x254   : > { %2835 = vmatmul.mubr.f32.vlgmr.msra.gmra.mxu1 %v11273_v29  ;;  %2945 = vmatpush1.msra.mxu0 %v11274_v54  ;;  %v1949_v42 = vadd.f32 %v8890_v60, %v1819_v52  ;;  %v1940_v20 = vadd.f32 %v8867_v0, %v1811_v11  ;;  %v2092_v31 = vadd.f32 %v2091_v23, %v1947_v28  ;;  %v2100_v23 = vpop.f32.mrf.mxu0  ;;  %v11283_v32 = vld [vmem:[#allocation48_spill] sm:$0xff]  ;;  %v11288_v11 = vld [vmem:[#allocation62_spill] sm:$0xff] }
 0x255   : > { %3052 = vmatpush1.msra.mxu1 %v8609_v19  ;;  %2949 = vmatprep.subr.mxu0 %v11276_v61  ;;  %v2204_v2 = vadd.f32 %v2203_v49, %v2085_v41  ;;  %v2210_v17 = vpop.f32.mrf.mxu1  ;;  %v1827_v16 = vadd.f32 %v8856_v30, %v1690_v9  ;;  %v1956_v43 = vadd.f32 %v8897_v22, %v1825_v53  ;;  %v11278_v19 = vld [vmem:[#allocation55_spill] sm:$0xff]  ;;  %v11297_v53 = vld [vmem:[#allocation61_spill] sm:$0xff] }
 0x256   : > { %3054 = vmatprep.subr.mxu1 %v8598_v56  ;;  %2953 = vmatpush1.msra.mxu0 %v11277_v44  ;;  %v2094_v60 = vadd.f32 %v2093_v35, %v1949_v42  ;;  %v1931_v57 = vadd.f32 %v11278_v19, %v1803_v12  ;;  %v2087_v0 = vadd.f32 %v8940_v25, %v1940_v20  ;;  %v11279_v22 = vld [vmem:[#allocation43_spill] sm:$0xff]  ;;  %v11280_v35 = vld [vmem:[#allocation34_spill] sm:$0xff]  ;;  %v11299_v20 = vld [vmem:[#allocation53_spill] sm:$0xff] }
 0x257   : > { %3056 = vmatpush1.msra.mxu1 %v8591_v51  ;;  %2730 = vmatprep.mubr.f32.mxu0 %v11224_v34  ;;  %v2211_v55 = vadd.f32 %v2210_v17, %v2092_v31  ;;  %v2212_v56 = vpop.f32.mrf.mxu1  ;;  %v1958_v62 = vadd.f32 %v8908_v3, %v1827_v16  ;;  %v2099_v30 = vadd.f32 %v2098_v38, %v1956_v43  ;;  %7260 = vtanh.f32 %v2204_v2  ;;  %v11292_v38 = vld [vmem:[#allocation58_spill] sm:$0xff]  ;;  %v11294_v12 = vld [vmem:[#allocation31_spill] sm:$0xff]  ;;  %v11300_v17 = vld [vmem:[#allocation9_spill] sm:$0xff] }
 0x258   : > { %2840 = vmatprep.mubr.f32.mxu1 %v11224_v34  ;;  %3058 = vmatprep.subr.mxu1 %v8600_v36  ;;  %v2213_v51 = vadd.f32 %v2212_v56, %v2094_v60  ;;  %v1929_v8 = vadd.f32 %v11281_v50, %v1801_v4  ;;  %v2080_v18 = vadd.f32 %v8920_v39, %v1931_v57  ;;  %v11282_v36 = vld [vmem:[#allocation42_spill] sm:$0xff]  ;;  %v11284_v4 = vld [vmem:[#allocation47_spill] sm:$0xff]  ;;  %v11301_v43 = vld [vmem:[#allocation57_spill] sm:$0xff] }
 0x259   : > { %2733 = vmatmul.mubr.f32.gmra.mxu0 %v11279_v22  ;;  %2844 = vmatmul.mubr.f32.gmra.mxu1 %v11280_v35  ;;  %v2206_v25 = vadd.f32 %v2205_v10, %v2087_v0  ;;  %v2217_v59 = vpop.f32.mrf.mxu1  ;;  %v1913_v3 = vadd.f32 %v11282_v36, %v8981_v15  ;;  %v2101_v40 = vadd.f32 %v2100_v23, %v1958_v62  ;;  %v11293_v10 = vld [vmem:[#allocation63_spill] sm:$0xff]  ;;  %v11302_v56 = vld [vmem:[#allocation29_spill] sm:$0xff] }
 0x25a   : > { %3060 = vmatpush1.msra.mxu1 %v8605_v14  ;;  %2738 = vmatprep.mubr.f32.mxu0 %v11224_v34  ;;  %7262 = vtanh.f32 %v2213_v51  ;;  %v2218_v49 = vadd.f32 %v2217_v59, %v2099_v30  ;;  %v1922_v9 = vadd.f32 %v11283_v32, %v1795_v37  ;;  %v2078_v39 = vadd.f32 %v8911_v6, %v1929_v8  ;;  %v11298_v61 = vld [vmem:[#allocation19_spill] sm:$0xff] }
 0x25b   : > { %3062 = vmatprep.subr.mxu1 %v8611_v13  ;;  %2849 = vmatprep.mubr.f32.mxu1 %v11224_v34  ;;  %v2199_v45 = vadd.f32 %v8987_v21, %v2080_v18  ;;  %7264 = vtanh.f32 %v2211_v55  ;;  %v2219_v14 = vpop.f32.mrf.mxu1  ;;  %v1920_v15 = vadd.f32 %v11284_v4, %v8993_v58  ;;  %v2066_v52 = vadd.f32 %v8881_v7, %v1913_v3  ;;  %v11285_v13 = vld [vmem:[#allocation50_spill] sm:$0xff]  ;;  %v11286_v21 = vld [vmem:[#allocation41_spill] sm:$0xff] }
 0x25c   : > { %3064 = vmatpush1.msra.mxu1 %v8632_v48  ;;  %7266 = vtanh.f32 %v2218_v49  ;;  %v2220_v26 = vadd.f32 %v2219_v14, %v2101_v40  ;;  %v2073_v37 = vadd.f32 %v8902_v63, %v1922_v9  ;;  %v2197_v6 = vadd.f32 %v8966_v24, %v2078_v39  ;;  %v11287_v48 = vld [vmem:[#allocation39_spill] sm:$0xff]  ;;  %v11290_v63 = vld [vmem:[#allocation64_spill] sm:$0xff]  ;;  %v11291_v24 = vld [vmem:[#allocation25_spill] sm:$0xff] }
 0x25d   : > { %3066 = vmatprep.subr.mxu1 %v8642_v46  ;;  %2741 = vmatmul.mubr.f32.gmra.mxu0 %v11285_v13  ;;  %7268 = vtanh.f32 %v2206_v25  ;;  %v1911_v58 = vadd.f32 %v11287_v48, %v8974_v33  ;;  %v2071_v7 = vadd.f32 %v8893_v5, %v1920_v15  ;;  %v2185_v28 = vadd.f32 %v11288_v11, %v2066_v52  ;;  %v11289_v46 = vld [vmem:[#allocation22_spill] sm:$0xff]  ;;  %v11296_v5 = vld [vmem:[#allocation49_spill] sm:$0xff] }
 0x25e   : > { %2853 = vmatmul.mubr.f32.gmra.mxu1 %v11286_v21  ;;  %2746 = vmatprep.mubr.f32.mxu0 %v11224_v34  ;;  %7270 = vtanh.f32 %v2220_v26  ;;  %v2192_v41 = vadd.f32 %v11290_v63, %v2073_v37  ;;  %v11295_v33 = vld [vmem:[#allocation54_spill] sm:$0xff] }
 0x25f   : > { %3068 = vmatpush1.msra.mxu1 %v11289_v46  ;;  %2858 = vmatprep.mubr.f32.mxu1 %v11224_v34  ;;  %7272 = vtanh.f32 %v2199_v45  ;;  %v2064_v54 = vadd.f32 %v11292_v38, %v1911_v58  ;;  %v2190_v27 = vadd.f32 %v11293_v10, %v2071_v7  ;;  %v11303_v49 = vld [vmem:[#allocation38_spill] sm:$0xff]  ;;  %v11304_v58 = vld [vmem:[#allocation44_spill] sm:$0xff] }
 0x260   : > { %3070 = vmatprep.subr.mxu1 %v11291_v24  ;;  %7274 = vtanh.f32 %v2197_v6 }
 0x261   : > { %3072 = vmatpush1.msra.mxu1 %v11294_v12  ;;  %2749 = vmatmul.mubr.f32.gmra.mxu0 %v11295_v33  ;;  %v2183_v42 = vadd.f32 %v11297_v53, %v2064_v54  ;;  %7276 = vtanh.f32 %v2185_v28 }
 0x262   : > { %2862 = vmatmul.mubr.f32.gmra.mxu1 %v11296_v5  ;;  %2986 = vmatprep.mubr.f32.mxu0 %v11224_v34  ;;  %7278 = vtanh.f32 %v2192_v41 }
 0x263   : > { %2867 = vmatprep.mubr.f32.mxu1 %v11224_v34  ;;  %7280 = vtanh.f32 %v2190_v27 }
 0x264   : > { %v7261_v31 = vpop.eup %7260  ;;  %7282 = vtanh.f32 %v2183_v42 }
 0x265   : > { %2988 = vmatmul.mubr.f32.vlgmr.msra.gmra.mxu0 %v11298_v61  ;;  %v9102_v18 = vand.u32 4294901760, %v7261_v31 }
 0x266   : > { %2871 = vmatmul.mubr.f32.gmra.mxu1 %v11299_v20  ;;  %2993 = vmatprep.mubr.f32.mxu0 %v11224_v34 }
 0x267   : > { %2876 = vmatprep.mubr.f32.mxu1 %v11224_v34  ;;  %v7263_v2 = vpop.eup %7262  ;;  %v9131_v52 = vsub.f32 %v7261_v31, %v9102_v18 }
 0x268   : > { %v7265_v44 = vpop.eup %7264  ;;  %v9080_v60 = vand.u32 4294901760, %v7263_v2 }
 0x269   : > { %2995 = vmatmul.mubr.f32.gmra.mxu0 %v11300_v17  ;;  %v7267_v16 = vpop.eup %7266  ;;  %v9085_v23 = vand.u32 4294901760, %v7265_v44  ;;  %v3343_v54 = vand.u32 4294901760, %v9131_v52 }
 0x26a   : > { %2880 = vmatmul.mubr.f32.gmra.mxu1 %v11301_v43  ;;  %3000 = vmatprep.mubr.f32.mxu0 %v11224_v34  ;;  %v7269_v19 = vpop.eup %7268  ;;  %v9083_v57 = vand.u32 4294901760, %v7267_v16  ;;  %v9098_v50 = vsub.f32 %v7263_v2, %v9080_v60 }
 0x26b   : > { %3105 = vmatprep.mubr.f32.mxu1 %v11224_v34  ;;  %v7271_v0 = vpop.eup %7270  ;;  %v9095_v51 = vand.u32 4294901760, %v7269_v19  ;;  %v9111_v3 = vsub.f32 %v7265_v44, %v9085_v23 }
 0x26c   : > { %v7273_v55 = vpop.eup %7272  ;;  %v9088_v62 = vand.u32 4294901760, %v7271_v0  ;;  %v9091_v30 = vsub.f32 %v7267_v16, %v9083_v57  ;;  %v3325_v14 = vand.u32 4294901760, %v9098_v50 }
 0x26d   : > { %3002 = vmatmul.mubr.f32.gmra.mxu0 %v11302_v56  ;;  %v7275_v8 = vpop.eup %7274  ;;  %v9108_v36 = vand.u32 4294901760, %v7273_v55  ;;  %v9123_v4 = vsub.f32 %v7269_v19, %v9095_v51  ;;  %v3331_v6 = vand.u32 4294901760, %v9111_v3  ;;  %v3344_v19 = vsub.f32 %v9131_v52, %v3343_v54 }
 0x26e   : > { %3107 = vmatmul.mubr.f32.vlgmr.msra.gmra.mxu1 %v11298_v61  ;;  %3007 = vmatprep.mubr.f32.mxu0 %v11224_v34  ;;  %v9105_v25 = vsub.f32 %v7271_v0, %v9088_v62  ;;  %v7277_v59 = vpop.eup %7276  ;;  %v3319_v9 = vand.u32 4294901760, %v9091_v30  ;;  %v9119_v45 = vand.u32 4294901760, %v7275_v8  ;;  %v3326_v63 = vsub.f32 %v9098_v50, %v3325_v14 }
 0x26f   : > { %3112 = vmatprep.mubr.f32.mxu1 %v11224_v34  ;;  %3169 = vmatprep.subr.mxu0 %v9088_v62  ;;  %v7279_v40 = vpop.eup %7278  ;;  %v9138_v48 = vsub.f32 %v7273_v55, %v9108_v36  ;;  %v9146_v28 = vand.u32 4294901760, %v7277_v59  ;;  %v3337_v41 = vand.u32 4294901760, %v9123_v4  ;;  %v3332_v10 = vsub.f32 %v9111_v3, %v3331_v6 }
 0x270   : > { %3171 = vmatpush1.msra.mxu0 %v9083_v57  ;;  %v3313_v32 = vand.u32 4294901760, %v9105_v25  ;;  %v7281_v39 = vpop.eup %7280  ;;  %v9134_v37 = vand.u32 4294901760, %v7279_v40  ;;  %v3320_v11 = vsub.f32 %v9091_v30, %v3319_v9  ;;  %v9155_v24 = vsub.f32 %v7275_v8, %v9119_v45 }
 0x271   : > { %3009 = vmatmul.mubr.f32.gmra.mxu0 %v11303_v49  ;;  %3173 = vmatprep.subr.mxu0 %v9080_v60  ;;  %v7283_v26 = vpop.eup %7282  ;;  %v9141_v7 = vand.u32 4294901760, %v7281_v39  ;;  %v3349_v27 = vand.u32 4294901760, %v9138_v48  ;;  %v3327_v31 = vand.u32 4294901760, %v3326_v63  ;;  %v3338_v2 = vsub.f32 %v9123_v4, %v3337_v41 }
 0x272   : > { %3114 = vmatmul.mubr.f32.gmra.mxu1 %v11300_v17  ;;  %3014 = vmatprep.mubr.f32.mxu0 %v11224_v34  ;;  %v3314_v15 = vsub.f32 %v9105_v25, %v3313_v32  ;;  %v9159_v38 = vand.u32 4294901760, %v7283_v26  ;;  %v9169_v12 = vsub.f32 %v7279_v40, %v9134_v37  ;;  %v3321_v53 = vand.u32 4294901760, %v3320_v11  ;;  %v11305_v11 = vld [vmem:[#allocation26_spill] sm:$0xff] }
 0x273   : > { %3119 = vmatprep.mubr.f32.mxu1 %v11224_v34  ;;  %3175 = vmatpush1.msra.mxu0 %v9085_v23  ;;  %v9174_v42 = vsub.f32 %v7281_v39, %v9141_v7  ;;  %v3355_v44 = vand.u32 4294901760, %v9155_v24  ;;  %v9182_v16 = vsub.f32 %v7277_v59, %v9146_v28  ;;  %v3333_v55 = vand.u32 4294901760, %v3332_v10 }
 0x274   : > { %3177 = vmatprep.subr.mxu0 %v9095_v51  ;;  %v3315_v46 = vand.u32 4294901760, %v3314_v15  ;;  %v9189_v0 = vsub.f32 %v7283_v26, %v9159_v38  ;;  %v3350_v8 = vsub.f32 %v9138_v48, %v3349_v27  ;;  %v3361_v59 = vand.u32 4294901760, %v9169_v12 }
 0x275   : > { %3016 = vmatmul.mubr.f32.gmra.mxu0 %v11304_v58  ;;  %v3367_v40 = vand.u32 4294901760, %v9174_v42  ;;  %v3339_v39 = vand.u32 4294901760, %v3338_v2  ;;  %v3356_v15 = vsub.f32 %v9155_v24, %v3355_v44  ;;  %v3373_v26 = vand.u32 4294901760, %v9182_v16 }
 0x276   : > { %3121 = vmatmul.mubr.f32.gmra.mxu1 %v11302_v56  ;;  %3179 = vmatpush1.msra.mxu0 %v9102_v18  ;;  %v3379_v63 = vand.u32 4294901760, %v9189_v0  ;;  %v3351_v10 = vand.u32 4294901760, %v3350_v8 }
 0x277   : > { %3181 = vmatprep.subr.mxu0 %v9108_v36  ;;  %3021 = vmatprep.mubr.f32.mxu0 %v11224_v34  ;;  %v3357_v2 = vand.u32 4294901760, %v3356_v15 }
 0x278   : > { %3126 = vmatprep.mubr.f32.mxu1 %v11224_v34  ;;  %3183 = vmatpush1.msra.mxu0 %v9119_v45 }
 0x279   : > { %3023 = vmatmul.mubr.f32.gmra.mxu0 %v8822_v1  ;;  %3185 = vmatprep.subr.mxu0 %v9134_v37 }
 0x27a   : > { %3128 = vmatmul.mubr.f32.gmra.mxu1 %v11303_v49  ;;  %3316 = vmatprep.subr.mxu1 %v3315_v46  ;;  %v3345_v46 = vand.u32 4294901760, %v3344_v19  ;;  %v3374_v19 = vsub.f32 %v9182_v16, %v3373_v26 }
 0x27b   : > { %3187 = vmatpush1.msra.mxu0 %v9141_v7  ;;  %3322 = vmatpush1.msra.mxu1 %v3321_v53  ;;  %v3362_v53 = vsub.f32 %v9169_v12, %v3361_v59 }
 0x27c   : > { %3189 = vmatprep.subr.mxu0 %v9146_v28  ;;  %3328 = vmatprep.subr.mxu1 %v3327_v31  ;;  %v3368_v31 = vsub.f32 %v9174_v42, %v3367_v40 }
 0x27d   : > { %3133 = vmatprep.mubr.f32.mxu1 %v11224_v34  ;;  %3191 = vmatpush1.msra.mxu0 %v9159_v38  ;;  %v3363_v8 = vand.u32 4294901760, %v3362_v53  ;;  %v11308_v53 = vld [vmem:[#allocation56_spill] sm:$0xff] }
 0x27e   : > { %3224 = vmatprep.mubr.f32.mxu0 %v11224_v34  ;;  %3334 = vmatpush1.msra.mxu1 %v3333_v55  ;;  %v3380_v55 = vsub.f32 %v9189_v0, %v3379_v63  ;;  %v3369_v15 = vand.u32 4294901760, %v3368_v31  ;;  %v11309_v31 = vld [vmem:[#allocation59_spill] sm:$0xff] }
 0x27f   : > { %3135 = vmatmul.mubr.f32.gmra.mxu1 %v11304_v58  ;;  %3230 = vmatmul.mubr.f32.vlgmr.msra.gmra.mxu0 %v11305_v11  ;;  %v3375_v11 = vand.u32 4294901760, %v3374_v19 }
 0x280   : > { %3340 = vmatprep.subr.mxu1 %v3339_v39  ;;  %3480 = vmatprep.subr.mxu0 %v9105_v25  ;;  %v11306_v39 = vld [vmem:[#allocation45_spill] sm:$0xff]  ;;  %v11310_v25 = vld [vmem:[#allocation60_spill] sm:$0xff] }
 0x281   : > { %3346 = vmatpush1.msra.mxu1 %v3345_v46  ;;  %3483 = vmatpush1.msra.mxu0 %v9091_v30  ;;  %v3381_v46 = vand.u32 4294901760, %v3380_v55 }
 0x282   : > { %3352 = vmatprep.subr.mxu1 %v3351_v10  ;;  %3486 = vmatprep.subr.mxu0 %v9098_v50  ;;  %v11307_v10 = vld [vmem:[#allocation51_spill] sm:$0xff] }
 0x283   : > { %3140 = vmatprep.mubr.f32.mxu1 %v11224_v34  ;;  %3235 = vmatprep.mubr.f32.mxu0 %v11224_v34 }
 0x284   : > { %3358 = vmatpush1.msra.mxu1 %v3357_v2  ;;  %3489 = vmatpush1.msra.mxu0 %v9111_v3 }
 0x285   : > { %3142 = vmatmul.mubr.f32.gmra.mxu1 %v8822_v1  ;;  %3241 = vmatmul.mubr.f32.gmra.mxu0 %v11306_v39 }
 0x286   : > { %3364 = vmatprep.subr.mxu1 %v3363_v8  ;;  %3492 = vmatprep.subr.mxu0 %v9123_v4 }
 0x287   : > { %3370 = vmatpush1.msra.mxu1 %v3369_v15  ;;  %3495 = vmatpush1.msra.mxu0 %v9131_v52 }
 0x288   : > { %3376 = vmatprep.subr.mxu1 %v3375_v11  ;;  %3498 = vmatprep.subr.mxu0 %v9138_v48 }
 0x289   : > { %3246 = vmatprep.mubr.f32.mxu0 %v11224_v34  ;;  %3382 = vmatpush1.msra.mxu1 %v3381_v46 }
 0x28a   : > { %3415 = vmatprep.mubr.f32.mxu1 %v11224_v34  ;;  %3501 = vmatpush1.msra.mxu0 %v9155_v24 }
 0x28b   : > { %3252 = vmatmul.mubr.f32.gmra.mxu0 %v11307_v10  ;;  %3417 = vmatmul.mubr.f32.vlgmr.msra.gmra.mxu1 %v11298_v61 }
 0x28c   : > { %3504 = vmatprep.subr.mxu0 %v9169_v12  ;;  %3616 = vmatprep.subr.mxu1 %v9088_v62 }
 0x28d   : > { %3507 = vmatpush1.msra.mxu0 %v9174_v42  ;;  %3618 = vmatpush1.msra.mxu1 %v9083_v57 }
 0x28e   : > { %3510 = vmatprep.subr.mxu0 %v9182_v16  ;;  %3620 = vmatprep.subr.mxu1 %v9080_v60 }
 0x28f   : > { %3257 = vmatprep.mubr.f32.mxu0 %v11224_v34  ;;  %3422 = vmatprep.mubr.f32.mxu1 %v11224_v34 }
 0x290   : > { %3513 = vmatpush1.msra.mxu0 %v9189_v0  ;;  %3622 = vmatpush1.msra.mxu1 %v9085_v23 }
 0x291   : > { %3263 = vmatmul.mubr.f32.gmra.mxu0 %v11308_v53  ;;  %3424 = vmatmul.mubr.f32.gmra.mxu1 %v11300_v17 }
 0x292   : > { %3624 = vmatprep.subr.mxu1 %v9095_v51  ;;  %3749 = vmatprep.subr.mxu0 %v3313_v32  ;;  %v11311_v32 = vld [vmem:[#allocation16_spill] sm:$0xff] }
 0x293   : > { %3626 = vmatpush1.msra.mxu1 %v9102_v18  ;;  %3268 = vmatprep.mubr.f32.mxu0 %v11224_v34 }
 0x294   : > { %3628 = vmatprep.subr.mxu1 %v9108_v36  ;;  %3429 = vmatprep.mubr.f32.mxu1 %v11224_v34 }
 0x295   : > { %3630 = vmatpush1.msra.mxu1 %v9119_v45  ;;  %3274 = vmatmul.mubr.f32.gmra.mxu0 %v11309_v31 }
 0x296   : > { %3431 = vmatmul.mubr.f32.gmra.mxu1 %v11302_v56  ;;  %3632 = vmatprep.subr.mxu1 %v9134_v37 }
 0x297   : > { %3634 = vmatpush1.msra.mxu1 %v9141_v7  ;;  %3279 = vmatprep.mubr.f32.mxu0 %v11224_v34 }
 0x298   : > { %3636 = vmatprep.subr.mxu1 %v9146_v28  ;;  %3436 = vmatprep.mubr.f32.mxu1 %v11224_v34 }
 0x299   : > { %3638 = vmatpush1.msra.mxu1 %v9159_v38  ;;  %3285 = vmatmul.mubr.f32.gmra.mxu0 %v11310_v25 }
 0x29a   : > { %3438 = vmatmul.mubr.f32.gmra.mxu1 %v11303_v49  ;;  %3890 = vmatprep.subr.mxu1 %v9088_v62  ;;  %v11312_v62 = vld [vmem:[#allocation27_spill] sm:$0xff] }
 0x29b   : > { %3443 = vmatprep.mubr.f32.mxu1 %v11224_v34  ;;  %3546 = vmatprep.mubr.f32.mxu0 %v11224_v34 }
 0x29d   : > { %3549 = vmatmul.mubr.f32.vlgmr.msra.gmra.mxu0 %v11311_v32 }
 0x29e   : > { %3445 = vmatmul.mubr.f32.gmra.mxu1 %v11304_v58  ;;  %3753 = vmatpush1.msra.mxu0 %v3319_v9 }
 0x29f   : > { %3757 = vmatprep.subr.mxu0 %v3325_v14  ;;  %3450 = vmatprep.mubr.f32.mxu1 %v11224_v34 }
 0x2a0   : > { %3761 = vmatpush1.msra.mxu0 %v3331_v6  ;;  %3554 = vmatprep.mubr.f32.mxu0 %v11224_v34 }
 0x2a1   : > { %3765 = vmatprep.subr.mxu0 %v3337_v41  ;;  %3557 = vmatmul.mubr.f32.gmra.mxu0 %v11312_v62 }
 0x2a2   : > { %3452 = vmatmul.mubr.f32.gmra.mxu1 %v8822_v1  ;;  %3769 = vmatpush1.msra.mxu0 %v3343_v54 }
 0x2a3   : > { %3773 = vmatprep.subr.mxu0 %v3349_v27  ;;  %3562 = vmatprep.mubr.f32.mxu0 %v11224_v34 }
 0x2a4   : > { %3777 = vmatpush1.msra.mxu0 %v3355_v44  ;;  %3671 = vmatprep.mubr.f32.mxu1 %v11224_v34 }
 0x2a5   : > { %3781 = vmatprep.subr.mxu0 %v3361_v59  ;;  %3565 = vmatmul.mubr.f32.gmra.mxu0 %v8733_v47  ;;  %v9353_v47 = vpop.permute.xlu1 %2282 }
 0x2a6   : > { %3675 = vmatmul.mubr.f32.vlgmr.msra.gmra.mxu1 %v11273_v29  ;;  %3785 = vmatpush1.msra.mxu0 %v3367_v40 }
 0x2a7   : > { %3892 = vmatpush1.msra.mxu1 %v9083_v57  ;;  %3789 = vmatprep.subr.mxu0 %v3373_v26 }
 0x2a8   : > { %3894 = vmatprep.subr.mxu1 %v9080_v60  ;;  %3793 = vmatpush1.msra.mxu0 %v3379_v63 }
 0x2a9   : > { %3896 = vmatpush1.msra.mxu1 %v9085_v23  ;;  %3570 = vmatprep.mubr.f32.mxu0 %v11224_v34 }
 0x2aa   : > { %3680 = vmatprep.mubr.f32.mxu1 %v11224_v34  ;;  %3898 = vmatprep.subr.mxu1 %v9095_v51 }
 0x2ab   : > { %3573 = vmatmul.mubr.f32.gmra.mxu0 %v11279_v22  ;;  %3684 = vmatmul.mubr.f32.gmra.mxu1 %v11280_v35  ;;  %v9355_v22 = vpop.permute.xlu0 %2287  ;;  %v9357_v35 = vpop.permute.xlu1 %2272 }
 0x2ac   : > { %3900 = vmatpush1.msra.mxu1 %v9102_v18  ;;  %3578 = vmatprep.mubr.f32.mxu0 %v11224_v34  ;;  %11313 = vst [vmem:[#allocation17_spill] sm:$0xff] %v9355_v22 }
 0x2ad   : > { %3902 = vmatprep.subr.mxu1 %v9108_v36  ;;  %3689 = vmatprep.mubr.f32.mxu1 %v11224_v34 }
 0x2ae   : > { %3904 = vmatpush1.msra.mxu1 %v9119_v45 }
 0x2af   : > { %3906 = vmatprep.subr.mxu1 %v9134_v37  ;;  %3581 = vmatmul.mubr.f32.gmra.mxu0 %v11285_v13 }
 0x2b0   : > { %3693 = vmatmul.mubr.f32.gmra.mxu1 %v11286_v21  ;;  %3586 = vmatprep.mubr.f32.mxu0 %v11224_v34 }
 0x2b1   : > { %3908 = vmatpush1.msra.mxu1 %v9141_v7  ;;  %3698 = vmatprep.mubr.f32.mxu1 %v11224_v34 }
 0x2b2   : > { %3910 = vmatprep.subr.mxu1 %v9146_v28 }
 0x2b3   : > { %3912 = vmatpush1.msra.mxu1 %v9159_v38  ;;  %3589 = vmatmul.mubr.f32.gmra.mxu0 %v11295_v33 }
 0x2b4   : > { %3702 = vmatmul.mubr.f32.gmra.mxu1 %v11296_v5  ;;  %3826 = vmatprep.mubr.f32.mxu0 %v11224_v34  ;;  %v9363_v5 = vpop.permute.xlu0 %2277 }
 0x2b5   : > { %3707 = vmatprep.mubr.f32.mxu1 %v11224_v34 }
 0x2b7   : > { %3828 = vmatmul.mubr.f32.vlgmr.msra.gmra.mxu0 %v11298_v61 }
 0x2b8   : > { %3711 = vmatmul.mubr.f32.gmra.mxu1 %v11299_v20  ;;  %3833 = vmatprep.mubr.f32.mxu0 %v11224_v34  ;;  %v9372_v23 = vpop.permute.xlu0 %2267 }
 0x2b9   : > { %3716 = vmatprep.mubr.f32.mxu1 %v11224_v34  ;;  %11315 = vst [vmem:[#allocation15_spill] sm:$0xff] %v9372_v23 }
 0x2bb   : > { %3835 = vmatmul.mubr.f32.gmra.mxu0 %v11300_v17 }
 0x2bc   : > { %3720 = vmatmul.mubr.f32.gmra.mxu1 %v11301_v43  ;;  %3840 = vmatprep.mubr.f32.mxu0 %v11224_v34 }
 0x2bd   : > { %3945 = vmatprep.mubr.f32.mxu1 %v11224_v34 }
 0x2bf   : > { %3842 = vmatmul.mubr.f32.gmra.mxu0 %v11302_v56 }
 0x2c0   : > { %3947 = vmatmul.mubr.f32.vlgmr.msra.gmra.mxu1 %v11298_v61  ;;  %3847 = vmatprep.mubr.f32.mxu0 %v11224_v34  ;;  %v9365_v61 = vpop.permute.xlu1 %2262 }
 0x2c1   : > { %3952 = vmatprep.mubr.f32.mxu1 %v11224_v34  ;;  %11314 = vst [vmem:[#allocation11_spill] sm:$0xff] %v9365_v61 }
 0x2c3   : > { %3849 = vmatmul.mubr.f32.gmra.mxu0 %v11303_v49 }
 0x2c4   : > { %3954 = vmatmul.mubr.f32.gmra.mxu1 %v11300_v17  ;;  %3854 = vmatprep.mubr.f32.mxu0 %v11224_v34 }
 0x2c5   : > { %3959 = vmatprep.mubr.f32.mxu1 %v11224_v34 }
 0x2c7   : > { %3856 = vmatmul.mubr.f32.gmra.mxu0 %v11304_v58 }
 0x2c8   : > { %3961 = vmatmul.mubr.f32.gmra.mxu1 %v11302_v56  ;;  %3861 = vmatprep.mubr.f32.mxu0 %v11224_v34 }
 0x2c9   : > { %3966 = vmatprep.mubr.f32.mxu1 %v11224_v34 }
 0x2cb   : > { %3863 = vmatmul.mubr.f32.gmra.mxu0 %v8822_v1 }
 0x2cc   : > { %3968 = vmatmul.mubr.f32.gmra.mxu1 %v11303_v49  ;;  %4150 = vmatprep.mubr.f32.mxu0 %v11224_v34 }
 0x2cd   : > { %3973 = vmatprep.mubr.f32.mxu1 %v11224_v34 }
 0x2d0   : > { %3975 = vmatmul.mubr.f32.gmra.mxu1 %v11304_v58 }
 0x2d1   : > { %3980 = vmatprep.mubr.f32.mxu1 %v11224_v34 }
 0x2d4   : > { %3982 = vmatmul.mubr.f32.gmra.mxu1 %v8822_v1 }
 0x2d5   : > { %4341 = vmatprep.mubr.f32.mxu1 %v11224_v34 }
 0x2ee   : > { %v2391_v29 = vpop.f32.mrf.mxu0 }
 0x2ef   : > { %v2392_v1 = vadd.f32 %v2391_v29, %v9365_v61 }
 0x2f0   : > { %v9359_v13 = vpop.f32.mrf.mxu0 }
 0x2f1   : > { %v2394_v34 = vadd.f32 %v9359_v13, %v9365_v61 }
 0x2f4   : > { %v2402_v21 = vpop.f32.mrf.mxu0 }
 0x2f5   : > { %v2403_v56 = vadd.f32 %v2402_v21, %v9372_v23 }
 0x2f6   : > { %v9361_v33 = vpop.f32.mrf.mxu0 }
 0x2f8   : > { %v2578_v17 = vpop.f32.mrf.mxu1 }
 0x2f9   : > { %v9368_v20 = vpop.f32.mrf.mxu0  ;;  %v9370_v43 = vadd.f32 %v2578_v17, %v2392_v1 }
 0x2fa   : > { %v2580_v57 = vpop.f32.mrf.mxu1 }
 0x2fb   : > { %v2415_v60 = vpop.f32.mrf.mxu0 }
 0x2fe   : > { %v9375_v30 = vpop.f32.mrf.mxu0 }
 0x2ff   : > { %v2585_v51 = vpop.f32.mrf.mxu1  ;;  %v2425_v13 = vadd.f32 %v9375_v30, %v9363_v5 }
 0x300   : > { %v9377_v50 = vadd.f32 %v2585_v51, %v2403_v56  ;;  %v2426_v18 = vpop.f32.mrf.mxu0 }
 0x301   : > { %v2587_v36 = vpop.f32.mrf.mxu1 }
 0x303   : > { %v2435_v3 = vpop.f32.mrf.mxu0  ;;  %v2592_v49 = vpop.f32.mrf.mxu1 }
 0x305   : > { %v2437_v9 = vpop.f32.mrf.mxu0  ;;  %v2594_v45 = vpop.f32.mrf.mxu1 }
 0x307   : > { %v9379_v14 = vpop.f32.mrf.mxu0 }
 0x308   : > { %v9381_v4 = vpop.f32.mrf.mxu1 }
 0x309   : > { %v9383_v52 = vpop.f32.mrf.mxu0 }
 0x30a   : > { %v2601_v37 = vpop.f32.mrf.mxu1 }
 0x30b   : > { %v9385_v6 = vpop.f32.mrf.mxu0 }
 0x30c   : > { %v2606_v48 = vpop.f32.mrf.mxu1 }
 0x30d   : > { %v9387_v58 = vpop.f32.mrf.mxu0 }
 0x30e   : > { %v9389_v7 = vpop.f32.mrf.mxu1 }
 0x30f   : > { %v2718_v28 = vpop.f32.mrf.mxu0 }
 0x310   : > { %v9391_v41 = vpop.f32.mrf.mxu1 }
 0x311   : > { %v9393_v24 = vpop.f32.mrf.mxu0 }
 0x312   : > { %v9395_v38 = vpop.f32.mrf.mxu1 }
 0x313   : > { %v9397_v54 = vpop.f32.mrf.mxu0 }
 0x314   : > { %v9399_v27 = vpop.f32.mrf.mxu1 }
 0x315   : > { %11316 = vst [vmem:[#allocation8_spill] sm:$0xff] %v9399_v27  ;;  %v9401_v12 = vpop.f32.mrf.mxu0  ;;  %v2405_v27 = vadd.f32 %v9361_v33, %v9372_v23  ;;  %v2438_v33 = vadd.f32 %v2437_v9, %v9353_v47 }
 0x316   : > { %v9403_v42 = vpop.f32.mrf.mxu1 }
 0x317   : > { %11317 = vst [vmem:[#allocation14_spill] sm:$0xff] %v9403_v42  ;;  %v2436_v42 = vadd.f32 %v2435_v3, %v9353_v47  ;;  %v2609_v3 = vadd.f32 %v9389_v7, %v2438_v33 }
 0x319   : > { %v2734_v44 = vpop.f32.mrf.mxu0  ;;  %v2845_v16 = vpop.f32.mrf.mxu1 }
 0x31b   : > { %v2736_v0 = vpop.f32.mrf.mxu0  ;;  %v9405_v59 = vpop.f32.mrf.mxu1 }
 0x31d   : > { %v2742_v40 = vpop.f32.mrf.mxu0 }
 0x31e   : > { %v9407_v26 = vpop.f32.mrf.mxu1 }
 0x31f   : > { %11318 = vst [vmem:[#allocation21_spill] sm:$0xff] %v9407_v26  ;;  %v2744_v63 = vpop.f32.mrf.mxu0 }
 0x320   : > { %v9409_v2 = vpop.f32.mrf.mxu1 }
 0x321   : > { %v9411_v19 = vpop.f32.mrf.mxu0 }
 0x322   : > { %11319 = vst [vmem:[#allocation20_spill] sm:$0xff] %v9411_v19  ;;  %v2863_v55 = vpop.f32.mrf.mxu1 }
 0x323   : > { %v9413_v8 = vpop.f32.mrf.mxu0 }
 0x324   : > { %11320 = vst [vmem:[#allocation10_spill] sm:$0xff] %v9413_v8  ;;  %v2865_v39 = vpop.f32.mrf.mxu1 }
 0x325   : > { %v9415_v15 = vpop.f32.mrf.mxu0 }
 0x326   : > { %11321 = vst [vmem:[#allocation13_spill] sm:$0xff] %v9415_v15  ;;  %v2872_v11 = vpop.f32.mrf.mxu1  ;;  %v2427_v15 = vadd.f32 %v2426_v18, %v9363_v5  ;;  %v2588_v18 = vadd.f32 %v2587_v36, %v2405_v27 }
 0x327   : > { %v9417_v46 = vpop.f32.mrf.mxu0 }
 0x328   : > { %11322 = vst [vmem:[#allocation23_spill] sm:$0xff] %v9417_v46  ;;  %v2874_v10 = vpop.f32.mrf.mxu1 }
 0x329   : > { %v2996_v53 = vpop.f32.mrf.mxu0 }
 0x32a   : > { %v9419_v31 = vpop.f32.mrf.mxu1 }
 0x32b   : > { %11323 = vst [vmem:[#allocation24_spill] sm:$0xff] %v9419_v31  ;;  %v9421_v25 = vpop.f32.mrf.mxu0  ;;  %v2602_v31 = vadd.f32 %v2601_v37, %v2427_v15 }
 0x32c   : > { %11324 = vst [vmem:[#allocation28_spill] sm:$0xff] %v9421_v25  ;;  %v9423_v32 = vpop.f32.mrf.mxu1  ;;  %v2416_v25 = vadd.f32 %v2415_v60, %v9357_v35  ;;  %v2600_v60 = vadd.f32 %v9381_v4, %v2425_v13 }
 0x32d   : > { %11325 = vst [vmem:[#allocation46_spill] sm:$0xff] %v9423_v32  ;;  %v9425_v62 = vpop.f32.mrf.mxu0  ;;  %v2414_v32 = vadd.f32 %v9368_v20, %v9357_v35  ;;  %v2607_v20 = vadd.f32 %v2606_v48, %v2436_v42  ;;  %v2737_v19 = vadd.f32 %v2736_v0, %v2602_v31 }
 0x32e   : > { %11326 = vst [vmem:[#allocation30_spill] sm:$0xff] %v9425_v62  ;;  %v9427_v29 = vpop.f32.mrf.mxu1  ;;  %v2595_v23 = vadd.f32 %v2594_v45, %v2416_v25 }
 0x32f   : > { %11327 = vst [vmem:[#allocation33_spill] sm:$0xff] %v9427_v29  ;;  %v3005_v21 = vpop.f32.mrf.mxu0  ;;  %v2593_v61 = vadd.f32 %v2592_v49, %v2414_v32  ;;  %v2743_v49 = vadd.f32 %v2742_v40, %v2607_v20  ;;  %v2866_v9 = vadd.f32 %v2865_v39, %v2737_v19 }
 0x330   : > { %v9429_v1 = vpop.f32.mrf.mxu1  ;;  %v2729_v27 = vadd.f32 %v9401_v12, %v2595_v23  ;;  %v11330_v23 = vld [vmem:[#allocation21_spill] sm:$0xff] }
 0x331   : > { %11328 = vst [vmem:[#allocation12_spill] sm:$0xff] %v9429_v1  ;;  %v3010_v17 = vpop.f32.mrf.mxu0  ;;  %v2581_v1 = vadd.f32 %v2580_v57, %v2394_v34  ;;  %v2447_v34 = vadd.f32 %v9379_v14, %v9355_v22  ;;  %v2449_v57 = vadd.f32 %v9383_v52, %v9355_v22  ;;  %v2735_v14 = vadd.f32 %v2734_v44, %v2600_v60  ;;  %v11338_v60 = vld [vmem:[#allocation8_spill] sm:$0xff] }
 0x332   : > { %v3115_v56 = vpop.f32.mrf.mxu1  ;;  %v2745_v52 = vadd.f32 %v2744_v63, %v2609_v3  ;;  %v2873_v42 = vadd.f32 %v2872_v11, %v2743_v49  ;;  %v2857_v19 = vadd.f32 %v9409_v2, %v2729_v27 }
 0x333   : > { %v3012_v51 = vpop.f32.mrf.mxu0  ;;  %v2713_v37 = vadd.f32 %v9387_v58, %v2581_v1  ;;  %v2614_v48 = vadd.f32 %v9391_v41, %v2447_v34  ;;  %v2864_v7 = vadd.f32 %v2863_v55, %v2735_v14  ;;  %v2616_v44 = vadd.f32 %v9395_v38, %v2449_v57  ;;  %v11332_v55 = vld [vmem:[#allocation10_spill] sm:$0xff]  ;;  %v11341_v14 = vld [vmem:[#allocation13_spill] sm:$0xff] }
 0x334   : > { %v9434_v46 = vpop.f32.mrf.mxu1  ;;  %v2875_v58 = vadd.f32 %v2874_v10, %v2745_v52  ;;  %v3006_v31 = vadd.f32 %v3005_v21, %v2857_v19  ;;  %v11337_v33 = vld [vmem:[#allocation46_spill] sm:$0xff] }
 0x335   : > { %11329 = vst [vmem:[#allocation32_spill] sm:$0xff] %v9434_v46  ;;  %v3017_v29 = vpop.f32.mrf.mxu0  ;;  %v2719_v46 = vadd.f32 %v2718_v28, %v9377_v50  ;;  %v2711_v50 = vadd.f32 %v9385_v6, %v9370_v43  ;;  %v2721_v43 = vadd.f32 %v9393_v24, %v2588_v18  ;;  %v2727_v6 = vadd.f32 %v9397_v54, %v2593_v61  ;;  %v11333_v2 = vld [vmem:[#allocation30_spill] sm:$0xff]  ;;  %v11336_v18 = vld [vmem:[#allocation28_spill] sm:$0xff] }
 0x336   : > { %v3122_v62 = vpop.f32.mrf.mxu1  ;;  %v3018_v39 = vadd.f32 %v3017_v29, %v2873_v42  ;;  %v3011_v63 = vadd.f32 %v3010_v17, %v2864_v7  ;;  %v2753_v25 = vadd.f32 %v11332_v55, %v2616_v44 }
 0x337   : > { %v3019_v8 = vpop.f32.mrf.mxu0  ;;  %v2846_v30 = vadd.f32 %v2845_v16, %v2719_v46  ;;  %v3013_v16 = vadd.f32 %v3012_v51, %v2866_v9  ;;  %v2848_v15 = vadd.f32 %v9405_v59, %v2721_v43  ;;  %v2855_v12 = vadd.f32 %v11330_v23, %v2727_v6  ;;  %v11334_v59 = vld [vmem:[#allocation24_spill] sm:$0xff]  ;;  %v11335_v51 = vld [vmem:[#allocation14_spill] sm:$0xff]  ;;  %v11344_v6 = vld [vmem:[#allocation11_spill] sm:$0xff] }
 0x338   : > { %v3124_v26 = vpop.f32.mrf.mxu1  ;;  %v3020_v61 = vadd.f32 %v3019_v8, %v2875_v58  ;;  %v2839_v13 = vadd.f32 %v11335_v51, %v2713_v37  ;;  %v2884_v20 = vadd.f32 %v11337_v33, %v2753_v25  ;;  %v2837_v57 = vadd.f32 %v11338_v60, %v2711_v50  ;;  %v7108_v37 = vld [vmem:[%s10976_s0 + $0x90] sm:$0xff] }
 0x339   : > { %v3024_v36 = vpop.f32.mrf.mxu0  ;;  %v2997_v28 = vadd.f32 %v2996_v53, %v2846_v30  ;;  %v11331_v53 = vld [vmem:[#allocation20_spill] sm:$0xff]  ;;  %v3004_v10 = vadd.f32 %v11333_v2, %v2855_v12  ;;  %v2999_v21 = vadd.f32 %v11336_v18, %v2848_v15  ;;  %v11339_v30 = vld [vmem:[#allocation23_spill] sm:$0xff] }
 0x33a   : > { %v3129_v45 = vpop.f32.mrf.mxu1  ;;  %v2751_v24 = vadd.f32 %v11331_v53, %v2614_v48  ;;  %v2992_v3 = vadd.f32 %v11339_v30, %v2839_v13 }
 0x33b   : > { %v3026_v4 = vpop.f32.mrf.mxu0  ;;  %v3116_v40 = vadd.f32 %v3115_v56, %v2997_v28  ;;  %v3130_v32 = vadd.f32 %v3129_v45, %v3011_v63  ;;  %v3125_v56 = vadd.f32 %v3124_v26, %v3006_v31  ;;  %v3123_v8 = vadd.f32 %v3122_v62, %v3004_v10  ;;  %v11348_v63 = vld [vmem:[#allocation15_spill] sm:$0xff]  ;;  %v7109_v31 = vld [vmem:[%s10976_s0 + $0x98] sm:$0xff] }
 0x33c   : > { %v3131_v0 = vpop.f32.mrf.mxu1  ;;  %v2882_v1 = vadd.f32 %v11334_v59, %v2751_v24  ;;  %v11340_v49 = vld [vmem:[#allocation32_spill] sm:$0xff]  ;;  %v3027_v62 = vadd.f32 %v3026_v4, %v2884_v20  ;;  %v2990_v28 = vadd.f32 %v11341_v14, %v2837_v57 }
 0x33d   : > { %v3132_v41 = vadd.f32 %v3131_v0, %v3013_v16  ;;  %7284 = vtanh.f32 %v3116_v40  ;;  %v3118_v9 = vadd.f32 %v11340_v49, %v2999_v21  ;;  %v4057_v16 = vsel %vm523_vm0, %v7108_v37, 0  ;;  %v11343_v0 = vld [vmem:[#allocation33_spill] sm:$0xff] }
 0x33e   : > { %v3025_v34 = vadd.f32 %v3024_v36, %v2882_v1  ;;  %v11342_v36 = vld [vmem:[#allocation12_spill] sm:$0xff]  ;;  %v3109_v43 = vadd.f32 %v11343_v0, %v2990_v28  ;;  %v9487_v19 = vand.u32 4294901760, %v4057_v16 }
 0x33f   : > { %v3136_v11 = vpop.f32.mrf.mxu1  ;;  %v3231_v46 = vpop.f32.mrf.mxu0  ;;  %7286 = vtanh.f32 %v3132_v41  ;;  %v3111_v27 = vadd.f32 %v11342_v36, %v2992_v3 }
 0x340   : > { %v3137_v54 = vadd.f32 %v3136_v11, %v3018_v39  ;;  %v3232_v7 = vadd.f32 %v3231_v46, %v11344_v6  ;;  %11345 = vst [vmem:[#allocation35_spill] sm:$0xff] %v9487_v19  ;;  %v9498_v23 = vsub.f32 %v4057_v16, %v9487_v19 }
 0x341   : > { %v3138_v29 = vpop.f32.mrf.mxu1  ;;  %v9466_v38 = vpop.f32.mrf.mxu0 }
 0x342   : > { %v3139_v17 = vadd.f32 %v3138_v29, %v3020_v61  ;;  %7288 = vtanh.f32 %v3137_v54  ;;  %11347 = vst [vmem:[#allocation37_spill] sm:$0xff] %v9498_v23  ;;  %v9517_v29 = vand.u32 4294901760, %v9498_v23 }
 0x344   : > { %7290 = vtanh.f32 %v3139_v17  ;;  %11350 = vst [vmem:[#allocation40_spill] sm:$0xff] %v9517_v29  ;;  %v4154_v3 = vsub.f32 %v9498_v23, %v9517_v29 }
 0x345   : > { %7292 = vtanh.f32 %v3130_v32  ;;  %v3143_v26 = vpop.f32.mrf.mxu1  ;;  %v3242_v45 = vpop.f32.mrf.mxu0 }
 0x346   : > { %7294 = vtanh.f32 %v3125_v56  ;;  %v3144_v48 = vadd.f32 %v3143_v26, %v3025_v34  ;;  %v3243_v11 = vadd.f32 %v3242_v45, %v11348_v63  ;;  %v4060_v56 = vsel %vm523_vm0, %v7109_v31, 0  ;;  %v7110_v34 = vld [vmem:[%s10976_s0 + $0xa0] sm:$0xff] }
 0x347   : > { %7296 = vtanh.f32 %v3123_v8  ;;  %v3145_v50 = vpop.f32.mrf.mxu1  ;;  %v9480_v52 = vpop.f32.mrf.mxu0  ;;  %v9545_v49 = vand.u32 4294901760, %v4060_v56 }
 0x348   : > { %7298 = vtanh.f32 %v3144_v48  ;;  %v3146_v42 = vadd.f32 %v3145_v50, %v3027_v62  ;;  %v4063_v50 = vsel %vm523_vm0, %v7110_v34, 0 }
 0x349   : > { %7300 = vtanh.f32 %v3118_v9  ;;  %11353 = vst [vmem:[#allocation34_spill] sm:$0xff] %v9545_v49  ;;  %v9600_v34 = vand.u32 4294901760, %v4063_v50 }
 0x34a   : > { %7302 = vtanh.f32 %v3146_v42  ;;  %v9495_v44 = vpop.eup %7284 }
 0x34b   : > { %7304 = vtanh.f32 %v3111_v27  ;;  %v9485_v4 = vpop.f32.mrf.mxu0  ;;  %v3418_v40 = vpop.f32.mrf.mxu1  ;;  %v9564_v36 = vand.u32 4294901760, %v9495_v44  ;;  %11361 = vst [vmem:[#allocation62_spill] sm:$0xff] %v9600_v34 }
 0x34c   : > { %v9489_v58 = vadd.f32 %v3418_v40, %v3232_v7  ;;  %7306 = vtanh.f32 %v3109_v43  ;;  %v7287_v15 = vpop.eup %7286 }
 0x34d   : > { %v9491_v39 = vpop.f32.mrf.mxu0  ;;  %v9493_v41 = vpop.f32.mrf.mxu1  ;;  %v9519_v1 = vand.u32 4294901760, %v7287_v15 }
 0x34e   : > { %11346 = vst [vmem:[#allocation36_spill] sm:$0xff] %v9489_v58 }
 0x34f   : > { %v7289_v12 = vpop.eup %7288  ;;  %v9557_v48 = vsub.f32 %v7287_v15, %v9519_v1 }
 0x350   : > { %v9514_v32 = vand.u32 4294901760, %v7289_v12 }
 0x351   : > { %v7291_v46 = vpop.eup %7290  ;;  %v9501_v53 = vpop.f32.mrf.mxu0 }
 0x352   : > { %v3425_v24 = vpop.f32.mrf.mxu1  ;;  %v7293_v61 = vpop.eup %7292  ;;  %v9508_v55 = vand.u32 4294901760, %v7291_v46  ;;  %v9541_v30 = vsub.f32 %v7289_v12, %v9514_v32 }
 0x353   : > { %v9506_v54 = vadd.f32 %v3425_v24, %v3243_v11  ;;  %v7295_v25 = vpop.eup %7294  ;;  %v9510_v2 = vpop.f32.mrf.mxu0  ;;  %v9524_v13 = vand.u32 4294901760, %v7293_v61  ;;  %v9590_v24 = vsub.f32 %v4060_v56, %v9545_v49 }
 0x354   : > { %v9512_v10 = vpop.f32.mrf.mxu1  ;;  %v7297_v59 = vpop.eup %7296  ;;  %v9530_v33 = vand.u32 4294901760, %v7295_v25  ;;  %v9533_v20 = vsub.f32 %v7291_v46, %v9508_v55  ;;  %v9587_v46 = vand.u32 4294901760, %v4154_v3 }
 0x355   : > { %11349 = vst [vmem:[#allocation18_spill] sm:$0xff] %v9506_v54  ;;  %v7299_v17 = vpop.eup %7298  ;;  %v9522_v51 = vpop.f32.mrf.mxu0  ;;  %v9551_v37 = vand.u32 4294901760, %v7297_v59  ;;  %v9567_v27 = vsub.f32 %v7293_v61, %v9524_v13  ;;  %11359 = vst [vmem:[#allocation41_spill] sm:$0xff] %v9590_v24 }
 0x356   : > { %v7301_v18 = vpop.eup %7300  ;;  %v9526_v21 = vpop.f32.mrf.mxu1  ;;  %v9528_v8 = vand.u32 4294901760, %v7299_v17  ;;  %v9579_v40 = vsub.f32 %v7295_v25, %v9530_v33  ;;  %11358 = vst [vmem:[#allocation50_spill] sm:$0xff] %v9587_v46  ;;  %v11365_v54 = vand.u32 4294901760, %v9533_v20  ;;  %v9629_v25 = vsub.f32 %v9495_v44, %v9564_v36 }
 0x357   : > { %11351 = vst [vmem:[#allocation55_spill] sm:$0xff] %v9526_v21  ;;  %v7303_v60 = vpop.eup %7302  ;;  %v9538_v57 = vpop.f32.mrf.mxu0  ;;  %v9561_v28 = vand.u32 4294901760, %v7301_v18 }
 0x358   : > { %11352 = vst [vmem:[#allocation43_spill] sm:$0xff] %v9538_v57  ;;  %v7305_v9 = vpop.eup %7304  ;;  %v9547_v26 = vpop.f32.mrf.mxu1  ;;  %v9549_v45 = vand.u32 4294901760, %v7303_v60  ;;  %v9554_v62 = vsub.f32 %v7299_v17, %v9528_v8  ;;  %v9598_v17 = vsub.f32 %v7297_v59, %v9551_v37 }
 0x359   : > { %11354 = vst [vmem:[#allocation52_spill] sm:$0xff] %v9547_v26  ;;  %v9559_v14 = vpop.f32.mrf.mxu0  ;;  %v7307_v42 = vpop.eup %7306  ;;  %v9584_v12 = vand.u32 4294901760, %v7305_v9  ;;  %v9615_v59 = vsub.f32 %v7301_v18, %v9561_v28 }
 0x35a   : > { %11355 = vst [vmem:[#allocation42_spill] sm:$0xff] %v9559_v14  ;;  %v9570_v16 = vpop.f32.mrf.mxu1  ;;  %4095 = vmatprep.subr.mxu0 %v9549_v45  ;;  %v9574_v0 = vsub.f32 %v7303_v60, %v9549_v45  ;;  %v11058_v43 = vand.u32 4294901760, %v9554_v62  ;;  %v7111_v60 = vld [vmem:[%s10976_s0 + $0xa8] sm:$0xff]  ;;  %v9611_v11 = vand.u32 4294901760, %v7307_v42 }
 0x35b   : > { %11356 = vst [vmem:[#allocation48_spill] sm:$0xff] %v9570_v16  ;;  %v9581_v15 = vpop.f32.mrf.mxu0  ;;  %4097 = vmatpush1.msra.mxu0 %v9528_v8 }
 0x35c   : > { %11357 = vst [vmem:[#allocation47_spill] sm:$0xff] %v9581_v15  ;;  %v9592_v31 = vpop.f32.mrf.mxu1  ;;  %4099 = vmatprep.subr.mxu0 %v9508_v55  ;;  %v11059_v61 = vand.u32 4294901760, %v9574_v0  ;;  %v4246_v56 = vsub.f32 %v9554_v62, %v11058_v43  ;;  %11363 = vst [vmem:[#allocation64_spill] sm:$0xff] %v9611_v11  ;;  %v9665_v16 = vsub.f32 %v7307_v42, %v9611_v11 }
 0x35d   : > { %11360 = vst [vmem:[#allocation39_spill] sm:$0xff] %v9592_v31  ;;  %v9605_v3 = vpop.f32.mrf.mxu0  ;;  %4101 = vmatpush1.msra.mxu0 %v9514_v32  ;;  %v9641_v31 = vsub.f32 %v7305_v9, %v9584_v12  ;;  %v7112_v9 = vld [vmem:[%s10976_s0 + $0xb0] sm:$0xff] }
 0x35e   : > { %11362 = vst [vmem:[#allocation22_spill] sm:$0xff] %v9605_v3  ;;  %v9617_v7 = vpop.f32.mrf.mxu1  ;;  %4103 = vmatprep.subr.mxu0 %v9519_v1  ;;  %v4240_v29 = vsub.f32 %v9574_v0, %v11059_v61  ;;  %v4252_v3 = vsub.f32 %v9533_v20, %v11365_v54  ;;  %v9638_v61 = vand.u32 4294901760, %v9590_v24  ;;  %v4066_v54 = vsel %vm523_vm0, %v7111_v60, 0 }
 0x35f   : > { %11364 = vst [vmem:[#allocation25_spill] sm:$0xff] %v9617_v7  ;;  %v9631_v18 = vpop.f32.mrf.mxu0  ;;  %4105 = vmatpush1.msra.mxu0 %v9524_v13  ;;  %v11367_v7 = vand.u32 4294901760, %v9541_v30  ;;  %v4247_v60 = vand.u32 4294901760, %v4246_v56  ;;  %v9674_v57 = vand.u32 4294901760, %v4066_v54  ;;  %v11378_v56 = vand.u32 4294901760, %v9598_v17 }
 0x360   : > { %11366 = vst [vmem:[#allocation58_spill] sm:$0xff] %v9631_v18  ;;  %11368 = vst [vmem:[#allocation63_spill] sm:$0xff] %v9638_v61  ;;  %v9644_v43 = vpop.f32.mrf.mxu1  ;;  %4107 = vmatprep.subr.mxu0 %v9530_v33  ;;  %v4241_v44 = vand.u32 4294901760, %v4240_v29  ;;  %v11370_v18 = vand.u32 4294901760, %v9557_v48  ;;  %v11372_v29 = vand.u32 4294901760, %v9567_v27  ;;  %v4253_v22 = vand.u32 4294901760, %v4252_v3 }
 0x361   : > { %v4258_v58 = vsub.f32 %v9541_v30, %v11367_v7  ;;  %11369 = vst [vmem:[#allocation31_spill] sm:$0xff] %v9644_v43  ;;  %v9652_v7 = vsub.f32 %v4063_v50, %v9600_v34  ;;  %v9657_v14 = vpop.f32.mrf.mxu0  ;;  %4109 = vmatpush1.msra.mxu0 %v9551_v37  ;;  %11375 = vst [vmem:[#allocation61_spill] sm:$0xff] %v9674_v57  ;;  %v4069_v3 = vsel %vm523_vm0, %v7112_v9, 0 }
 0x362   : > { %v4264_v15 = vsub.f32 %v9557_v48, %v11370_v18  ;;  %11371 = vst [vmem:[#allocation54_spill] sm:$0xff] %v9657_v14  ;;  %v4270_v43 = vsub.f32 %v9567_v27, %v11372_v29  ;;  %v9667_v50 = vpop.f32.mrf.mxu1  ;;  %4111 = vmatprep.subr.mxu0 %v9561_v28  ;;  %4242 = vmatprep.subr.mxu1 %v4241_v44  ;;  %v11374_v14 = vand.u32 4294901760, %v9579_v40 }
 0x363   : > { %11373 = vst [vmem:[#allocation49_spill] sm:$0xff] %v9667_v50  ;;  %v9676_v29 = vpop.f32.mrf.mxu0  ;;  %4113 = vmatpush1.msra.mxu0 %v9564_v36  ;;  %4248 = vmatpush1.msra.mxu1 %v4247_v60  ;;  %v4259_v42 = vand.u32 4294901760, %v4258_v58  ;;  %v4165_v18 = vsub.f32 %v9590_v24, %v9638_v61  ;;  %v9690_v60 = vand.u32 4294901760, %v9652_v7  ;;  %v7113_v58 = vld [vmem:[%s10976_s0 + $0xb8] sm:$0xff]  ;;  %v11383_v24 = vand.u32 4294901760, %v9629_v25 }
 0x364   : > { %v4276_v26 = vsub.f32 %v9579_v40, %v11374_v14  ;;  %11376 = vst [vmem:[#allocation19_spill] sm:$0xff] %v9676_v29  ;;  %v9683_v50 = vpop.f32.mrf.mxu1  ;;  %4115 = vmatprep.subr.mxu0 %v9584_v12  ;;  %4254 = vmatprep.subr.mxu1 %v4253_v22  ;;  %v4265_v14 = vand.u32 4294901760, %v4264_v15  ;;  %v4282_v29 = vsub.f32 %v9598_v17, %v11378_v56  ;;  %v4271_v9 = vand.u32 4294901760, %v4270_v43 }
 0x365   : > { %11377 = vst [vmem:[#allocation53_spill] sm:$0xff] %v9683_v50  ;;  %11379 = vst [vmem:[#allocation9_spill] sm:$0xff] %v9690_v60  ;;  %v9695_v44 = vpop.f32.mrf.mxu0  ;;  %4117 = vmatpush1.msra.mxu0 %v9611_v11  ;;  %4260 = vmatpush1.msra.mxu1 %v4259_v42  ;;  %v11381_v22 = vand.u32 4294901760, %v9615_v59  ;;  %v9709_v21 = vsub.f32 %v4066_v54, %v9674_v57  ;;  %v9711_v43 = vand.u32 4294901760, %v4069_v3  ;;  %v11388_v61 = vand.u32 4294901760, %v9641_v31 }
 0x366   : > { %11380 = vst [vmem:[#allocation57_spill] sm:$0xff] %v9695_v44  ;;  %v9702_v56 = vpop.f32.mrf.mxu1  ;;  %4156 = vmatmul.mubr.f32.vlgmr.msra.gmra.mxu0 %v9587_v46  ;;  %4266 = vmatprep.subr.mxu1 %v4265_v14  ;;  %v4277_v50 = vand.u32 4294901760, %v4276_v26  ;;  %v4294_v44 = vsub.f32 %v9629_v25, %v11383_v24  ;;  %v4072_v14 = vsel %vm523_vm0, %v7113_v58, 0  ;;  %v4283_v24 = vand.u32 4294901760, %v4282_v29 }
 0x367   : > { %v4288_v15 = vsub.f32 %v9615_v59, %v11381_v22  ;;  %11382 = vst [vmem:[#allocation29_spill] sm:$0xff] %v9702_v56  ;;  %11384 = vst [vmem:[#allocation38_spill] sm:$0xff] %v9709_v21  ;;  %v9713_v42 = vpop.f32.mrf.mxu0  ;;  %4406 = vmatprep.subr.mxu0 %v9574_v0  ;;  %4272 = vmatpush1.msra.mxu1 %v4271_v9  ;;  %v9716_v22 = vand.u32 4294901760, %v4165_v18  ;;  %v4300_v26 = vsub.f32 %v9641_v31, %v11388_v61  ;;  %v11390_v9 = vmov 0.0  }
 0x368   : > { %11385 = vst [vmem:[#allocation44_spill] sm:$0xff] %v9711_v43  ;;  %11386 = vst [vmem:[#allocation26_spill] sm:$0xff] %v9713_v42  ;;  %v9722_v46 = vpop.f32.mrf.mxu1  ;;  %4409 = vmatpush1.msra.mxu0 %v9554_v62  ;;  %4278 = vmatprep.subr.mxu1 %v4277_v50  ;;  %v4176_v54 = vsub.f32 %v9652_v7, %v9690_v60  ;;  %v11391_v56 = vand.u32 4294901760, %v9665_v16  ;;  %v4295_v58 = vand.u32 4294901760, %v4294_v44  ;;  %v9739_v29 = vand.u32 4294901760, %v4072_v14 }
 0x369   : > { %11387 = vst [vmem:[#allocation45_spill] sm:$0xff] %v9716_v22  ;;  %11389 = vst [vmem:[#allocation51_spill] sm:$0xff] %v9722_v46  ;;  %4412 = vmatprep.subr.mxu0 %v9533_v20  ;;  %4161 = vmatprep.mubr.f32.mxu0 %v11390_v9  ;;  %v4289_v18 = vand.u32 4294901760, %v4288_v15  ;;  %v9734_v46 = vand.u32 4294901760, %v9709_v21  ;;  %v9737_v50 = vsub.f32 %v4069_v3, %v9711_v43  ;;  %v4301_v15 = vand.u32 4294901760, %v4300_v26 }
 0x36a   : > { %v4306_v61 = vsub.f32 %v9665_v16, %v11391_v56  ;;  %4284 = vmatpush1.msra.mxu1 %v4283_v24  ;;  %4415 = vmatpush1.msra.mxu0 %v9541_v30  ;;  %11394 = vst [vmem:[#allocation60_spill] sm:$0xff] %v9739_v29  ;;  %v9747_v44 = vand.u32 4294901760, %v4176_v54  ;;  %v9762_v54 = vsub.f32 %v4072_v14, %v9739_v29 }
 0x36b   : > { %11392 = vst [vmem:[#allocation56_spill] sm:$0xff] %v9734_v46  ;;  %11393 = vst [vmem:[#allocation59_spill] sm:$0xff] %v9737_v50  ;;  %v9741_v60 = vpop.f32.mrf.mxu0  ;;  %v9743_v42 = vpop.f32.mrf.mxu1  ;;  %4167 = vmatmul.mubr.f32.gmra.mxu0 %v9716_v22  ;;  %4290 = vmatprep.subr.mxu1 %v4289_v18  ;;  %v4187_v26 = vsub.f32 %v9709_v21, %v9734_v46  ;;  %v9759_v18 = vand.u32 4294901760, %v9737_v50 }
 0x36c   : > { %11395 = vst [vmem:[#allocation16_spill] sm:$0xff] %v9743_v42  ;;  %4418 = vmatprep.subr.mxu0 %v9557_v48  ;;  %4296 = vmatpush1.msra.mxu1 %v4295_v58  ;;  %11396 = vst [vmem:[#allocation27_spill] sm:$0xff] %v9747_v44  ;;  %v4307_v3 = vand.u32 4294901760, %v4306_v61 }
 0x36d   : > { %v9749_v56 = vpop.f32.mrf.mxu0  ;;  %v9751_v24 = vpop.f32.mrf.mxu1  ;;  %4421 = vmatpush1.msra.mxu0 %v9567_v27  ;;  %4302 = vmatprep.subr.mxu1 %v4301_v15  ;;  %11398 = vst [vmem:[#allocation20_spill] sm:$0xff] %v9759_v18  ;;  %11399 = vst [vmem:[#allocation10_spill] sm:$0xff] %v9762_v54  ;;  %v9779_v14 = vand.u32 4294901760, %v4187_v26 }
 0x36e   : > { %11397 = vst [vmem:[#allocation21_spill] sm:$0xff] %v9751_v24  ;;  %4424 = vmatprep.subr.mxu0 %v9579_v40  ;;  %4172 = vmatprep.mubr.f32.mxu0 %v11390_v9 }
 0x36f   : > { %v9764_v58 = vpop.f32.mrf.mxu0  ;;  %4308 = vmatpush1.msra.mxu1 %v4307_v3  ;;  %4427 = vmatpush1.msra.mxu0 %v9598_v17  ;;  %11401 = vst [vmem:[#allocation24_spill] sm:$0xff] %v9779_v14  ;;  %v4198_v3 = vsub.f32 %v9737_v50, %v9759_v18 }
 0x370   : > { %v9767_v15 = vpop.f32.mrf.mxu1  ;;  %4178 = vmatmul.mubr.f32.gmra.mxu0 %v9747_v44  ;;  %4343 = vmatmul.mubr.f32.vlgmr.msra.gmra.mxu1 %v9487_v19  ;;  %v9784_v44 = vand.u32 4294901760, %v9762_v54 }
 0x371   : > { %11400 = vst [vmem:[#allocation30_spill] sm:$0xff] %v9767_v15  ;;  %v9771_v61 = vpop.f32.mrf.mxu0  ;;  %4430 = vmatprep.subr.mxu0 %v9615_v59  ;;  %4542 = vmatprep.subr.mxu1 %v9549_v45  ;;  %v9802_v42 = vand.u32 4294901760, %v4198_v3  ;;  %v11405_v15 = vand.u32 4294901760, %v9574_v0 }
 0x372   : > { %v9775_v22 = vpop.f32.mrf.mxu1  ;;  %4433 = vmatpush1.msra.mxu0 %v9629_v25  ;;  %4544 = vmatpush1.msra.mxu1 %v9528_v8  ;;  %11402 = vst [vmem:[#allocation14_spill] sm:$0xff] %v9784_v44  ;;  %v4209_v50 = vsub.f32 %v9762_v54, %v9784_v44  ;;  %v3234_v54 = vadd.f32 %v9466_v38, %v11344_v6 }
 0x373   : > { %v9786_v19 = vpop.f32.mrf.mxu0  ;;  %4436 = vmatprep.subr.mxu0 %v9641_v31  ;;  %4546 = vmatprep.subr.mxu1 %v9508_v55  ;;  %11403 = vst [vmem:[#allocation28_spill] sm:$0xff] %v9802_v42 }
 0x374   : > { %v9790_v46 = vpop.f32.mrf.mxu1  ;;  %4183 = vmatprep.mubr.f32.mxu0 %v11390_v9  ;;  %4348 = vmatprep.mubr.f32.mxu1 %v11390_v9  ;;  %v9823_v0 = vand.u32 4294901760, %v4209_v50  ;;  %v3421_v38 = vadd.f32 %v9493_v41, %v3234_v54  ;;  %v11414_v41 = vld [vmem:[#allocation55_spill] sm:$0xff] }
 0x375   : > { %v9794_v26 = vpop.f32.mrf.mxu0  ;;  %4439 = vmatpush1.msra.mxu0 %v9665_v16  ;;  %4548 = vmatpush1.msra.mxu1 %v9514_v32 }
 0x376   : > { %v9798_v18 = vpop.f32.mrf.mxu1  ;;  %4189 = vmatmul.mubr.f32.gmra.mxu0 %v9779_v14  ;;  %4350 = vmatmul.mubr.f32.gmra.mxu1 %v9545_v49  ;;  %11407 = vst [vmem:[#allocation23_spill] sm:$0xff] %v9823_v0 }
 0x377   : > { %v9806_v24 = vpop.f32.mrf.mxu0  ;;  %4550 = vmatprep.subr.mxu1 %v9519_v1  ;;  %4675 = vmatprep.subr.mxu0 %v11405_v15 }
 0x378   : > { %11404 = vst [vmem:[#allocation46_spill] sm:$0xff] %v9806_v24  ;;  %v9811_v21 = vpop.f32.mrf.mxu1  ;;  %4552 = vmatpush1.msra.mxu1 %v9524_v13  ;;  %4194 = vmatprep.mubr.f32.mxu0 %v11390_v9 }
 0x379   : > { %v9815_v14 = vpop.f32.mrf.mxu0  ;;  %4554 = vmatprep.subr.mxu1 %v9530_v33  ;;  %4355 = vmatprep.mubr.f32.mxu1 %v11390_v9 }
 0x37a   : > { %11406 = vst [vmem:[#allocation8_spill] sm:$0xff] %v9815_v14  ;;  %v9819_v3 = vpop.f32.mrf.mxu1  ;;  %4556 = vmatpush1.msra.mxu1 %v9551_v37  ;;  %4200 = vmatmul.mubr.f32.gmra.mxu0 %v9802_v42  ;;  %v3256_v14 = vadd.f32 %v9491_v39, %v9357_v35  ;;  %v3276_v39 = vadd.f32 %v9522_v51, %v9353_v47 }
 0x37b   : > { %v9825_v15 = vpop.f32.mrf.mxu0  ;;  %4357 = vmatmul.mubr.f32.gmra.mxu1 %v9600_v34  ;;  %4558 = vmatprep.subr.mxu1 %v9561_v28 }
 0x37c   : > { %v9829_v44 = vpop.f32.mrf.mxu1  ;;  %4560 = vmatpush1.msra.mxu1 %v9564_v36  ;;  %4205 = vmatprep.mubr.f32.mxu0 %v11390_v9 }
 0x37d   : > { %v9833_v49 = vpop.f32.mrf.mxu0  ;;  %4562 = vmatprep.subr.mxu1 %v9584_v12  ;;  %4362 = vmatprep.mubr.f32.mxu1 %v11390_v9 }
 0x37e   : > { %v9837_v50 = vpop.f32.mrf.mxu1  ;;  %4564 = vmatpush1.msra.mxu1 %v9611_v11  ;;  %4211 = vmatmul.mubr.f32.gmra.mxu0 %v9823_v0  ;;  %v3245_v0 = vadd.f32 %v9480_v52, %v11348_v63  ;;  %v3265_v52 = vadd.f32 %v9501_v53, %v9363_v5  ;;  %v3267_v63 = vadd.f32 %v9510_v2, %v9363_v5  ;;  %v11416_v5 = vand.u32 4294901760, %v9557_v48  ;;  %v11417_v2 = vld [vmem:[#allocation41_spill] sm:$0xff]  ;;  %v11424_v48 = vld [vmem:[#allocation39_spill] sm:$0xff] }
 0x37f   : > { %v9841_v42 = vpop.f32.mrf.mxu0  ;;  %4364 = vmatmul.mubr.f32.gmra.mxu1 %v9674_v57  ;;  %4816 = vmatprep.subr.mxu1 %v9549_v45  ;;  %v11410_v45 = vand.u32 4294901760, %v9554_v62 }
 0x380   : > { %v9845_v34 = vpop.f32.mrf.mxu1  ;;  %4369 = vmatprep.mubr.f32.mxu1 %v11390_v9  ;;  %4472 = vmatprep.mubr.f32.mxu0 %v11390_v9 }
 0x381   : > { %11408 = vst [vmem:[#allocation32_spill] sm:$0xff] %v9845_v34  ;;  %v9849_v24 = vpop.f32.mrf.mxu0  ;;  %v3254_v34 = vadd.f32 %v9485_v4, %v9357_v35  ;;  %v3428_v4 = vadd.f32 %v9512_v10, %v3245_v0  ;;  %v11413_v35 = vand.u32 4294901760, %v9541_v30  ;;  %v11418_v10 = vld [vmem:[#allocation52_spill] sm:$0xff]  ;;  %v11419_v0 = vld [vmem:[#allocation17_spill] sm:$0xff] }
 0x382   : > { %v9853_v11 = vpop.f32.mrf.mxu1  ;;  %4475 = vmatmul.mubr.f32.vlgmr.msra.gmra.mxu0 %v9498_v23  ;;  %v11412_v23 = vand.u32 4294901760, %v9533_v20  ;;  %v11415_v20 = vld [vmem:[#allocation43_spill] sm:$0xff]  ;;  %v3435_v30 = vadd.f32 %v11418_v10, %v3256_v14  ;;  %v11427_v10 = vand.u32 4294901760, %v9579_v40  ;;  %v11433_v40 = vld [vmem:[#allocation18_spill] sm:$0xff] }
 0x383   : > { %11409 = vst [vmem:[#allocation13_spill] sm:$0xff] %v9853_v11  ;;  %v3850_v57 = vpop.f32.mrf.mxu0  ;;  %4371 = vmatmul.mubr.f32.gmra.mxu1 %v9711_v43  ;;  %4679 = vmatpush1.msra.mxu0 %v11410_v45  ;;  %v3278_v53 = vadd.f32 %v11415_v20, %v9353_v47  ;;  %v11420_v45 = vld [vmem:[#allocation42_spill] sm:$0xff]  ;;  %v11421_v43 = vld [vmem:[#allocation48_spill] sm:$0xff]  ;;  %v11423_v47 = vld [vmem:[#allocation47_spill] sm:$0xff]  ;;  %v3442_v20 = vadd.f32 %v11424_v48, %v3267_v63  ;;  %v11430_v63 = vand.u32 4294901760, %v9598_v17 }
 0x384   : > { %v9866_v6 = vpop.f32.mrf.mxu1  ;;  %4683 = vmatprep.subr.mxu0 %v11412_v23  ;;  %4376 = vmatprep.mubr.f32.mxu1 %v11390_v9  ;;  %v3433_v23 = vadd.f32 %v11414_v41, %v3254_v34  ;;  %v3440_v11 = vadd.f32 %v11421_v43, %v3265_v52  ;;  %v11422_v34 = vand.u32 4294901760, %v9567_v27  ;;  %v3289_v41 = vadd.f32 %v11423_v47, %v11419_v0  ;;  %v11428_v43 = vld [vmem:[#allocation25_spill] sm:$0xff]  ;;  %v11429_v27 = vld [vmem:[#allocation58_spill] sm:$0xff] }
 0x385   : > { %11411 = vst [vmem:[#allocation12_spill] sm:$0xff] %v9866_v6  ;;  %v9876_v62 = vpop.f32.mrf.mxu0  ;;  %4687 = vmatpush1.msra.mxu0 %v11413_v35  ;;  %4480 = vmatprep.mubr.f32.mxu0 %v11390_v9  ;;  %v3287_v35 = vadd.f32 %v11420_v45, %v11419_v0  ;;  %v3447_v52 = vadd.f32 %v11428_v43, %v3276_v39  ;;  %v11432_v47 = vld [vmem:[#allocation49_spill] sm:$0xff] }
 0x386   : > { %v9886_v54 = vpop.f32.mrf.mxu1  ;;  %4691 = vmatprep.subr.mxu0 %v11416_v5  ;;  %4483 = vmatmul.mubr.f32.gmra.mxu0 %v11417_v2  ;;  %v11425_v5 = vld [vmem:[#allocation36_spill] sm:$0xff]  ;;  %v11426_v2 = vld [vmem:[#allocation22_spill] sm:$0xff]  ;;  %v9912_v45 = vadd.f32 %v11429_v27, %v3421_v38  ;;  %v3575_v0 = vadd.f32 %v9741_v60, %v3440_v11  ;;  %v11435_v38 = vand.u32 4294901760, %v9615_v59  ;;  %v11436_v11 = vld [vmem:[#allocation19_spill] sm:$0xff]  ;;  %v3577_v59 = vadd.f32 %v9749_v56, %v3442_v20 }
 0x387   : > { %v3857_v51 = vpop.f32.mrf.mxu0  ;;  %4378 = vmatmul.mubr.f32.gmra.mxu1 %v9739_v29  ;;  %4695 = vmatpush1.msra.mxu0 %v11422_v34  ;;  %v9903_v6 = vadd.f32 %v11426_v2, %v11425_v5  ;;  %v11431_v2 = vld [vmem:[#allocation31_spill] sm:$0xff]  ;;  %v3454_v48 = vadd.f32 %v11432_v47, %v3287_v35  ;;  %v11434_v5 = vld [vmem:[#allocation54_spill] sm:$0xff]  ;;  %v3561_v17 = vadd.f32 %v11436_v11, %v3428_v4  ;;  %v11438_v35 = vand.u32 4294901760, %v9629_v25  ;;  %v11439_v27 = vld [vmem:[#allocation53_spill] sm:$0xff] }
 0x388   : > { %v9905_v14 = vpop.f32.mrf.mxu1  ;;  %4699 = vmatprep.subr.mxu0 %v11427_v10  ;;  %4488 = vmatprep.mubr.f32.mxu0 %v11390_v9  ;;  %v3449_v34 = vadd.f32 %v11431_v2, %v3278_v53  ;;  %v9922_v10 = vadd.f32 %v11434_v5, %v11433_v40  ;;  %v3583_v60 = vadd.f32 %v9764_v58, %v3447_v52  ;;  %v11437_v53 = vld [vmem:[#allocation40_spill] sm:$0xff]  ;;  %v11440_v2 = vld [vmem:[#allocation57_spill] sm:$0xff]  ;;  %v11441_v4 = vand.u32 4294901760, %v9641_v31 }
 0x389   : > { %4703 = vmatpush1.msra.mxu0 %v11430_v63  ;;  %4597 = vmatprep.mubr.f32.mxu1 %v11390_v9  ;;  %v3859_v29 = vpop.f32.mrf.mxu0  ;;  %v3704_v43 = vadd.f32 %v9790_v46, %v3575_v0  ;;  %v3456_v63 = vadd.f32 %v11439_v27, %v3289_v41  ;;  %v3567_v47 = vadd.f32 %v11440_v2, %v3433_v23  ;;  %v11442_v25 = vand.u32 4294901760, %v9665_v16  ;;  %v11443_v41 = vld [vmem:[#allocation26_spill] sm:$0xff] }
 0x38a   : > { %v3964_v39 = vpop.f32.mrf.mxu1  ;;  %4707 = vmatprep.subr.mxu0 %v11435_v38  ;;  %4491 = vmatmul.mubr.f32.gmra.mxu0 %v9652_v7  ;;  %v3585_v58 = vadd.f32 %v9771_v61, %v3449_v34  ;;  %v3713_v46 = vadd.f32 %v9811_v21, %v3583_v60  ;;  %v3569_v23 = vadd.f32 %v11443_v41, %v3435_v30  ;;  %v11444_v61 = vld [vmem:[#allocation38_spill] sm:$0xff]  ;;  %v11461_v41 = vld [vmem:[#allocation35_spill] sm:$0xff] }
 0x38b   : > { %4601 = vmatmul.mubr.f32.vlgmr.msra.gmra.mxu1 %v11437_v53  ;;  %4711 = vmatpush1.msra.mxu0 %v11438_v35  ;;  %v3851_v52 = vadd.f32 %v3850_v57, %v3704_v43  ;;  %v3591_v56 = vadd.f32 %v9786_v19, %v3454_v48  ;;  %v3706_v20 = vadd.f32 %v9798_v18, %v3577_v59  ;;  %v11448_v43 = vld [vmem:[#allocation59_spill] sm:$0xff] }
 0x38c   : > { %v3969_v40 = vpop.f32.mrf.mxu1  ;;  %4818 = vmatpush1.msra.mxu1 %v9528_v8  ;;  %4715 = vmatprep.subr.mxu0 %v11441_v4  ;;  %v3864_v8 = vpop.f32.mrf.mxu0  ;;  %v3715_v21 = vadd.f32 %v9819_v3, %v3585_v58  ;;  %v3858_v57 = vadd.f32 %v3857_v51, %v3713_v46  ;;  %v3593_v19 = vadd.f32 %v9794_v26, %v3456_v63  ;;  %v11450_v63 = vld [vmem:[#allocation9_spill] sm:$0xff]  ;;  %v11456_v4 = vld [vmem:[#allocation12_spill] sm:$0xff] }
 0x38d   : > { %4820 = vmatprep.subr.mxu1 %v9508_v55  ;;  %4719 = vmatpush1.msra.mxu0 %v11442_v25  ;;  %v3970_v31 = vadd.f32 %v3969_v40, %v3851_v52  ;;  %v3697_v55 = vadd.f32 %v9775_v22, %v3569_v23  ;;  %v3853_v16 = vadd.f32 %v9876_v62, %v3706_v20  ;;  %v11459_v52 = vld [vmem:[#allocation13_spill] sm:$0xff]  ;;  %v11462_v23 = vld [vmem:[#allocation20_spill] sm:$0xff]  ;;  %v11463_v20 = vld [vmem:[#allocation34_spill] sm:$0xff] }
 0x38e   : > { %v3971_v0 = vpop.f32.mrf.mxu1  ;;  %4822 = vmatpush1.msra.mxu1 %v9514_v32  ;;  %4496 = vmatprep.mubr.f32.mxu0 %v11390_v9  ;;  %v11445_v32 = vld [vmem:[#allocation63_spill] sm:$0xff]  ;;  %v3722_v30 = vadd.f32 %v9829_v44, %v3591_v56  ;;  %v3860_v3 = vadd.f32 %v3859_v29, %v3715_v21  ;;  %v3866_v26 = vpop.f32.mrf.mxu0  ;;  %v3724_v5 = vadd.f32 %v9837_v50, %v3593_v19  ;;  %v11465_v19 = vld [vmem:[#allocation62_spill] sm:$0xff] }
 0x38f   : > { %4606 = vmatprep.mubr.f32.mxu1 %v11390_v9  ;;  %4824 = vmatprep.subr.mxu1 %v9519_v1  ;;  %v11446_v1 = vld [vmem:[#allocation30_spill] sm:$0xff]  ;;  %v3846_v22 = vadd.f32 %v9849_v24, %v3697_v55  ;;  %v3972_v48 = vadd.f32 %v3971_v0, %v3853_v16  ;;  %7308 = vtanh.f32 %v3970_v31 }
 0x390   : > { %v3976_v18 = vpop.f32.mrf.mxu1  ;;  %4499 = vmatmul.mubr.f32.gmra.mxu0 %v11444_v61  ;;  %4610 = vmatmul.mubr.f32.gmra.mxu1 %v11445_v32  ;;  %v3695_v34 = vadd.f32 %v11446_v1, %v3567_v47  ;;  %v3865_v44 = vadd.f32 %v3864_v8, %v3722_v30  ;;  %v3867_v50 = vadd.f32 %v3866_v26, %v3724_v5  ;;  %v11452_v47 = vld [vmem:[#allocation29_spill] sm:$0xff]  ;;  %v11464_v0 = vld [vmem:[#allocation14_spill] sm:$0xff] }
 0x391   : > { %v3977_v51 = vadd.f32 %v3976_v18, %v3858_v57  ;;  %4826 = vmatpush1.msra.mxu1 %v9524_v13  ;;  %4504 = vmatprep.mubr.f32.mxu0 %v11390_v9  ;;  %v11447_v13 = vld [vmem:[#allocation21_spill] sm:$0xff]  ;;  %v3965_v60 = vadd.f32 %v3964_v39, %v3846_v22  ;;  %v3677_v59 = vadd.f32 %v11452_v47, %v9903_v6 }
 0x392   : > { %v3978_v62 = vpop.f32.mrf.mxu1  ;;  %4828 = vmatprep.subr.mxu1 %v9530_v33  ;;  %4615 = vmatprep.mubr.f32.mxu1 %v11390_v9  ;;  %v3688_v38 = vadd.f32 %v11447_v13, %v3561_v17  ;;  %v3844_v11 = vadd.f32 %v9841_v42, %v3695_v34  ;;  %v11449_v33 = vld [vmem:[#allocation16_spill] sm:$0xff] }
 0x393   : > { %v3979_v29 = vadd.f32 %v3978_v62, %v3860_v3  ;;  %4830 = vmatpush1.msra.mxu1 %v9551_v37  ;;  %7310 = vtanh.f32 %v3977_v51  ;;  %v3686_v35 = vadd.f32 %v11449_v33, %v9922_v10  ;;  %v11451_v37 = vld [vmem:[#allocation51_spill] sm:$0xff]  ;;  %v11466_v62 = vld [vmem:[#allocation61_spill] sm:$0xff] }
 0x394   : > { %v3983_v24 = vpop.f32.mrf.mxu1  ;;  %4832 = vmatprep.subr.mxu1 %v9561_v28  ;;  %4507 = vmatmul.mubr.f32.gmra.mxu0 %v11448_v43  ;;  %v3679_v42 = vadd.f32 %v11451_v37, %v9912_v45  ;;  %v3839_v39 = vadd.f32 %v9833_v49, %v3688_v38  ;;  %v3963_v17 = vadd.f32 %v9905_v14, %v3844_v11  ;;  %v11453_v45 = vld [vmem:[#allocation8_spill] sm:$0xff] }
 0x395   : > { %7312 = vtanh.f32 %v3979_v29  ;;  %v3984_v27 = vadd.f32 %v3983_v24, %v3865_v44  ;;  %4619 = vmatmul.mubr.f32.gmra.mxu1 %v11450_v63  ;;  %4512 = vmatprep.mubr.f32.mxu0 %v11390_v9  ;;  %v3837_v10 = vadd.f32 %v9825_v15, %v3686_v35  ;;  %v11454_v14 = vld [vmem:[#allocation64_spill] sm:$0xff] }
 0x396   : > { %7314 = vtanh.f32 %v3972_v48  ;;  %4834 = vmatpush1.msra.mxu1 %v9564_v36  ;;  %v3985_v28 = vpop.f32.mrf.mxu1  ;;  %4624 = vmatprep.mubr.f32.mxu1 %v11390_v9  ;;  %v3832_v40 = vadd.f32 %v11453_v45, %v3679_v42  ;;  %v3958_v49 = vadd.f32 %v9886_v54, %v3839_v39  ;;  %v11455_v36 = vld [vmem:[#allocation10_spill] sm:$0xff]  ;;  %v11457_v15 = vld [vmem:[#allocation56_spill] sm:$0xff] }
 0x397   : > { %7316 = vtanh.f32 %v3984_v27  ;;  %v3986_v2 = vadd.f32 %v3985_v28, %v3867_v50  ;;  %4836 = vmatprep.subr.mxu1 %v9584_v12  ;;  %v3956_v58 = vadd.f32 %v11456_v4, %v3837_v10  ;;  %v11458_v12 = vld [vmem:[#allocation46_spill] sm:$0xff]  ;;  %v11460_v54 = vld [vmem:[#allocation32_spill] sm:$0xff] }
 0x398   : > { %7318 = vtanh.f32 %v3965_v60  ;;  %4838 = vmatpush1.msra.mxu1 %v11454_v14  ;;  %4515 = vmatmul.mubr.f32.gmra.mxu0 %v11455_v36  ;;  %v3830_v46 = vadd.f32 %v11458_v12, %v3677_v59  ;;  %v3951_v6 = vadd.f32 %v11459_v52, %v3832_v40 }
 0x399   : > { %7320 = vtanh.f32 %v3986_v2  ;;  %4628 = vmatmul.mubr.f32.gmra.mxu1 %v11457_v15  ;;  %4752 = vmatprep.mubr.f32.mxu0 %v11390_v9 }
 0x39a   : > { %7322 = vtanh.f32 %v3963_v17  ;;  %4633 = vmatprep.mubr.f32.mxu1 %v11390_v9  ;;  %v3949_v25 = vadd.f32 %v11460_v54, %v3830_v46  ;;  %v11467_v17 = vld [vmem:[#allocation44_spill] sm:$0xff] }
 0x39b   : > { %7324 = vtanh.f32 %v3958_v49  ;;  %v11468_v54 = vld [vmem:[#allocation60_spill] sm:$0xff] }
 0x39c   : > { %4754 = vmatmul.mubr.f32.vlgmr.msra.gmra.mxu0 %v11461_v41  ;;  %7326 = vtanh.f32 %v3956_v58  ;;  %v7309_v56 = vpop.eup %7308 }
 0x39d   : > { %4637 = vmatmul.mubr.f32.gmra.mxu1 %v11462_v23  ;;  %4759 = vmatprep.mubr.f32.mxu0 %v11390_v9  ;;  %7328 = vtanh.f32 %v3951_v6  ;;  %v10017_v22 = vand.u32 4294901760, %v7309_v56 }
 0x39e   : > { %4642 = vmatprep.mubr.f32.mxu1 %v11390_v9  ;;  %7330 = vtanh.f32 %v3949_v25 }
 0x39f   : > { %v10049_v27 = vsub.f32 %v7309_v56, %v10017_v22 }
 0x3a0   : > { %4761 = vmatmul.mubr.f32.gmra.mxu0 %v11463_v20  ;;  %v7311_v8 = vpop.eup %7310 }
 0x3a1   : > { %4646 = vmatmul.mubr.f32.gmra.mxu1 %v11464_v0  ;;  %4766 = vmatprep.mubr.f32.mxu0 %v11390_v9  ;;  %v10010_v30 = vand.u32 4294901760, %v7311_v8  ;;  %v5109_v4 = vand.u32 4294901760, %v10049_v27 }
 0x3a2   : > { %v7313_v21 = vpop.eup %7312  ;;  %4871 = vmatprep.mubr.f32.mxu1 %v11390_v9 }
 0x3a3   : > { %v7315_v57 = vpop.eup %7314  ;;  %v10003_v31 = vand.u32 4294901760, %v7313_v21  ;;  %v10034_v13 = vsub.f32 %v7311_v8, %v10010_v30 }
 0x3a4   : > { %v7317_v55 = vpop.eup %7316  ;;  %4768 = vmatmul.mubr.f32.gmra.mxu0 %v11465_v19  ;;  %v10013_v51 = vand.u32 4294901760, %v7315_v57 }
 0x3a5   : > { %v7319_v16 = vpop.eup %7318  ;;  %4873 = vmatmul.mubr.f32.vlgmr.msra.gmra.mxu1 %v11461_v41  ;;  %4773 = vmatprep.mubr.f32.mxu0 %v11390_v9  ;;  %v10008_v18 = vand.u32 4294901760, %v7317_v55  ;;  %v10023_v48 = vsub.f32 %v7313_v21, %v10003_v31  ;;  %v5097_v2 = vand.u32 4294901760, %v10034_v13 }
 0x3a6   : > { %v7321_v3 = vpop.eup %7320  ;;  %4878 = vmatprep.mubr.f32.mxu1 %v11390_v9  ;;  %v10026_v5 = vand.u32 4294901760, %v7319_v16  ;;  %v10042_v24 = vsub.f32 %v7315_v57, %v10013_v51 }
 0x3a7   : > { %v7323_v1 = vpop.eup %7322  ;;  %v10015_v34 = vand.u32 4294901760, %v7321_v3  ;;  %v10020_v26 = vsub.f32 %v7317_v55, %v10008_v18  ;;  %v5091_v50 = vand.u32 4294901760, %v10023_v48  ;;  %v5098_v52 = vsub.f32 %v10034_v13, %v5097_v2 }
 0x3a8   : > { %4775 = vmatmul.mubr.f32.gmra.mxu0 %v11466_v62  ;;  %v7325_v44 = vpop.eup %7324  ;;  %v10038_v11 = vand.u32 4294901760, %v7323_v1  ;;  %v10055_v42 = vsub.f32 %v7319_v16, %v10026_v5  ;;  %v5103_v45 = vand.u32 4294901760, %v10042_v24  ;;  %v5110_v55 = vsub.f32 %v10049_v27, %v5109_v4 }
 0x3a9   : > { %4880 = vmatmul.mubr.f32.gmra.mxu1 %v11463_v20  ;;  %4935 = vmatprep.subr.mxu0 %v10015_v34  ;;  %v10031_v29 = vsub.f32 %v7321_v3, %v10015_v34  ;;  %v7327_v38 = vpop.eup %7326  ;;  %v5085_v60 = vand.u32 4294901760, %v10020_v26  ;;  %v10052_v37 = vand.u32 4294901760, %v7325_v44  ;;  %v5092_v14 = vsub.f32 %v10023_v48, %v5091_v50 }
 0x3aa   : > { %4937 = vmatpush1.msra.mxu0 %v10008_v18  ;;  %4780 = vmatprep.mubr.f32.mxu0 %v11390_v9  ;;  %v7329_v33 = vpop.eup %7328  ;;  %v10062_v10 = vand.u32 4294901760, %v7327_v38  ;;  %v10074_v40 = vsub.f32 %v7323_v1, %v10038_v11  ;;  %v5115_v12 = vand.u32 4294901760, %v10055_v42  ;;  %v5104_v56 = vsub.f32 %v10042_v24, %v5103_v45 }
 0x3ab   : > { %4939 = vmatprep.subr.mxu0 %v10003_v31  ;;  %4885 = vmatprep.mubr.f32.mxu1 %v11390_v9  ;;  %v5079_v35 = vand.u32 4294901760, %v10031_v29  ;;  %v7331_v39 = vpop.eup %7330  ;;  %v5086_v47 = vsub.f32 %v10020_v26, %v5085_v60  ;;  %v10070_v59 = vand.u32 4294901760, %v7329_v33  ;;  %v10087_v46 = vsub.f32 %v7325_v44, %v10052_v37 }
 0x3ac   : > { %4941 = vmatpush1.msra.mxu0 %v10010_v30  ;;  %v10083_v58 = vand.u32 4294901760, %v7331_v39  ;;  %v10095_v6 = vsub.f32 %v7327_v38, %v10062_v10  ;;  %v5121_v8 = vand.u32 4294901760, %v10074_v40  ;;  %v5093_v57 = vand.u32 4294901760, %v5092_v14 }
 0x3ad   : > { %4782 = vmatmul.mubr.f32.gmra.mxu0 %v11467_v17  ;;  %4887 = vmatmul.mubr.f32.gmra.mxu1 %v11465_v19  ;;  %v5080_v28 = vsub.f32 %v10031_v29, %v5079_v35  ;;  %v5087_v25 = vand.u32 4294901760, %v5086_v47  ;;  %v10104_v21 = vsub.f32 %v7329_v33, %v10070_v59  ;;  %v5116_v16 = vsub.f32 %v10055_v42, %v5115_v12 }
 0x3ae   : > { %4943 = vmatprep.subr.mxu0 %v10013_v51  ;;  %4787 = vmatprep.mubr.f32.mxu0 %v11390_v9  ;;  %v5127_v3 = vand.u32 4294901760, %v10087_v46  ;;  %v10116_v1 = vsub.f32 %v7331_v39, %v10083_v58  ;;  %v5099_v44 = vand.u32 4294901760, %v5098_v52  ;;  %v5133_v38 = vand.u32 4294901760, %v10095_v6  ;;  %v11469_v39 = vld [vmem:[#allocation50_spill] sm:$0xff] }
 0x3af   : > { %4945 = vmatpush1.msra.mxu0 %v10017_v22  ;;  %4892 = vmatprep.mubr.f32.mxu1 %v11390_v9  ;;  %v5081_v49 = vand.u32 4294901760, %v5080_v28  ;;  %v5105_v33 = vand.u32 4294901760, %v5104_v56  ;;  %v5122_v28 = vsub.f32 %v10074_v40, %v5121_v8  ;;  %v5139_v47 = vand.u32 4294901760, %v10104_v21 }
 0x3b0   : > { %4947 = vmatprep.subr.mxu0 %v10026_v5  ;;  %v5117_v14 = vand.u32 4294901760, %v5116_v16  ;;  %v5128_v52 = vsub.f32 %v10087_v46, %v5127_v3  ;;  %v5134_v56 = vsub.f32 %v10095_v6, %v5133_v38 }
 0x3b1   : > { %4949 = vmatpush1.msra.mxu0 %v10038_v11  ;;  %4894 = vmatmul.mubr.f32.gmra.mxu1 %v11466_v62 }
 0x3b2   : > { %4789 = vmatmul.mubr.f32.gmra.mxu0 %v11468_v54  ;;  %4951 = vmatprep.subr.mxu0 %v10052_v37  ;;  %v5129_v16 = vand.u32 4294901760, %v5128_v52  ;;  %v11472_v52 = vld [vmem:[#allocation24_spill] sm:$0xff] }
 0x3b3   : > { %5082 = vmatprep.subr.mxu1 %v5081_v49  ;;  %4953 = vmatpush1.msra.mxu0 %v10062_v10  ;;  %v5111_v49 = vand.u32 4294901760, %v5110_v55  ;;  %v5140_v55 = vsub.f32 %v10104_v21, %v5139_v47 }
 0x3b4   : > { %5088 = vmatpush1.msra.mxu1 %v5087_v25  ;;  %4955 = vmatprep.subr.mxu0 %v10070_v59  ;;  %v5145_v25 = vand.u32 4294901760, %v10116_v1 }
 0x3b5   : > { %5094 = vmatprep.subr.mxu1 %v5093_v57  ;;  %4899 = vmatprep.mubr.f32.mxu1 %v11390_v9  ;;  %v5123_v57 = vand.u32 4294901760, %v5122_v28  ;;  %v11470_v28 = vld [vmem:[#allocation45_spill] sm:$0xff] }
 0x3b6   : > { %4957 = vmatpush1.msra.mxu0 %v10083_v58  ;;  %4990 = vmatprep.mubr.f32.mxu0 %v11390_v9 }
 0x3b7   : > { %5100 = vmatpush1.msra.mxu1 %v5099_v44  ;;  %4996 = vmatmul.mubr.f32.vlgmr.msra.gmra.mxu0 %v11469_v39  ;;  %v5146_v44 = vsub.f32 %v10116_v1, %v5145_v25  ;;  %v5141_v39 = vand.u32 4294901760, %v5140_v55 }
 0x3b8   : > { %4901 = vmatmul.mubr.f32.gmra.mxu1 %v11467_v17  ;;  %5106 = vmatprep.subr.mxu1 %v5105_v33  ;;  %v5135_v33 = vand.u32 4294901760, %v5134_v56  ;;  %v11473_v56 = vld [vmem:[#allocation28_spill] sm:$0xff] }
 0x3b9   : > { %5246 = vmatprep.subr.mxu0 %v10031_v29  ;;  %5112 = vmatpush1.msra.mxu1 %v5111_v49  ;;  %v5147_v49 = vand.u32 4294901760, %v5146_v44  ;;  %v11474_v29 = vld [vmem:[#allocation23_spill] sm:$0xff] }
 0x3ba   : > { %5249 = vmatpush1.msra.mxu0 %v10020_v26  ;;  %5118 = vmatprep.subr.mxu1 %v5117_v14  ;;  %v11471_v14 = vld [vmem:[#allocation27_spill] sm:$0xff] }
 0x3bb   : > { %5252 = vmatprep.subr.mxu0 %v10023_v48  ;;  %4906 = vmatprep.mubr.f32.mxu1 %v11390_v9 }
 0x3bc   : > { %5001 = vmatprep.mubr.f32.mxu0 %v11390_v9  ;;  %5124 = vmatpush1.msra.mxu1 %v5123_v57 }
 0x3bd   : > { %5255 = vmatpush1.msra.mxu0 %v10034_v13  ;;  %4908 = vmatmul.mubr.f32.gmra.mxu1 %v11468_v54 }
 0x3be   : > { %5007 = vmatmul.mubr.f32.gmra.mxu0 %v11470_v28  ;;  %5130 = vmatprep.subr.mxu1 %v5129_v16 }
 0x3bf   : > { %5258 = vmatprep.subr.mxu0 %v10042_v24  ;;  %5136 = vmatpush1.msra.mxu1 %v5135_v33 }
 0x3c0   : > { %5261 = vmatpush1.msra.mxu0 %v10049_v27  ;;  %5142 = vmatprep.subr.mxu1 %v5141_v39 }
 0x3c1   : > { %5264 = vmatprep.subr.mxu0 %v10055_v42  ;;  %5012 = vmatprep.mubr.f32.mxu0 %v11390_v9 }
 0x3c2   : > { %5148 = vmatpush1.msra.mxu1 %v5147_v49  ;;  %5181 = vmatprep.mubr.f32.mxu1 %v11390_v9 }
 0x3c3   : > { %5267 = vmatpush1.msra.mxu0 %v10074_v40  ;;  %5183 = vmatmul.mubr.f32.vlgmr.msra.gmra.mxu1 %v11461_v41 }
 0x3c4   : > { %5018 = vmatmul.mubr.f32.gmra.mxu0 %v11471_v14  ;;  %5270 = vmatprep.subr.mxu0 %v10087_v46 }
 0x3c5   : > { %5382 = vmatprep.subr.mxu1 %v10015_v34  ;;  %5273 = vmatpush1.msra.mxu0 %v10095_v6 }
 0x3c6   : > { %5384 = vmatpush1.msra.mxu1 %v10008_v18  ;;  %5276 = vmatprep.subr.mxu0 %v10104_v21 }
 0x3c7   : > { %5386 = vmatprep.subr.mxu1 %v10003_v31  ;;  %5023 = vmatprep.mubr.f32.mxu0 %v11390_v9 }
 0x3c8   : > { %5188 = vmatprep.mubr.f32.mxu1 %v11390_v9  ;;  %5279 = vmatpush1.msra.mxu0 %v10116_v1 }
 0x3c9   : > { %5388 = vmatpush1.msra.mxu1 %v10010_v30  ;;  %5029 = vmatmul.mubr.f32.gmra.mxu0 %v11472_v52 }
 0x3ca   : > { %5190 = vmatmul.mubr.f32.gmra.mxu1 %v11463_v20  ;;  %5390 = vmatprep.subr.mxu1 %v10013_v51 }
 0x3cb   : > { %5515 = vmatprep.subr.mxu0 %v5079_v35  ;;  %5392 = vmatpush1.msra.mxu1 %v10017_v22  ;;  %v11475_v35 = vld [vmem:[#allocation37_spill] sm:$0xff] }
 0x3cc   : > { %5394 = vmatprep.subr.mxu1 %v10026_v5  ;;  %5034 = vmatprep.mubr.f32.mxu0 %v11390_v9 }
 0x3cd   : > { %5195 = vmatprep.mubr.f32.mxu1 %v11390_v9  ;;  %5396 = vmatpush1.msra.mxu1 %v10038_v11 }
 0x3ce   : > { %5040 = vmatmul.mubr.f32.gmra.mxu0 %v11473_v56  ;;  %5197 = vmatmul.mubr.f32.gmra.mxu1 %v11465_v19 }
 0x3cf   : > { %5398 = vmatprep.subr.mxu1 %v10052_v37  ;;  %5045 = vmatprep.mubr.f32.mxu0 %v11390_v9 }
 0x3d0   : > { %5400 = vmatpush1.msra.mxu1 %v10062_v10  ;;  %5202 = vmatprep.mubr.f32.mxu1 %v11390_v9 }
 0x3d1   : > { %5402 = vmatprep.subr.mxu1 %v10070_v59 }
 0x3d2   : > { %5404 = vmatpush1.msra.mxu1 %v10083_v58  ;;  %5051 = vmatmul.mubr.f32.gmra.mxu0 %v11474_v29 }
 0x3d3   : > { %5204 = vmatmul.mubr.f32.gmra.mxu1 %v11466_v62  ;;  %5656 = vmatprep.subr.mxu1 %v10015_v34  ;;  %v11476_v34 = vld [vmem:[#allocation41_spill] sm:$0xff] }
 0x3d4   : > { %5209 = vmatprep.mubr.f32.mxu1 %v11390_v9  ;;  %5312 = vmatprep.mubr.f32.mxu0 %v11390_v9 }
 0x3d6   : > { %5315 = vmatmul.mubr.f32.vlgmr.msra.gmra.mxu0 %v11475_v35 }
 0x3d7   : > { %5211 = vmatmul.mubr.f32.gmra.mxu1 %v11467_v17  ;;  %5519 = vmatpush1.msra.mxu0 %v5085_v60 }
 0x3d8   : > { %5523 = vmatprep.subr.mxu0 %v5091_v50  ;;  %5216 = vmatprep.mubr.f32.mxu1 %v11390_v9 }
 0x3d9   : > { %5527 = vmatpush1.msra.mxu0 %v5097_v2  ;;  %5320 = vmatprep.mubr.f32.mxu0 %v11390_v9 }
 0x3da   : > { %5531 = vmatprep.subr.mxu0 %v5103_v45  ;;  %5323 = vmatmul.mubr.f32.gmra.mxu0 %v11476_v34 }
 0x3db   : > { %5218 = vmatmul.mubr.f32.gmra.mxu1 %v11468_v54  ;;  %5535 = vmatpush1.msra.mxu0 %v5109_v4 }
 0x3dc   : > { %5539 = vmatprep.subr.mxu0 %v5115_v12  ;;  %5328 = vmatprep.mubr.f32.mxu0 %v11390_v9 }
 0x3dd   : > { %5543 = vmatpush1.msra.mxu0 %v5121_v8  ;;  %5437 = vmatprep.mubr.f32.mxu1 %v11390_v9 }
 0x3de   : > { %5547 = vmatprep.subr.mxu0 %v5127_v3  ;;  %5331 = vmatmul.mubr.f32.gmra.mxu0 %v9652_v7  ;;  %v10275_v7 = vpop.permute.xlu1 %4048 }
 0x3df   : > { %5441 = vmatmul.mubr.f32.vlgmr.msra.gmra.mxu1 %v11437_v53  ;;  %5551 = vmatpush1.msra.mxu0 %v5133_v38 }
 0x3e0   : > { %5658 = vmatpush1.msra.mxu1 %v10008_v18  ;;  %5555 = vmatprep.subr.mxu0 %v5139_v47 }
 0x3e1   : > { %5660 = vmatprep.subr.mxu1 %v10003_v31  ;;  %5559 = vmatpush1.msra.mxu0 %v5145_v25 }
 0x3e2   : > { %5662 = vmatpush1.msra.mxu1 %v10010_v30  ;;  %5336 = vmatprep.mubr.f32.mxu0 %v11390_v9 }
 0x3e3   : > { %5446 = vmatprep.mubr.f32.mxu1 %v11390_v9  ;;  %5664 = vmatprep.subr.mxu1 %v10013_v51 }
 0x3e4   : > { %5339 = vmatmul.mubr.f32.gmra.mxu0 %v11444_v61  ;;  %5450 = vmatmul.mubr.f32.gmra.mxu1 %v11445_v32  ;;  %v10277_v61 = vpop.permute.xlu0 %4053  ;;  %v10279_v32 = vpop.permute.xlu1 %4038 }
 0x3e5   : > { %5666 = vmatpush1.msra.mxu1 %v10017_v22  ;;  %5344 = vmatprep.mubr.f32.mxu0 %v11390_v9  ;;  %11477 = vst [vmem:[#allocation33_spill] sm:$0xff] %v10279_v32 }
 0x3e6   : > { %5668 = vmatprep.subr.mxu1 %v10026_v5  ;;  %5455 = vmatprep.mubr.f32.mxu1 %v11390_v9 }
 0x3e7   : > { %5670 = vmatpush1.msra.mxu1 %v10038_v11 }
 0x3e8   : > { %5672 = vmatprep.subr.mxu1 %v10052_v37  ;;  %5347 = vmatmul.mubr.f32.gmra.mxu0 %v11448_v43 }
 0x3e9   : > { %5459 = vmatmul.mubr.f32.gmra.mxu1 %v11450_v63  ;;  %5352 = vmatprep.mubr.f32.mxu0 %v11390_v9 }
 0x3ea   : > { %5674 = vmatpush1.msra.mxu1 %v10062_v10  ;;  %5464 = vmatprep.mubr.f32.mxu1 %v11390_v9 }
 0x3eb   : > { %5676 = vmatprep.subr.mxu1 %v10070_v59 }
 0x3ec   : > { %5678 = vmatpush1.msra.mxu1 %v10083_v58  ;;  %5355 = vmatmul.mubr.f32.gmra.mxu0 %v11455_v36 }
 0x3ed   : > { %5468 = vmatmul.mubr.f32.gmra.mxu1 %v11457_v15  ;;  %5592 = vmatprep.mubr.f32.mxu0 %v11390_v9  ;;  %v10281_v15 = vpop.permute.xlu0 %4043 }
 0x3ee   : > { %5473 = vmatprep.mubr.f32.mxu1 %v11390_v9  ;;  %11478 = vst [vmem:[#allocation11_spill] sm:$0xff] %v10281_v15 }
 0x3f0   : > { %5594 = vmatmul.mubr.f32.vlgmr.msra.gmra.mxu0 %v11461_v41 }
 0x3f1   : > { %5477 = vmatmul.mubr.f32.gmra.mxu1 %v11462_v23  ;;  %5599 = vmatprep.mubr.f32.mxu0 %v11390_v9  ;;  %v10293_v22 = vpop.permute.xlu0 %4033 }
 0x3f2   : > { %5482 = vmatprep.mubr.f32.mxu1 %v11390_v9  ;;  %11480 = vst [vmem:[#allocation55_spill] sm:$0xff] %v10293_v22 }
 0x3f4   : > { %5601 = vmatmul.mubr.f32.gmra.mxu0 %v11463_v20 }
 0x3f5   : > { %5486 = vmatmul.mubr.f32.gmra.mxu1 %v11464_v0  ;;  %5606 = vmatprep.mubr.f32.mxu0 %v11390_v9 }
 0x3f6   : > { %5711 = vmatprep.mubr.f32.mxu1 %v11390_v9 }
 0x3f8   : > { %5608 = vmatmul.mubr.f32.gmra.mxu0 %v11465_v19 }
 0x3f9   : > { %5713 = vmatmul.mubr.f32.vlgmr.msra.gmra.mxu1 %v11461_v41  ;;  %5613 = vmatprep.mubr.f32.mxu0 %v11390_v9  ;;  %v10283_v41 = vpop.permute.xlu1 %4028 }
 0x3fa   : > { %5718 = vmatprep.mubr.f32.mxu1 %v11390_v9  ;;  %11479 = vst [vmem:[#allocation15_spill] sm:$0xff] %v10283_v41 }
 0x3fc   : > { %5615 = vmatmul.mubr.f32.gmra.mxu0 %v11466_v62 }
 0x3fd   : > { %5720 = vmatmul.mubr.f32.gmra.mxu1 %v11463_v20  ;;  %5620 = vmatprep.mubr.f32.mxu0 %v11390_v9 }
 0x3fe   : > { %5725 = vmatprep.mubr.f32.mxu1 %v11390_v9 }
 0x400   : > { %5622 = vmatmul.mubr.f32.gmra.mxu0 %v11467_v17 }
 0x401   : > { %5727 = vmatmul.mubr.f32.gmra.mxu1 %v11465_v19  ;;  %5627 = vmatprep.mubr.f32.mxu0 %v11390_v9 }
 0x402   : > { %5732 = vmatprep.mubr.f32.mxu1 %v11390_v9 }
 0x404   : > { %5629 = vmatmul.mubr.f32.gmra.mxu0 %v11468_v54 }
 0x405   : > { %5734 = vmatmul.mubr.f32.gmra.mxu1 %v11466_v62  ;;  %5866 = vmatprep.mubr.f32.mxu0 %v11390_v9 }
 0x406   : > { %5739 = vmatprep.mubr.f32.mxu1 %v11390_v9 }
 0x409   : > { %5741 = vmatmul.mubr.f32.gmra.mxu1 %v11467_v17 }
 0x40a   : > { %5746 = vmatprep.mubr.f32.mxu1 %v11390_v9 }
 0x40d   : > { %5748 = vmatmul.mubr.f32.gmra.mxu1 %v11468_v54 }
 0x40e   : > { %6002 = vmatprep.mubr.f32.mxu1 %v11390_v9 }
 0x426   : > { %v4157_v53 = vpop.f32.mrf.mxu0 }
 0x427   : > { %v4158_v23 = vadd.f32 %v4157_v53, %v10283_v41 }
 0x428   : > { %v4159_v43 = vpop.f32.mrf.mxu0 }
 0x429   : > { %v4160_v31 = vadd.f32 %v4159_v43, %v10283_v41 }
 0x42b   : > { %v4168_v63 = vpop.f32.mrf.mxu0 }
 0x42c   : > { %v4169_v26 = vadd.f32 %v4168_v63, %v10293_v22 }
 0x42d   : > { %v4170_v36 = vpop.f32.mrf.mxu0 }
 0x42e   : > { %v4171_v5 = vadd.f32 %v4170_v36, %v10293_v22 }
 0x430   : > { %v10286_v20 = vpop.f32.mrf.mxu0  ;;  %v4344_v0 = vpop.f32.mrf.mxu1 }
 0x431   : > { %v10289_v19 = vadd.f32 %v4344_v0, %v4158_v23 }
 0x432   : > { %v4181_v18 = vpop.f32.mrf.mxu0  ;;  %v4346_v30 = vpop.f32.mrf.mxu1 }
 0x433   : > { %v10291_v51 = vadd.f32 %v4346_v30, %v4160_v31  ;;  %v4182_v22 = vadd.f32 %v4181_v18, %v10279_v32 }
 0x436   : > { %v4190_v48 = vpop.f32.mrf.mxu0  ;;  %v4351_v62 = vpop.f32.mrf.mxu1 }
 0x437   : > { %v10297_v13 = vadd.f32 %v4351_v62, %v4169_v26  ;;  %v4191_v9 = vadd.f32 %v4190_v48, %v10281_v15 }
 0x438   : > { %v4192_v11 = vpop.f32.mrf.mxu0  ;;  %v4353_v60 = vpop.f32.mrf.mxu1 }
 0x439   : > { %v4354_v24 = vadd.f32 %v4353_v60, %v4171_v5  ;;  %v4180_v60 = vadd.f32 %v10286_v20, %v10279_v32  ;;  %v4193_v41 = vadd.f32 %v4192_v11, %v10281_v15 }
 0x43a   : > { %v4201_v50 = vpop.f32.mrf.mxu0 }
 0x43b   : > { %v4358_v27 = vpop.f32.mrf.mxu1 }
 0x43c   : > { %v4203_v37 = vpop.f32.mrf.mxu0 }
 0x43d   : > { %v4360_v42 = vpop.f32.mrf.mxu1 }
 0x43e   : > { %v4212_v17 = vpop.f32.mrf.mxu0 }
 0x43f   : > { %v4365_v10 = vpop.f32.mrf.mxu1  ;;  %v4213_v20 = vadd.f32 %v4212_v17, %v10277_v61 }
 0x440   : > { %v4214_v2 = vpop.f32.mrf.mxu0 }
 0x441   : > { %v4367_v59 = vpop.f32.mrf.mxu1  ;;  %v4215_v18 = vadd.f32 %v4214_v2, %v10277_v61 }
 0x442   : > { %v4476_v45 = vpop.f32.mrf.mxu0  ;;  %v4368_v11 = vadd.f32 %v4367_v59, %v4193_v41 }
 0x443   : > { %v4372_v40 = vpop.f32.mrf.mxu1 }
 0x444   : > { %v4478_v4 = vpop.f32.mrf.mxu0 }
 0x445   : > { %v4374_v58 = vpop.f32.mrf.mxu1 }
 0x446   : > { %v4484_v12 = vpop.f32.mrf.mxu0 }
 0x447   : > { %v10299_v46 = vpop.f32.mrf.mxu1 }
 0x448   : > { %v4486_v6 = vpop.f32.mrf.mxu0 }
 0x449   : > { %v10301_v54 = vpop.f32.mrf.mxu1 }
 0x44a   : > { %v10303_v8 = vpop.f32.mrf.mxu0 }
 0x44b   : > { %v10305_v21 = vpop.f32.mrf.mxu1 }
 0x44c   : > { %v10307_v3 = vpop.f32.mrf.mxu0 }
 0x44d   : > { %v4604_v1 = vpop.f32.mrf.mxu1 }
 0x450   : > { %v4500_v38 = vpop.f32.mrf.mxu0  ;;  %v10309_v47 = vpop.f32.mrf.mxu1 }
 0x452   : > { %v4502_v25 = vpop.f32.mrf.mxu0  ;;  %v4613_v57 = vpop.f32.mrf.mxu1 }
 0x454   : > { %v4508_v55 = vpop.f32.mrf.mxu0 }
 0x455   : > { %v10311_v16 = vpop.f32.mrf.mxu1 }
 0x456   : > { %v10313_v44 = vpop.f32.mrf.mxu0 }
 0x457   : > { %v10315_v33 = vpop.f32.mrf.mxu1 }
 0x458   : > { %v10317_v28 = vpop.f32.mrf.mxu0 }
 0x459   : > { %11481 = vst [vmem:[#allocation43_spill] sm:$0xff] %v10317_v28  ;;  %v4629_v39 = vpop.f32.mrf.mxu1  ;;  %v4487_v28 = vadd.f32 %v4486_v6, %v4354_v24  ;;  %v4380_v24 = vadd.f32 %v10299_v46, %v4213_v20 }
 0x45a   : > { %v10319_v49 = vpop.f32.mrf.mxu0 }
 0x45b   : > { %11482 = vst [vmem:[#allocation52_spill] sm:$0xff] %v10319_v49  ;;  %v4631_v14 = vpop.f32.mrf.mxu1  ;;  %v4204_v49 = vadd.f32 %v4203_v37, %v10275_v7  ;;  %v4503_v37 = vadd.f32 %v4502_v25, %v4368_v11 }
 0x45c   : > { %v10321_v52 = vpop.f32.mrf.mxu0 }
 0x45d   : > { %11483 = vst [vmem:[#allocation17_spill] sm:$0xff] %v10321_v52  ;;  %v4638_v56 = vpop.f32.mrf.mxu1 }
 0x45e   : > { %v4757_v29 = vpop.f32.mrf.mxu0 }
 0x45f   : > { %v10323_v35 = vpop.f32.mrf.mxu1 }
 0x460   : > { %11484 = vst [vmem:[#allocation42_spill] sm:$0xff] %v10323_v35  ;;  %v10325_v34 = vpop.f32.mrf.mxu0 }
 0x461   : > { %11485 = vst [vmem:[#allocation48_spill] sm:$0xff] %v10325_v34  ;;  %v10327_v53 = vpop.f32.mrf.mxu1  ;;  %v4359_v34 = vadd.f32 %v4358_v27, %v4180_v60  ;;  %v4375_v27 = vadd.f32 %v4374_v58, %v4204_v49  ;;  %v11493_v49 = vld [vmem:[#allocation43_spill] sm:$0xff] }
 0x462   : > { %11486 = vst [vmem:[#allocation47_spill] sm:$0xff] %v10327_v53  ;;  %v4764_v43 = vpop.f32.mrf.mxu0  ;;  %v4366_v53 = vadd.f32 %v4365_v10, %v4191_v9  ;;  %v4614_v9 = vadd.f32 %v4613_v57, %v4487_v28 }
 0x463   : > { %v10329_v63 = vpop.f32.mrf.mxu1 }
 0x464   : > { %11487 = vst [vmem:[#allocation39_spill] sm:$0xff] %v10329_v63  ;;  %v10331_v36 = vpop.f32.mrf.mxu0  ;;  %v4501_v32 = vadd.f32 %v4500_v38, %v4366_v53  ;;  %v4765_v41 = vadd.f32 %v4764_v43, %v4614_v9  ;;  %v11495_v53 = vld [vmem:[#allocation52_spill] sm:$0xff]  ;;  %v11500_v20 = vld [vmem:[#allocation17_spill] sm:$0xff] }
 0x465   : > { %11488 = vst [vmem:[#allocation36_spill] sm:$0xff] %v10331_v36  ;;  %v10333_v23 = vpop.f32.mrf.mxu1  ;;  %v4361_v36 = vadd.f32 %v4360_v42, %v4182_v22 }
 0x466   : > { %11489 = vst [vmem:[#allocation22_spill] sm:$0xff] %v10333_v23  ;;  %v4771_v0 = vpop.f32.mrf.mxu0  ;;  %v4202_v23 = vadd.f32 %v4201_v50, %v10275_v7  ;;  %v4477_v50 = vadd.f32 %v4476_v45, %v10289_v19  ;;  %v4630_v22 = vadd.f32 %v4629_v39, %v4501_v32 }
 0x467   : > { %v4876_v31 = vpop.f32.mrf.mxu1  ;;  %v4495_v59 = vadd.f32 %v10307_v3, %v4361_v36  ;;  %v11492_v57 = vld [vmem:[#allocation42_spill] sm:$0xff] }
 0x468   : > { %v4776_v30 = vpop.f32.mrf.mxu0 }
 0x469   : > { %v10335_v26 = vpop.f32.mrf.mxu1  ;;  %v4777_v19 = vadd.f32 %v4776_v30, %v4630_v22  ;;  %v4623_v46 = vadd.f32 %v10315_v33, %v4495_v59 }
 0x46a   : > { %11490 = vst [vmem:[#allocation25_spill] sm:$0xff] %v10335_v26  ;;  %v4778_v62 = vpop.f32.mrf.mxu0  ;;  %v4479_v26 = vadd.f32 %v4478_v4, %v10291_v51  ;;  %v4485_v51 = vadd.f32 %v4484_v12, %v10297_v13  ;;  %v4382_v4 = vadd.f32 %v10301_v54, %v4215_v18  ;;  %v4511_v13 = vadd.f32 %v10313_v44, %v4375_v27 }
 0x46b   : > { %v4883_v5 = vpop.f32.mrf.mxu1  ;;  %v4603_v12 = vadd.f32 %v10305_v21, %v4477_v50 }
 0x46c   : > { %v4605_v15 = vadd.f32 %v4604_v1, %v4479_v26  ;;  %v4493_v1 = vadd.f32 %v10303_v8, %v4359_v34  ;;  %v4612_v25 = vadd.f32 %v10309_v47, %v4485_v51  ;;  %v4517_v8 = vadd.f32 %v11493_v49, %v4380_v24  ;;  %v11496_v47 = vld [vmem:[#allocation47_spill] sm:$0xff] }
 0x46d   : > { %v4783_v52 = vpop.f32.mrf.mxu0  ;;  %v10342_v63 = vpop.f32.mrf.mxu1  ;;  %v4519_v43 = vadd.f32 %v11495_v53, %v4382_v4 }
 0x46e   : > { %11491 = vst [vmem:[#allocation58_spill] sm:$0xff] %v10342_v63  ;;  %v4373_v63 = vadd.f32 %v4372_v40, %v4202_v23  ;;  %v4758_v42 = vadd.f32 %v4757_v29, %v4605_v15  ;;  %v4632_v40 = vadd.f32 %v4631_v14, %v4503_v37  ;;  %v4884_v15 = vadd.f32 %v4883_v5, %v4765_v41  ;;  %v11494_v29 = vld [vmem:[#allocation36_spill] sm:$0xff] }
 0x46f   : > { %v4785_v48 = vpop.f32.mrf.mxu0  ;;  %v4890_v35 = vpop.f32.mrf.mxu1  ;;  %v4621_v3 = vadd.f32 %v10311_v16, %v4493_v1  ;;  %v4772_v14 = vadd.f32 %v4771_v0, %v4623_v46  ;;  %v11497_v23 = vld [vmem:[#allocation48_spill] sm:$0xff]  ;;  %v11504_v46 = vld [vmem:[#allocation55_spill] sm:$0xff] }
 0x470   : > { %v4509_v2 = vadd.f32 %v4508_v55, %v4373_v63  ;;  %v4877_v6 = vadd.f32 %v4876_v31, %v4758_v42  ;;  %v4779_v54 = vadd.f32 %v4778_v62, %v4632_v40  ;;  %v4641_v55 = vadd.f32 %v11492_v57, %v4511_v13  ;;  %v11499_v62 = vld [vmem:[#allocation39_spill] sm:$0xff] }
 0x471   : > { %v4895_v10 = vpop.f32.mrf.mxu1  ;;  %v4770_v21 = vadd.f32 %v11494_v29, %v4621_v3  ;;  %v4648_v63 = vadd.f32 %v11496_v47, %v4517_v8  ;;  %v4891_v16 = vadd.f32 %v4890_v35, %v4772_v14  ;;  %v4763_v31 = vadd.f32 %v11497_v23, %v4612_v25  ;;  %v11501_v18 = vld [vmem:[#allocation25_spill] sm:$0xff] }
 0x472   : > { %v4790_v17 = vpop.f32.mrf.mxu0  ;;  %v4639_v32 = vadd.f32 %v4638_v56, %v4509_v2  ;;  %v4896_v38 = vadd.f32 %v4895_v10, %v4777_v19  ;;  %7332 = vtanh.f32 %v4877_v6  ;;  %v4786_v33 = vadd.f32 %v4785_v48, %v4641_v55  ;;  %v11502_v10 = vld [vmem:[#allocation22_spill] sm:$0xff] }
 0x473   : > { %v4897_v58 = vpop.f32.mrf.mxu1  ;;  %7334 = vtanh.f32 %v4884_v15  ;;  %v4650_v5 = vadd.f32 %v11499_v62, %v4519_v43  ;;  %v4791_v60 = vadd.f32 %v4790_v17, %v4648_v63  ;;  %v4756_v48 = vadd.f32 %v11500_v20, %v4603_v12  ;;  %v11503_v17 = vld [vmem:[#allocation15_spill] sm:$0xff]  ;;  %v7120_v2 = vld [vmem:[%s10976_s0 + $0xc0] sm:$0xf] }
 0x474   : > { %v4792_v45 = vpop.f32.mrf.mxu0  ;;  %v4784_v28 = vadd.f32 %v4783_v52, %v4639_v32  ;;  %v4898_v44 = vadd.f32 %v4897_v58, %v4779_v54  ;;  %7336 = vtanh.f32 %v4896_v38  ;;  %v4882_v11 = vadd.f32 %v11501_v18, %v4763_v31 }
 0x475   : > { %v11498_v30 = vld [vmem:[#allocation58_spill] sm:$0xff]  ;;  %v4793_v35 = vadd.f32 %v4792_v45, %v4650_v5  ;;  %v4875_v51 = vadd.f32 %v11502_v10, %v4756_v48  ;;  %v5788_v13 = vsel %vm523_vm0, %v7120_v2, 0 }
 0x476   : > { %v4889_v0 = vadd.f32 %v11498_v30, %v4770_v21  ;;  %v10390_v25 = vand.u32 4294901760, %v5788_v13 }
 0x477   : > { %v4997_v39 = vpop.f32.mrf.mxu0 }
 0x478   : > { %v4902_v56 = vpop.f32.mrf.mxu1  ;;  %v4998_v24 = vadd.f32 %v4997_v39, %v11503_v17  ;;  %v10408_v53 = vsub.f32 %v5788_v13, %v10390_v25 }
 0x479   : > { %v4903_v34 = vadd.f32 %v4902_v56, %v4784_v28  ;;  %v4999_v52 = vpop.f32.mrf.mxu0 }
 0x47a   : > { %v4904_v36 = vpop.f32.mrf.mxu1  ;;  %v5000_v41 = vadd.f32 %v4999_v52, %v11503_v17  ;;  %11506 = vst [vmem:[#allocation49_spill] sm:$0xff] %v10408_v53 }
 0x47b   : > { %7338 = vtanh.f32 %v4903_v34  ;;  %v4905_v26 = vadd.f32 %v4904_v36, %v4786_v33 }
 0x47c   : > { %7340 = vtanh.f32 %v4898_v44 }
 0x47d   : > { %7342 = vtanh.f32 %v4905_v26  ;;  %v4909_v50 = vpop.f32.mrf.mxu1 }
 0x47e   : > { %7344 = vtanh.f32 %v4891_v16  ;;  %v4910_v27 = vadd.f32 %v4909_v50, %v4791_v60  ;;  %v5008_v9 = vpop.f32.mrf.mxu0  ;;  %v10446_v50 = vand.u32 4294901760, %v10408_v53 }
 0x47f   : > { %7346 = vtanh.f32 %v4889_v0  ;;  %v4911_v37 = vpop.f32.mrf.mxu1  ;;  %v10380_v6 = vpop.eup %7332  ;;  %v5009_v54 = vadd.f32 %v5008_v9, %v11504_v46 }
 0x480   : > { %7348 = vtanh.f32 %v4910_v27  ;;  %v4912_v22 = vadd.f32 %v4911_v37, %v4793_v35  ;;  %v5010_v42 = vpop.f32.mrf.mxu0  ;;  %v7335_v45 = vpop.eup %7334 }
 0x481   : > { %7350 = vtanh.f32 %v4882_v11  ;;  %v7337_v32 = vpop.eup %7336  ;;  %v5011_v28 = vadd.f32 %v5010_v42, %v11504_v46  ;;  %v10432_v60 = vand.u32 4294901760, %v7335_v45  ;;  %v10443_v11 = vand.u32 4294901760, %v10380_v6 }
 0x482   : > { %7352 = vtanh.f32 %v4912_v22  ;;  %v10405_v34 = vand.u32 4294901760, %v7337_v32 }
 0x483   : > { %7354 = vtanh.f32 %v4875_v51  ;;  %v5184_v4 = vpop.f32.mrf.mxu1 }
 0x484   : > { %v10376_v59 = vpop.f32.mrf.mxu0  ;;  %v10378_v40 = vadd.f32 %v5184_v4, %v4998_v24  ;;  %v10449_v35 = vsub.f32 %v7337_v32, %v10405_v34 }
 0x485   : > { %v5186_v19 = vpop.f32.mrf.mxu1 }
 0x486   : > { %v10382_v58 = vpop.f32.mrf.mxu0  ;;  %v10384_v1 = vadd.f32 %v5186_v19, %v5000_v41  ;;  %v10477_v19 = vsub.f32 %v7335_v45, %v10432_v60 }
 0x488   : > { %v7339_v15 = vpop.eup %7338 }
 0x489   : > { %v7341_v12 = vpop.eup %7340  ;;  %v10388_v38 = vpop.f32.mrf.mxu0  ;;  %v10399_v14 = vand.u32 4294901760, %v7339_v15 }
 0x48a   : > { %v7343_v3 = vpop.eup %7342  ;;  %v5191_v57 = vpop.f32.mrf.mxu1  ;;  %v10401_v29 = vand.u32 4294901760, %v7341_v12 }
 0x48b   : > { %v7345_v55 = vpop.eup %7344  ;;  %v10393_v39 = vadd.f32 %v5191_v57, %v5009_v54  ;;  %v10395_v49 = vpop.f32.mrf.mxu0  ;;  %v10397_v8 = vand.u32 4294901760, %v7343_v3  ;;  %v10424_v30 = vsub.f32 %v7339_v15, %v10399_v14  ;;  %v5870_v15 = vsub.f32 %v10408_v53, %v10446_v50 }
 0x48c   : > { %v7347_v44 = vpop.eup %7346  ;;  %v5193_v56 = vpop.f32.mrf.mxu1  ;;  %v10416_v36 = vand.u32 4294901760, %v7345_v55  ;;  %v10438_v48 = vsub.f32 %v7341_v12, %v10401_v29  ;;  %v11114_v12 = vand.u32 4294901760, %v10449_v35 }
 0x48d   : > { %11505 = vst [vmem:[#allocation31_spill] sm:$0xff] %v10393_v39  ;;  %v7349_v21 = vpop.eup %7348  ;;  %v10403_v33 = vadd.f32 %v5193_v56, %v5011_v28  ;;  %v10419_v52 = vsub.f32 %v7343_v3, %v10397_v8  ;;  %v10421_v31 = vand.u32 4294901760, %v7347_v44  ;;  %v11111_v17 = vand.u32 4294901760, %v10424_v30 }
 0x48e   : > { %v7351_v43 = vpop.eup %7350  ;;  %v10410_v47 = vpop.f32.mrf.mxu0  ;;  %v10414_v16 = vand.u32 4294901760, %v7349_v21  ;;  %v10460_v37 = vsub.f32 %v7345_v55, %v10416_v36  ;;  %v11113_v41 = vand.u32 4294901760, %v10438_v48  ;;  %v10503_v55 = vsub.f32 %v10380_v6, %v10443_v11 }
 0x48f   : > { %v10412_v63 = vpop.f32.mrf.mxu1  ;;  %v7353_v23 = vpop.eup %7352  ;;  %v10440_v18 = vand.u32 4294901760, %v7351_v43  ;;  %v11109_v51 = vand.u32 4294901760, %v10419_v52  ;;  %v10469_v24 = vsub.f32 %v7347_v44, %v10421_v31  ;;  %v5919_v44 = vsub.f32 %v10424_v30, %v11111_v17 }
 0x490   : > { %v7355_v0 = vpop.eup %7354  ;;  %v10426_v26 = vpop.f32.mrf.mxu0  ;;  %v10430_v5 = vand.u32 4294901760, %v7353_v23  ;;  %v10435_v20 = vsub.f32 %v7349_v21, %v10414_v16  ;;  %v11115_v57 = vand.u32 4294901760, %v10460_v37  ;;  %v5925_v6 = vsub.f32 %v10438_v48, %v11113_v41 }
 0x491   : > { %v10428_v62 = vpop.f32.mrf.mxu1  ;;  %v10465_v42 = vand.u32 4294901760, %v7355_v0  ;;  %v10489_v46 = vsub.f32 %v7351_v43, %v10440_v18  ;;  %v5913_v3 = vsub.f32 %v10419_v52, %v11109_v51  ;;  %v10532_v41 = vand.u32 4294901760, %v5870_v15 }
 0x492   : > { %v10451_v27 = vpop.f32.mrf.mxu0  ;;  %5811 = vmatprep.subr.mxu0 %v10430_v5  ;;  %v10455_v9 = vsub.f32 %v7353_v23, %v10430_v5  ;;  %v11110_v10 = vand.u32 4294901760, %v10435_v20  ;;  %v5937_v51 = vsub.f32 %v10460_v37, %v11115_v57  ;;  %v11512_v57 = vand.u32 4294901760, %v10477_v19 }
 0x493   : > { %v10462_v22 = vpop.f32.mrf.mxu1  ;;  %5813 = vmatpush1.msra.mxu0 %v10414_v16  ;;  %v10513_v21 = vsub.f32 %v7355_v0, %v10465_v42  ;;  %v5931_v0 = vsub.f32 %v10449_v35, %v11114_v12  ;;  %11509 = vst [vmem:[#allocation19_spill] sm:$0xff] %v10532_v41  ;;  %v5920_v12 = vand.u32 4294901760, %v5919_v44 }
 0x494   : > { %v10471_v4 = vpop.f32.mrf.mxu0  ;;  %5815 = vmatprep.subr.mxu0 %v10397_v8  ;;  %v11112_v2 = vand.u32 4294901760, %v10455_v9  ;;  %v5907_v32 = vsub.f32 %v10435_v20, %v11110_v10 }
 0x495   : > { %v10479_v13 = vpop.f32.mrf.mxu1  ;;  %5817 = vmatpush1.msra.mxu0 %v10399_v14 }
 0x496   : > { %v10491_v54 = vpop.f32.mrf.mxu0  ;;  %5819 = vmatprep.subr.mxu0 %v10401_v29  ;;  %v5901_v45 = vsub.f32 %v10455_v9, %v11112_v2  ;;  %v5908_v17 = vand.u32 4294901760, %v5907_v32  ;;  %v11511_v2 = vand.u32 4294901760, %v10469_v24  ;;  %v5949_v32 = vsub.f32 %v10477_v19, %v11512_v57 }
 0x497   : > { %v10505_v28 = vpop.f32.mrf.mxu1  ;;  %5821 = vmatpush1.msra.mxu0 %v10405_v34 }
 0x498   : > { %v10515_v43 = vpop.f32.mrf.mxu0  ;;  %5823 = vmatprep.subr.mxu0 %v10416_v36  ;;  %v5902_v23 = vand.u32 4294901760, %v5901_v45  ;;  %v5914_v45 = vand.u32 4294901760, %v5913_v3 }
 0x499   : > { %v10522_v10 = vpop.f32.mrf.mxu1  ;;  %5825 = vmatpush1.msra.mxu0 %v10421_v31 }
 0x49a   : > { %11507 = vst [vmem:[#allocation18_spill] sm:$0xff] %v10522_v10  ;;  %v10529_v56 = vpop.f32.mrf.mxu0  ;;  %5827 = vmatprep.subr.mxu0 %v10432_v60  ;;  %5903 = vmatprep.subr.mxu1 %v5902_v23  ;;  %v5926_v23 = vand.u32 4294901760, %v5925_v6  ;;  %v5938_v6 = vand.u32 4294901760, %v5937_v51  ;;  %v5950_v51 = vand.u32 4294901760, %v5949_v32 }
 0x49b   : > { %11508 = vst [vmem:[#allocation54_spill] sm:$0xff] %v10529_v56  ;;  %v10538_v39 = vpop.f32.mrf.mxu1  ;;  %5829 = vmatpush1.msra.mxu0 %v10440_v18  ;;  %5909 = vmatpush1.msra.mxu1 %v5908_v17  ;;  %v5943_v56 = vsub.f32 %v10469_v24, %v11511_v2  ;;  %v5932_v17 = vand.u32 4294901760, %v5931_v0  ;;  %v11514_v2 = vand.u32 4294901760, %v10489_v46  ;;  %v11517_v0 = vand.u32 4294901760, %v10513_v21 }
 0x49c   : > { %11510 = vst [vmem:[#allocation40_spill] sm:$0xff] %v10538_v39  ;;  %v10545_v15 = vpop.f32.mrf.mxu0  ;;  %5831 = vmatprep.subr.mxu0 %v10443_v11  ;;  %5915 = vmatprep.subr.mxu1 %v5914_v45  ;;  %v11515_v45 = vand.u32 4294901760, %v10503_v55 }
 0x49d   : > { %v10551_v39 = vpop.f32.mrf.mxu1  ;;  %5833 = vmatpush1.msra.mxu0 %v10465_v42  ;;  %5921 = vmatpush1.msra.mxu1 %v5920_v12  ;;  %v5955_v44 = vsub.f32 %v10489_v46, %v11514_v2  ;;  %v5944_v12 = vand.u32 4294901760, %v5943_v56  ;;  %v5967_v2 = vsub.f32 %v10513_v21, %v11517_v0 }
 0x49e   : > { %11513 = vst [vmem:[#allocation53_spill] sm:$0xff] %v10551_v39  ;;  %v10557_v3 = vpop.f32.mrf.mxu0  ;;  %5872 = vmatmul.mubr.f32.vlgmr.msra.gmra.mxu0 %v10532_v41  ;;  %5927 = vmatprep.subr.mxu1 %v5926_v23  ;;  %v5961_v57 = vsub.f32 %v10503_v55, %v11515_v45 }
 0x49f   : > { %v10563_v10 = vpop.f32.mrf.mxu1  ;;  %6032 = vmatprep.subr.mxu0 %v10455_v9  ;;  %5933 = vmatpush1.msra.mxu1 %v5932_v17  ;;  %v5956_v45 = vand.u32 4294901760, %v5955_v44  ;;  %v5968_v17 = vand.u32 4294901760, %v5967_v2  ;;  %v11519_v2 = vmov 0.0  }
 0x4a0   : > { %11516 = vst [vmem:[#allocation57_spill] sm:$0xff] %v10563_v10  ;;  %v10569_v39 = vpop.f32.mrf.mxu0  ;;  %6035 = vmatpush1.msra.mxu0 %v10435_v20  ;;  %5939 = vmatprep.subr.mxu1 %v5938_v6  ;;  %v5962_v56 = vand.u32 4294901760, %v5961_v57  ;;  %v11522_v10 = vand.u32 4294901760, %v10435_v20  ;;  %v11526_v20 = vand.u32 4294901760, %v10438_v48 }
 0x4a1   : > { %v10572_v23 = vpop.f32.mrf.mxu1  ;;  %6038 = vmatprep.subr.mxu0 %v10419_v52  ;;  %5945 = vmatpush1.msra.mxu1 %v5944_v12 }
 0x4a2   : > { %6041 = vmatpush1.msra.mxu0 %v10424_v30  ;;  %5951 = vmatprep.subr.mxu1 %v5950_v51 }
 0x4a3   : > { %6044 = vmatprep.subr.mxu0 %v10438_v48  ;;  %5957 = vmatpush1.msra.mxu1 %v5956_v45 }
 0x4a4   : > { %v10577_v0 = vpop.f32.mrf.mxu0  ;;  %v10579_v41 = vpop.f32.mrf.mxu1  ;;  %6047 = vmatpush1.msra.mxu0 %v10449_v35  ;;  %5963 = vmatprep.subr.mxu1 %v5962_v56  ;;  %v11521_v56 = vand.u32 4294901760, %v10455_v9  ;;  %v11524_v9 = vand.u32 4294901760, %v10424_v30  ;;  %v11528_v30 = vand.u32 4294901760, %v10460_v37 }
 0x4a5   : > { %6050 = vmatprep.subr.mxu0 %v10460_v37  ;;  %5969 = vmatpush1.msra.mxu1 %v5968_v17 }
 0x4a6   : > { %v10583_v32 = vpop.f32.mrf.mxu0  ;;  %v10585_v44 = vpop.f32.mrf.mxu1  ;;  %6053 = vmatpush1.msra.mxu0 %v10469_v24  ;;  %6004 = vmatmul.mubr.f32.vlgmr.msra.gmra.mxu1 %v10390_v25 }
 0x4a7   : > { %6056 = vmatprep.subr.mxu0 %v10477_v19  ;;  %6128 = vmatprep.subr.mxu1 %v10430_v5 }
 0x4a8   : > { %v10591_v6 = vpop.f32.mrf.mxu0  ;;  %6059 = vmatpush1.msra.mxu0 %v10489_v46  ;;  %6130 = vmatpush1.msra.mxu1 %v10414_v16 }
 0x4a9   : > { %v10595_v57 = vpop.f32.mrf.mxu1  ;;  %6062 = vmatprep.subr.mxu0 %v10503_v55  ;;  %6132 = vmatprep.subr.mxu1 %v10397_v8 }
 0x4aa   : > { %11518 = vst [vmem:[#allocation26_spill] sm:$0xff] %v10595_v57  ;;  %v10599_v12 = vpop.f32.mrf.mxu0  ;;  %6065 = vmatpush1.msra.mxu0 %v10513_v21  ;;  %6098 = vmatprep.mubr.f32.mxu0 %v11519_v2 }
 0x4ab   : > { %v10603_v51 = vpop.f32.mrf.mxu1  ;;  %6134 = vmatpush1.msra.mxu1 %v10399_v14  ;;  %6101 = vmatmul.mubr.f32.vlgmr.msra.gmra.mxu0 %v10408_v53  ;;  %v11523_v53 = vand.u32 4294901760, %v10419_v52 }
 0x4ac   : > { %v10607_v45 = vpop.f32.mrf.mxu0  ;;  %6136 = vmatprep.subr.mxu1 %v10401_v29  ;;  %6216 = vmatprep.subr.mxu0 %v11521_v56 }
 0x4ad   : > { %11520 = vst [vmem:[#allocation38_spill] sm:$0xff] %v10607_v45  ;;  %v10612_v17 = vpop.f32.mrf.mxu1  ;;  %6138 = vmatpush1.msra.mxu1 %v10405_v34  ;;  %6220 = vmatpush1.msra.mxu0 %v11522_v10 }
 0x4ae   : > { %v10617_v57 = vpop.f32.mrf.mxu0  ;;  %6140 = vmatprep.subr.mxu1 %v10416_v36  ;;  %6224 = vmatprep.subr.mxu0 %v11523_v53  ;;  %v11527_v53 = vand.u32 4294901760, %v10449_v35 }
 0x4af   : > { %v10622_v45 = vpop.f32.mrf.mxu1  ;;  %6142 = vmatpush1.msra.mxu1 %v10421_v31  ;;  %6228 = vmatpush1.msra.mxu0 %v11524_v9 }
 0x4b0   : > { %v10627_v56 = vpop.f32.mrf.mxu0  ;;  %6144 = vmatprep.subr.mxu1 %v10432_v60  ;;  %6232 = vmatprep.subr.mxu0 %v11526_v20  ;;  %v11529_v20 = vand.u32 4294901760, %v10469_v24  ;;  %v11532_v24 = vand.u32 4294901760, %v10503_v55 }
 0x4b1   : > { %11525 = vst [vmem:[#allocation63_spill] sm:$0xff] %v10627_v56  ;;  %v10632_v10 = vpop.f32.mrf.mxu1  ;;  %6146 = vmatpush1.msra.mxu1 %v10440_v18  ;;  %6236 = vmatpush1.msra.mxu0 %v11527_v53  ;;  %v11530_v53 = vand.u32 4294901760, %v10477_v19  ;;  %v11533_v19 = vand.u32 4294901760, %v10513_v21 }
 0x4b2   : > { %v10637_v52 = vpop.f32.mrf.mxu0  ;;  %6148 = vmatprep.subr.mxu1 %v10443_v11  ;;  %6240 = vmatprep.subr.mxu0 %v11528_v30  ;;  %v11531_v30 = vand.u32 4294901760, %v10489_v46 }
 0x4b3   : > { %v10642_v9 = vpop.f32.mrf.mxu1  ;;  %6150 = vmatpush1.msra.mxu1 %v10465_v42  ;;  %6183 = vmatprep.mubr.f32.mxu1 %v11519_v2 }
 0x4b4   : > { %v10646_v48 = vpop.f32.mrf.mxu0  ;;  %6244 = vmatpush1.msra.mxu0 %v11529_v20  ;;  %6187 = vmatmul.mubr.f32.vlgmr.msra.gmra.mxu1 %v10446_v50 }
 0x4b5   : > { %v10651_v35 = vpop.f32.mrf.mxu1  ;;  %6248 = vmatprep.subr.mxu0 %v11530_v53  ;;  %6322 = vmatprep.subr.mxu1 %v10430_v5  ;;  %v11535_v53 = vld [vmem:[#allocation11_spill] sm:$0xff] }
 0x4b6   : > { %v5604_v37 = vpop.f32.mrf.mxu0  ;;  %6252 = vmatpush1.msra.mxu0 %v11531_v30  ;;  %6324 = vmatpush1.msra.mxu1 %v10414_v16  ;;  %v5031_v30 = vadd.f32 %v10388_v38, %v11535_v53  ;;  %v5044_v38 = vadd.f32 %v10426_v26, %v10275_v7 }
 0x4b7   : > { %v10659_v56 = vpop.f32.mrf.mxu1  ;;  %6256 = vmatprep.subr.mxu0 %v11532_v24  ;;  %6326 = vmatprep.subr.mxu1 %v10397_v8  ;;  %v11534_v8 = vld [vmem:[#allocation33_spill] sm:$0xff]  ;;  %v5042_v24 = vadd.f32 %v10410_v47, %v10275_v7  ;;  %v5055_v7 = vadd.f32 %v10471_v4, %v10277_v61 }
 0x4b8   : > { %v10664_v20 = vpop.f32.mrf.mxu0  ;;  %6260 = vmatpush1.msra.mxu0 %v11533_v19  ;;  %6293 = vmatprep.mubr.f32.mxu0 %v11519_v2  ;;  %v5022_v55 = vadd.f32 %v10382_v58, %v11534_v8 }
 0x4b9   : > { %v10669_v5 = vpop.f32.mrf.mxu1  ;;  %6328 = vmatpush1.msra.mxu1 %v10399_v14  ;;  %6295 = vmatmul.mubr.f32.vlgmr.msra.gmra.mxu0 %v10390_v25  ;;  %v5020_v14 = vadd.f32 %v10376_v59, %v11534_v8  ;;  %v5213_v26 = vadd.f32 %v10505_v28, %v5042_v24  ;;  %v11538_v28 = vld [vmem:[#allocation31_spill] sm:$0xff] }
 0x4ba   : > { %v5611_v16 = vpop.f32.mrf.mxu0  ;;  %6330 = vmatprep.subr.mxu1 %v10401_v29  ;;  %6377 = vmatprep.mubr.f32.mxu1 %v11519_v2  ;;  %v5201_v58 = vadd.f32 %v10428_v62, %v5022_v55  ;;  %v5206_v62 = vadd.f32 %v10462_v22, %v5031_v30  ;;  %v11536_v22 = vld [vmem:[#allocation18_spill] sm:$0xff] }
 0x4bb   : > { %v5716_v46 = vpop.f32.mrf.mxu1  ;;  %6332 = vmatpush1.msra.mxu1 %v10405_v34  ;;  %6461 = vmatprep.mubr.f32.mxu0 %v11519_v2  ;;  %v5033_v34 = vadd.f32 %v10395_v49, %v11535_v53  ;;  %v5199_v59 = vadd.f32 %v10412_v63, %v5020_v14  ;;  %v5327_v49 = vadd.f32 %v10545_v15, %v10403_v33  ;;  %v11540_v14 = vld [vmem:[#allocation53_spill] sm:$0xff] }
 0x4bc   : > { %v5616_v21 = vpop.f32.mrf.mxu0  ;;  %6334 = vmatprep.subr.mxu1 %v10416_v36  ;;  %v5319_v36 = vadd.f32 %v10515_v43, %v10384_v1  ;;  %v5317_v33 = vadd.f32 %v10491_v54, %v10378_v40  ;;  %v5341_v54 = vadd.f32 %v10577_v0, %v5206_v62  ;;  %v5222_v53 = vadd.f32 %v11540_v14, %v5055_v7 }
 0x4bd   : > { %v10684_v29 = vpop.f32.mrf.mxu1  ;;  %6336 = vmatpush1.msra.mxu1 %v10421_v31  ;;  %v5053_v31 = vadd.f32 %v10451_v27, %v10277_v61  ;;  %v5208_v1 = vadd.f32 %v10479_v13, %v5033_v34  ;;  %v11537_v61 = vld [vmem:[#allocation40_spill] sm:$0xff]  ;;  %v5333_v30 = vadd.f32 %v10557_v3, %v5199_v59 }
 0x4be   : > { %v5618_v19 = vpop.f32.mrf.mxu0  ;;  %6338 = vmatprep.subr.mxu1 %v10432_v60  ;;  %v5335_v60 = vadd.f32 %v10569_v39, %v5201_v58  ;;  %v5445_v63 = vadd.f32 %v10572_v23, %v5319_v36  ;;  %v5215_v39 = vadd.f32 %v11536_v22, %v5044_v38  ;;  %v11539_v23 = vld [vmem:[#allocation54_spill] sm:$0xff]  ;;  %v5470_v34 = vadd.f32 %v10612_v17, %v5341_v54 }
 0x4bf   : > { %v5723_v47 = vpop.f32.mrf.mxu1  ;;  %6340 = vmatpush1.msra.mxu1 %v10440_v18  ;;  %v5454_v18 = vadd.f32 %v10585_v44, %v5327_v49  ;;  %v5343_v13 = vadd.f32 %v10583_v32, %v5208_v1  ;;  %v5220_v4 = vadd.f32 %v11537_v61, %v5053_v31  ;;  %v5325_v40 = vadd.f32 %v11539_v23, %v11538_v28  ;;  %v11541_v31 = vld [vmem:[#allocation26_spill] sm:$0xff] }
 0x4c0   : > { %v5623_v43 = vpop.f32.mrf.mxu0  ;;  %6342 = vmatprep.subr.mxu1 %v10443_v11  ;;  %v5463_v15 = vadd.f32 %v10603_v51, %v5335_v60  ;;  %v5598_v11 = vadd.f32 %v10637_v52, %v5445_v63  ;;  %v5349_v32 = vadd.f32 %v10591_v6, %v5213_v26  ;;  %v5351_v0 = vadd.f32 %v10599_v12, %v5215_v39  ;;  %v11544_v39 = vld [vmem:[#allocation63_spill] sm:$0xff] }
 0x4c1   : > { %v5728_v27 = vpop.f32.mrf.mxu1  ;;  %6344 = vmatpush1.msra.mxu1 %v10465_v42  ;;  %v5605_v44 = vadd.f32 %v5604_v37, %v5454_v18  ;;  %v5472_v51 = vadd.f32 %v10622_v45, %v5343_v13  ;;  %v5452_v6 = vadd.f32 %v10579_v41, %v5325_v40  ;;  %v5461_v45 = vadd.f32 %v11541_v31, %v5333_v30 }
 0x4c2   : > { %6379 = vmatmul.mubr.f32.vlgmr.msra.gmra.mxu1 %v10390_v25  ;;  %v5625_v8 = vpop.f32.mrf.mxu0  ;;  %v5612_v55 = vadd.f32 %v5611_v16, %v5463_v15  ;;  %v5717_v52 = vadd.f32 %v5716_v46, %v5598_v11  ;;  %v5479_v37 = vadd.f32 %v10632_v10, %v5349_v32  ;;  %v11542_v16 = vld [vmem:[#allocation38_spill] sm:$0xff]  ;;  %v5617_v49 = vadd.f32 %v5616_v21, %v5470_v34  ;;  %v11543_v21 = vld [vmem:[#allocation57_spill] sm:$0xff] }
 0x4c3   : > { %v5730_v42 = vpop.f32.mrf.mxu1  ;;  %6597 = vmatprep.mubr.f32.mxu1 %v11519_v2  ;;  %v5724_v24 = vadd.f32 %v5723_v47, %v5605_v44  ;;  %v5619_v36 = vadd.f32 %v5618_v19, %v5472_v51  ;;  %v5357_v46 = vadd.f32 %v11542_v16, %v5220_v4  ;;  %v5481_v3 = vadd.f32 %v10642_v9, %v5351_v0 }
 0x4c4   : > { %v5731_v38 = vadd.f32 %v5730_v42, %v5612_v55  ;;  %v5630_v62 = vpop.f32.mrf.mxu0  ;;  %7356 = vtanh.f32 %v5717_v52  ;;  %v5624_v17 = vadd.f32 %v5623_v43, %v5479_v37  ;;  %v5359_v12 = vadd.f32 %v10617_v57, %v5222_v53 }
 0x4c5   : > { %v5735_v58 = vpop.f32.mrf.mxu1  ;;  %v5610_v10 = vadd.f32 %v10664_v20, %v5461_v45  ;;  %7358 = vtanh.f32 %v5724_v24  ;;  %v5488_v41 = vadd.f32 %v10651_v35, %v5357_v46  ;;  %v5626_v60 = vadd.f32 %v5625_v8, %v5481_v3 }
 0x4c6   : > { %v5736_v19 = vadd.f32 %v5735_v58, %v5617_v49  ;;  %7360 = vtanh.f32 %v5731_v38  ;;  %v5443_v7 = vadd.f32 %v11543_v21, %v5317_v33  ;;  %v5603_v26 = vadd.f32 %v10646_v48, %v5452_v6  ;;  %v5632_v18 = vpop.f32.mrf.mxu0 }
 0x4c7   : > { %v5737_v1 = vpop.f32.mrf.mxu1  ;;  %v5729_v9 = vadd.f32 %v5728_v27, %v5610_v10  ;;  %v5490_v57 = vadd.f32 %v10659_v56, %v5359_v12  ;;  %v5631_v22 = vadd.f32 %v5630_v62, %v5488_v41 }
 0x4c8   : > { %v5738_v59 = vadd.f32 %v5737_v1, %v5619_v36  ;;  %v5596_v13 = vadd.f32 %v11544_v39, %v5443_v7  ;;  %v5722_v35 = vadd.f32 %v10684_v29, %v5603_v26 }
 0x4c9   : > { %v5742_v47 = vpop.f32.mrf.mxu1  ;;  %v5633_v11 = vadd.f32 %v5632_v18, %v5490_v57 }
 0x4ca   : > { %v5743_v63 = vadd.f32 %v5742_v47, %v5624_v17  ;;  %7362 = vtanh.f32 %v5738_v59  ;;  %v5715_v48 = vadd.f32 %v10669_v5, %v5596_v13 }
 0x4cb   : > { %v5744_v43 = vpop.f32.mrf.mxu1 }
 0x4cc   : > { %7364 = vtanh.f32 %v5743_v63  ;;  %v5745_v20 = vadd.f32 %v5744_v43, %v5626_v60 }
 0x4cd   : > { %7366 = vtanh.f32 %v5736_v19  ;;  %v5749_v15 = vpop.f32.mrf.mxu1 }
 0x4ce   : > { %7368 = vtanh.f32 %v5745_v20  ;;  %v5750_v33 = vadd.f32 %v5749_v15, %v5631_v22 }
 0x4cf   : > { %7370 = vtanh.f32 %v5729_v9  ;;  %v5751_v27 = vpop.f32.mrf.mxu1 }
 0x4d0   : > { %7372 = vtanh.f32 %v5750_v33  ;;  %v5752_v61 = vadd.f32 %v5751_v27, %v5633_v11 }
 0x4d1   : > { %7374 = vtanh.f32 %v5722_v35  ;;  %v7357_v56 = vpop.eup %7356 }
 0x4d2   : > { %7376 = vtanh.f32 %v5752_v61  ;;  %v7359_v4 = vpop.eup %7358  ;;  %v10777_v31 = vand.u32 4294901760, %v7357_v56 }
 0x4d3   : > { %7378 = vtanh.f32 %v5715_v48  ;;  %v7361_v28 = vpop.eup %7360  ;;  %v10767_v37 = vand.u32 4294901760, %v7359_v4 }
 0x4d4   : > { %v10755_v14 = vand.u32 4294901760, %v7361_v28  ;;  %v10821_v7 = vsub.f32 %v7357_v56, %v10777_v31 }
 0x4d5   : > { %v10802_v10 = vsub.f32 %v7359_v4, %v10767_v37 }
 0x4d6   : > { %v10789_v62 = vsub.f32 %v7361_v28, %v10755_v14  ;;  %v6555_v11 = vand.u32 4294901760, %v10821_v7 }
 0x4d7   : > { %v7363_v23 = vpop.eup %7362  ;;  %v6543_v22 = vand.u32 4294901760, %v10802_v10 }
 0x4d8   : > { %v10749_v5 = vand.u32 4294901760, %v7363_v23  ;;  %v6531_v21 = vand.u32 4294901760, %v10789_v62 }
 0x4d9   : > { %v7365_v40 = vpop.eup %7364  ;;  %v6544_v56 = vsub.f32 %v10802_v10, %v6543_v22 }
 0x4da   : > { %v7367_v29 = vpop.eup %7366  ;;  %v10745_v44 = vand.u32 4294901760, %v7365_v40  ;;  %v10773_v38 = vsub.f32 %v7363_v23, %v10749_v5  ;;  %v6532_v15 = vsub.f32 %v10789_v62, %v6531_v21  ;;  %v11545_v23 = vld [vmem:[#allocation19_spill] sm:$0xff] }
 0x4db   : > { %v7369_v54 = vpop.eup %7368  ;;  %v10751_v51 = vand.u32 4294901760, %v7367_v29 }
 0x4dc   : > { %v7371_v8 = vpop.eup %7370  ;;  %v10747_v42 = vand.u32 4294901760, %v7369_v54  ;;  %v10763_v24 = vsub.f32 %v7365_v40, %v10745_v44  ;;  %v6519_v12 = vand.u32 4294901760, %v10773_v38  ;;  %v6533_v40 = vand.u32 4294901760, %v6532_v15 }
 0x4dd   : > { %v7373_v32 = vpop.eup %7372  ;;  %v10760_v34 = vand.u32 4294901760, %v7371_v8  ;;  %v10780_v45 = vsub.f32 %v7367_v29, %v10751_v51  ;;  %v6556_v29 = vsub.f32 %v10821_v7, %v6555_v11 }
 0x4de   : > { %v7375_v55 = vpop.eup %7374  ;;  %v10753_v52 = vand.u32 4294901760, %v7373_v32  ;;  %v10758_v53 = vsub.f32 %v7369_v54, %v10747_v42  ;;  %v6513_v3 = vand.u32 4294901760, %v10763_v24  ;;  %v6520_v57 = vsub.f32 %v10773_v38, %v6519_v12 }
 0x4df   : > { %v7377_v30 = vpop.eup %7376  ;;  %v10775_v6 = vand.u32 4294901760, %v7375_v55  ;;  %v10796_v17 = vsub.f32 %v7371_v8, %v10760_v34  ;;  %v6525_v47 = vand.u32 4294901760, %v10780_v45 }
 0x4e0   : > { %v7379_v58 = vpop.eup %7378  ;;  %v10765_v0 = vand.u32 4294901760, %v7377_v30  ;;  %v10770_v36 = vsub.f32 %v7373_v32, %v10753_v52  ;;  %v6507_v49 = vand.u32 4294901760, %v10758_v53  ;;  %v6514_v26 = vsub.f32 %v10763_v24, %v6513_v3 }
 0x4e1   : > { %v10792_v1 = vand.u32 4294901760, %v7379_v58  ;;  %v10810_v41 = vsub.f32 %v7375_v55, %v10775_v6  ;;  %v6537_v9 = vand.u32 4294901760, %v10796_v17  ;;  %v6526_v39 = vsub.f32 %v10780_v45, %v6525_v47 }
 0x4e2   : > { %6406 = vmatprep.subr.mxu0 %v10765_v0  ;;  %v10784_v16 = vsub.f32 %v7377_v30, %v10765_v0  ;;  %v6501_v46 = vand.u32 4294901760, %v10770_v36  ;;  %v6508_v63 = vsub.f32 %v10758_v53, %v6507_v49  ;;  %v6515_v33 = vand.u32 4294901760, %v6514_v26 }
 0x4e3   : > { %6408 = vmatpush1.msra.mxu0 %v10753_v52  ;;  %v10829_v18 = vsub.f32 %v7379_v58, %v10792_v1  ;;  %v6549_v13 = vand.u32 4294901760, %v10810_v41  ;;  %v6538_v48 = vsub.f32 %v10796_v17, %v6537_v9  ;;  %v6521_v61 = vand.u32 4294901760, %v6520_v57 }
 0x4e4   : > { %6410 = vmatprep.subr.mxu0 %v10747_v42  ;;  %v6495_v59 = vand.u32 4294901760, %v10784_v16  ;;  %v6502_v19 = vsub.f32 %v10770_v36, %v6501_v46  ;;  %v6509_v35 = vand.u32 4294901760, %v6508_v63  ;;  %v6527_v4 = vand.u32 4294901760, %v6526_v39 }
 0x4e5   : > { %6412 = vmatpush1.msra.mxu0 %v10745_v44  ;;  %v6561_v27 = vand.u32 4294901760, %v10829_v18  ;;  %v6550_v28 = vsub.f32 %v10810_v41, %v6549_v13  ;;  %v6539_v54 = vand.u32 4294901760, %v6538_v48  ;;  %v6545_v32 = vand.u32 4294901760, %v6544_v56 }
 0x4e6   : > { %6414 = vmatprep.subr.mxu0 %v10749_v5  ;;  %v6496_v60 = vsub.f32 %v10784_v16, %v6495_v59  ;;  %v6503_v20 = vand.u32 4294901760, %v6502_v19  ;;  %v6557_v30 = vand.u32 4294901760, %v6556_v29  ;;  %v11546_v19 = vld [vmem:[#allocation49_spill] sm:$0xff] }
 0x4e7   : > { %6416 = vmatpush1.msra.mxu0 %v10751_v51  ;;  %v6562_v8 = vsub.f32 %v10829_v18, %v6561_v27  ;;  %v6551_v55 = vand.u32 4294901760, %v6550_v28 }
 0x4e8   : > { %6418 = vmatprep.subr.mxu0 %v10755_v14  ;;  %v6497_v43 = vand.u32 4294901760, %v6496_v60 }
 0x4e9   : > { %6420 = vmatpush1.msra.mxu0 %v10760_v34  ;;  %v6563_v58 = vand.u32 4294901760, %v6562_v8 }
 0x4ea   : > { %6422 = vmatprep.subr.mxu0 %v10767_v37  ;;  %6498 = vmatprep.subr.mxu1 %v6497_v43 }
 0x4eb   : > { %6424 = vmatpush1.msra.mxu0 %v10775_v6  ;;  %6504 = vmatpush1.msra.mxu1 %v6503_v20 }
 0x4ec   : > { %6426 = vmatprep.subr.mxu0 %v10777_v31  ;;  %6510 = vmatprep.subr.mxu1 %v6509_v35 }
 0x4ed   : > { %6428 = vmatpush1.msra.mxu0 %v10792_v1  ;;  %6516 = vmatpush1.msra.mxu1 %v6515_v33 }
 0x4ee   : > { %6467 = vmatmul.mubr.f32.vlgmr.msra.gmra.mxu0 %v11545_v23  ;;  %6522 = vmatprep.subr.mxu1 %v6521_v61 }
 0x4ef   : > { %6627 = vmatprep.subr.mxu0 %v10784_v16  ;;  %6528 = vmatpush1.msra.mxu1 %v6527_v4 }
 0x4f0   : > { %6630 = vmatpush1.msra.mxu0 %v10770_v36  ;;  %6534 = vmatprep.subr.mxu1 %v6533_v40 }
 0x4f1   : > { %6633 = vmatprep.subr.mxu0 %v10758_v53  ;;  %6540 = vmatpush1.msra.mxu1 %v6539_v54 }
 0x4f2   : > { %6636 = vmatpush1.msra.mxu0 %v10763_v24  ;;  %6546 = vmatprep.subr.mxu1 %v6545_v32 }
 0x4f3   : > { %6639 = vmatprep.subr.mxu0 %v10773_v38  ;;  %6552 = vmatpush1.msra.mxu1 %v6551_v55 }
 0x4f4   : > { %6642 = vmatpush1.msra.mxu0 %v10780_v45  ;;  %6558 = vmatprep.subr.mxu1 %v6557_v30 }
 0x4f5   : > { %6645 = vmatprep.subr.mxu0 %v10789_v62  ;;  %6564 = vmatpush1.msra.mxu1 %v6563_v58 }
 0x4f6   : > { %6648 = vmatpush1.msra.mxu0 %v10796_v17  ;;  %6599 = vmatmul.mubr.f32.vlgmr.msra.gmra.mxu1 %v10390_v25 }
 0x4f7   : > { %6651 = vmatprep.subr.mxu0 %v10802_v10  ;;  %6723 = vmatprep.subr.mxu1 %v10765_v0 }
 0x4f8   : > { %6654 = vmatpush1.msra.mxu0 %v10810_v41  ;;  %6725 = vmatpush1.msra.mxu1 %v10753_v52 }
 0x4f9   : > { %6657 = vmatprep.subr.mxu0 %v10821_v7  ;;  %6727 = vmatprep.subr.mxu1 %v10747_v42 }
 0x4fa   : > { %6660 = vmatpush1.msra.mxu0 %v10829_v18  ;;  %6693 = vmatprep.mubr.f32.mxu0 %v11519_v2 }
 0x4fb   : > { %6729 = vmatpush1.msra.mxu1 %v10745_v44  ;;  %6696 = vmatmul.mubr.f32.vlgmr.msra.gmra.mxu0 %v11546_v19 }
 0x4fc   : > { %6731 = vmatprep.subr.mxu1 %v10749_v5  ;;  %6811 = vmatprep.subr.mxu0 %v6495_v59 }
 0x4fd   : > { %6733 = vmatpush1.msra.mxu1 %v10751_v51  ;;  %6815 = vmatpush1.msra.mxu0 %v6501_v46 }
 0x4fe   : > { %6735 = vmatprep.subr.mxu1 %v10755_v14  ;;  %6819 = vmatprep.subr.mxu0 %v6507_v49 }
 0x4ff   : > { %6737 = vmatpush1.msra.mxu1 %v10760_v34  ;;  %6823 = vmatpush1.msra.mxu0 %v6513_v3 }
 0x500   : > { %6739 = vmatprep.subr.mxu1 %v10767_v37  ;;  %6827 = vmatprep.subr.mxu0 %v6519_v12 }
 0x501   : > { %6741 = vmatpush1.msra.mxu1 %v10775_v6  ;;  %6831 = vmatpush1.msra.mxu0 %v6525_v47 }
 0x502   : > { %6743 = vmatprep.subr.mxu1 %v10777_v31  ;;  %6835 = vmatprep.subr.mxu0 %v6531_v21 }
 0x503   : > { %6745 = vmatpush1.msra.mxu1 %v10792_v1  ;;  %6778 = vmatprep.mubr.f32.mxu1 %v11519_v2 }
 0x504   : > { %6839 = vmatpush1.msra.mxu0 %v6537_v9  ;;  %6782 = vmatmul.mubr.f32.vlgmr.msra.gmra.mxu1 %v10446_v50 }
 0x505   : > { %6843 = vmatprep.subr.mxu0 %v6543_v22  ;;  %6917 = vmatprep.subr.mxu1 %v10765_v0 }
 0x506   : > { %6847 = vmatpush1.msra.mxu0 %v6549_v13  ;;  %6919 = vmatpush1.msra.mxu1 %v10753_v52 }
 0x507   : > { %6851 = vmatprep.subr.mxu0 %v6555_v11  ;;  %6921 = vmatprep.subr.mxu1 %v10747_v42 }
 0x508   : > { %6855 = vmatpush1.msra.mxu0 %v6561_v27  ;;  %6888 = vmatprep.mubr.f32.mxu0 %v11519_v2 }
 0x509   : > { %6923 = vmatpush1.msra.mxu1 %v10745_v44  ;;  %6890 = vmatmul.mubr.f32.vlgmr.msra.gmra.mxu0 %v10390_v25 }
 0x50a   : > { %6925 = vmatprep.subr.mxu1 %v10749_v5  ;;  %6972 = vmatprep.mubr.f32.mxu1 %v11519_v2 }
 0x50b   : > { %6927 = vmatpush1.msra.mxu1 %v10751_v51  ;;  %v5785_v51 = vpop.permute.xlu0 %5784 }
 0x50c   : > { %6929 = vmatprep.subr.mxu1 %v10755_v14 }
 0x50d   : > { %6931 = vmatpush1.msra.mxu1 %v10760_v34 }
 0x50e   : > { %6933 = vmatprep.subr.mxu1 %v10767_v37 }
 0x50f   : > { %6935 = vmatpush1.msra.mxu1 %v10775_v6 }
 0x510   : > { %6937 = vmatprep.subr.mxu1 %v10777_v31 }
 0x511   : > { %6939 = vmatpush1.msra.mxu1 %v10792_v1 }
 0x512   : > { %6974 = vmatmul.mubr.f32.vlgmr.msra.gmra.mxu1 %v10390_v25 }
 0x55e   : > { %v5873_v50 = vpop.f32.mrf.mxu0 }
 0x55f   : > { %v5874_v53 = vadd.f32 %v5873_v50, %v5785_v51 }
 0x560   : > { %v5875_v44 = vpop.f32.mrf.mxu0 }
 0x561   : > { %v5876_v34 = vadd.f32 %v5875_v44, %v5785_v51 }
 0x566   : > { %v6005_v42 = vpop.f32.mrf.mxu1 }
 0x567   : > { %v6006_v0 = vadd.f32 %v6005_v42, %v5874_v53 }
 0x568   : > { %v6007_v5 = vpop.f32.mrf.mxu1 }
 0x569   : > { %v6008_v37 = vadd.f32 %v6007_v5, %v5876_v34 }
 0x56b   : > { %v6102_v2 = vpop.f32.mrf.mxu0 }
 0x56c   : > { %v6103_v38 = vadd.f32 %v6102_v2, %v6006_v0 }
 0x56d   : > { %v6104_v52 = vpop.f32.mrf.mxu0 }
 0x56e   : > { %v6105_v6 = vadd.f32 %v6104_v52, %v6008_v37 }
 0x574   : > { %v6188_v14 = vpop.f32.mrf.mxu1 }
 0x575   : > { %v6189_v45 = vadd.f32 %v6188_v14, %v6103_v38 }
 0x576   : > { %v6190_v36 = vpop.f32.mrf.mxu1 }
 0x577   : > { %v6191_v25 = vadd.f32 %v6190_v36, %v6105_v6 }
 0x579   : > { %v6296_v24 = vpop.f32.mrf.mxu0 }
 0x57a   : > { %v6297_v46 = vadd.f32 %v6296_v24, %v6189_v45 }
 0x57b   : > { %v6298_v31 = vpop.f32.mrf.mxu0 }
 0x57c   : > { %v6299_v49 = vadd.f32 %v6298_v31, %v6191_v25 }
 0x582   : > { %v6380_v16 = vpop.f32.mrf.mxu1 }
 0x583   : > { %v6381_v1 = vadd.f32 %v6380_v16, %v6297_v46 }
 0x584   : > { %v6382_v62 = vpop.f32.mrf.mxu1 }
 0x585   : > { %v6383_v3 = vadd.f32 %v6382_v62, %v6299_v49 }
 0x587   : > { %v6984_v17 = vcombine.low %v6381_v1, %v6383_v3 }
 0x589   : > { %6988 = vst [vmem:[%s10936_s9] sm:$0xff] %v6984_v17 }
 0x5ae   : > { %v6468_v59 = vpop.f32.mrf.mxu0 }
 0x5af   : > { %v6469_v21 = vadd.f32 %v6468_v59, %v5785_v51 }
 0x5b0   : > { %v6470_v12 = vpop.f32.mrf.mxu0 }
 0x5b1   : > { %v6471_v7 = vadd.f32 %v6470_v12, %v5785_v51 }
 0x5b6   : > { %v6600_v10 = vpop.f32.mrf.mxu1 }
 0x5b7   : > { %v6601_v9 = vadd.f32 %v6600_v10, %v6469_v21 }
 0x5b8   : > { %v6602_v41 = vpop.f32.mrf.mxu1 }
 0x5b9   : > { %v6603_v18 = vadd.f32 %v6602_v41, %v6471_v7 }
 0x5bb   : > { %v6697_v47 = vpop.f32.mrf.mxu0 }
 0x5bc   : > { %v6698_v57 = vadd.f32 %v6697_v47, %v6601_v9 }
 0x5bd   : > { %v6699_v60 = vpop.f32.mrf.mxu0 }
 0x5be   : > { %v6700_v22 = vadd.f32 %v6699_v60, %v6603_v18 }
 0x5c4   : > { %v6783_v63 = vpop.f32.mrf.mxu1 }
 0x5c5   : > { %v6784_v39 = vadd.f32 %v6783_v63, %v6698_v57 }
 0x5c6   : > { %v6785_v43 = vpop.f32.mrf.mxu1 }
 0x5c7   : > { %v6786_v13 = vadd.f32 %v6785_v43, %v6700_v22 }
 0x5c9   : > { %v6891_v26 = vpop.f32.mrf.mxu0 }
 0x5ca   : > { %v6892_v15 = vadd.f32 %v6891_v26, %v6784_v39 }
 0x5cb   : > { %v6893_v20 = vpop.f32.mrf.mxu0 }
 0x5cc   : > { %v6894_v11 = vadd.f32 %v6893_v20, %v6786_v13 }
 0x5d2   : > { %v6975_v35 = vpop.f32.mrf.mxu1 }
 0x5d3   : > { %v6976_v48 = vadd.f32 %v6975_v35, %v6892_v15 }
 0x5d4   : > { %v6977_v33 = vpop.f32.mrf.mxu1 }
 0x5d5   : > { %v6978_v27 = vadd.f32 %v6977_v33, %v6894_v11 }
 0x5d7   : > { %v6985_v61 = vcombine.low %v6976_v48, %v6978_v27 }
 0x5d9   : > { %6989 = vst [vmem:[%s10936_s9 + $0x8] sm:$0xff] %v6985_v61 }
 0x5da   : > { %7421 = shalt.err (!%p7418_p10)
}
 0x5db   : > { %s7422_s20 = scalar_lea.hbm %s7003_s10, 256  ;;  %s7426_s26 = scalar_lea.hbm %s10979_s3, 512 }
 0x5dc   : > { %p7423_p2 = scmp.ne.s32.totalorder %s7003_s10, %s7422_s20  ;;  %p7427_p7 = scmp.lt.s32.totalorder %s7003_s10, %s10979_s3 }
 0x5dd   : > { %p7428_p0 = scmp.lt.s32.totalorder %s7426_s26, %s7422_s20 }
 0x5de   : > { %p7424_p4 = pnand %p7423_p2, %p11547_p12 }
 0x5df   : > { %p7429_p6 = por %p7428_p0, %p7427_p7 }
 0x5e0   : > { %p7425_p9 = pneg %p7424_p4 }
 0x5e2   : > { %p7430_p11 = pnand %p7429_p6, %p7425_p9 }
 0x5e4   : > { %7433 = shalt.err (!%p7430_p11)
}
 0x5e5   : > { %7131 = dma.vmem_to_hbm [thread:$0]  (%p11547_p12), %s7006_s6, 256, %s7003_s10, %s6991_s11  }
 0x5e6 PF: > { %s7017_s30 = sand.u32 1, %s7460_s12   ;;  %p11548_p13 = scmp.ne.s32.totalorder %s11121_s25, 0 }
 0x5e7   : > { %p11549_p1 = scmp.ge.s32.totalorder %s7472_s15, 2  ;;  %s7018_s5 = scalar_lea.sflag [#allocation4], %s7017_s30 }
 0x5e9   : > { %p7138_p3 = pnand %p11549_p1, %p11548_p13 }
 0x5eb   : > { %p7139_p5 = pneg %p7138_p3 }
 0x5ed   : > { %7455 = dma.done.wait (%p7139_p5), %s7018_s5, 256  }
 0x5ee   : > { %7457 = vsyncadd (%p7139_p5), %s7018_s5, 4294967040  ;;  %p16_p8 = scmp.ge.s32.totalorder %s7524_s18, 4   ;;  %s11550_s12 = smov %s7464_s13 }
 0x5ef   : > { %s11551_s13 = smov %s7468_s14  ;;  %s11552_s14 = smov %s7536_s21 }
 0x5f0   : > { %s11553_s15 = smov %s7524_s18  ;;  %18 = sbr.rel (!%p16_p8) target bundleno = 5 (0x5), region = 85 }
 0x5f5   :  { %7023 = vsyncpa [#allocation3], 1 }
 0x5f6   :  { %7025 = vsyncpa [#allocation3 + $0x1], 1 }
 0x5f7   :  { %7026 = vsyncpa [#allocation4], 1 }
 0x5f8   :  { %7028 = vsyncpa [#allocation4 + $0x1], 1 }

</bundles_post_ra>
